<compile_context>
chip_gen: v6e
topology: v6e:2x2x1
jax: 0.10.0
libtpu: 0.0.40
codegen_flags: <defaults>
</compile_context>

<pallas_src>
import functools
import math

import jax
import jax.numpy as jnp
from jax.experimental import pallas as pl
from jax.experimental.pallas import tpu as pltpu

_BN_EPS = 1e-5
_PAD = 128   # flat spatial zero-padding (lanes) on each side of the conv scratch


def _full_spec(shape):
    nd = len(shape)
    return pl.BlockSpec(shape, lambda *_, _nd=nd: (0,) * _nd)


# ------------------------------- Pallas kernel -------------------------------

def _csp_kernel(x_ref, w1_ref, b1_ref,
                bw1_ref, bb1_ref, bw2_ref, bb2_ref,
                w3_ref, bbn1_ref, w2_ref, bbn2_ref,
                w4a_ref, w4b_ref, b4_ref,
                o_ref, xp_ref,
                *, n, H, W, shortcut):
    """Whole Q_BottleneckCSP forward for one batch element (grid axis = batch).

    x_ref : (1, c1, S) bf16 tokens, channel-major, S = H*W (row-major i*W + j).
    All conv weights are (c_out, c_in)[, per 3x3 tap] bf16 with the BN scale
    pre-folded in; biases are (c, 1) f32.
    """
    S = H * W
    f32 = jnp.float32
    bf16 = jnp.bfloat16

    x = x_ref[0]                                        # (c1, S) bf16

    # Column-validity masks for the 3x3 taps (output-pixel column index j).
    jcol = jax.lax.broadcasted_iota(jnp.int32, (1, S), 1) % W
    mask_l = jcol >= 1            # left neighbour  (dj = -1) exists
    mask_r = jcol < (W - 1)       # right neighbour (dj = +1) exists

    # Zero the padded scratch once; only its interior is rewritten per conv.
    xp_ref[...] = jnp.zeros_like(xp_ref)

    def conv3x3_bn_relu(v, w9, bias):
        """3x3 conv (pad=1) + folded BN + ReLU in channel-major layout.

        v: (c_, S) f32;  w9: (9, c_, c_) bf16, tap k=(di+1)*3+(dj+1);  bias: (c_,1) f32.
        """
        xp_ref[:, pl.ds(_PAD, S)] = v                   # aligned interior store
        xp = xp_ref[...]                                # (c_, S + 2*_PAD) f32
        acc = jnp.zeros_like(v)
        for di in (-1, 0, 1):
            for dj in (-1, 0, 1):
                off = di * W + dj
                start = _PAD + off
                win = xp[:, start:start + S]            # shifted window (c_, S)
                if dj == -1:
                    win = jnp.where(mask_l, win, 0.0)
                elif dj == 1:
                    win = jnp.where(mask_r, win, 0.0)
                k = (di + 1) * 3 + (dj + 1)
                acc = acc + jnp.dot(w9[k], win.astype(bf16),
                                    preferred_element_type=f32)
        return jnp.maximum(acc + bias, 0.0)

    # cv1: 1x1 conv (BN scale folded into the weight) + bias + ReLU
    h = jnp.maximum(
        jnp.dot(w1_ref[...], x, preferred_element_type=f32) + b1_ref[...], 0.0)

    # m = Q_Bottleneck chain: two 3x3 Q_Convs each, optional residual add.
    m = h
    for l in range(n):
        t = conv3x3_bn_relu(m, bw1_ref[l], bb1_ref[l])
        t = conv3x3_bn_relu(t, bw2_ref[l], bb2_ref[l])
        m = (m + t) if shortcut else t

    # y1 = cv3(m), y2 = cv2(x).  The post-concat BatchNorm scale is pre-folded
    # into w3 / w2 (its bias is bbn1 / bbn2), followed by ReLU.
    z1 = jnp.maximum(
        jnp.dot(w3_ref[...], m.astype(bf16), preferred_element_type=f32)
        + bbn1_ref[...], 0.0)
    z2 = jnp.maximum(
        jnp.dot(w2_ref[...], x, preferred_element_type=f32) + bbn2_ref[...], 0.0)

    # cv4 on the channel concat == W4a @ z1 + W4b @ z2 (exact column split of
    # the 1x1 conv weight), then folded BN bias + ReLU.
    y = (jnp.dot(w4a_ref[...], z1.astype(bf16), preferred_element_type=f32)
         + jnp.dot(w4b_ref[...], z2.astype(bf16), preferred_element_type=f32)
         + b4_ref[...])
    o_ref[0] = jnp.maximum(y, 0.0)


# --------------------------------- wrapper -----------------------------------

def q_bottleneck_csp(x_nchw, kp):
    """Fused Q_BottleneckCSP forward.  x_nchw: (B, c1, H, W) float."""
    B, c1, H, W = x_nchw.shape
    c_, c2, n = kp['c_'], kp['c2'], kp['n']
    S = H * W
    assert W + 1 <= _PAD, "spatial width too large for the fixed conv padding"

    # NCHW -> channel-major tokens (B, C, S); lane axis = S (no host transpose).
    x3 = x_nchw.reshape(B, c1, S).astype(jnp.bfloat16)

    weights = (kp['w1'], kp['b1'],
               kp['bw1'], kp['bb1'], kp['bw2'], kp['bb2'],
               kp['w3'], kp['bbn1'], kp['w2'], kp['bbn2'],
               kp['w4a'], kp['w4b'], kp['b4'])

    kernel = functools.partial(_csp_kernel, n=n, H=H, W=W,
                               shortcut=kp['shortcut'])
    out = pl.pallas_call(
        kernel,
        grid=(B,),
        in_specs=[pl.BlockSpec((1, c1, S), lambda b: (b, 0, 0))]
                 + [_full_spec(w.shape) for w in weights],
        out_specs=pl.BlockSpec((1, c2, S), lambda b: (b, 0, 0)),
        out_shape=jax.ShapeDtypeStruct((B, c2, S), jnp.float32),
        scratch_shapes=[pltpu.VMEM((c_, S + 2 * _PAD), jnp.float32)],
        compiler_params=pltpu.CompilerParams(
            dimension_semantics=("parallel",)),   # shards batch over v7x's 2 TCs
    )(x3, *weights)
    return out.reshape(B, c2, H, W)


# ------------------------- parameters (torch-like, f32) ----------------------

def init_params(key, c1, c2, n, e=0.5, shortcut=True):
    c_ = int(c2 * e)
    ks = jax.random.split(key, 8 + n)

    def conv_w(k, co, ci, ksize):
        fan_in = ci * ksize * ksize
        shape = (co, ci) if ksize == 1 else (co, ci, ksize, ksize)
        return jax.random.normal(k, shape, jnp.float32) / math.sqrt(fan_in)

    def bn_p(k, c):
        kk = jax.random.split(k, 4)
        return dict(gamma=1.0 + 0.1 * jax.random.normal(kk[0], (c,), jnp.float32),
                    beta=0.1 * jax.random.normal(kk[1], (c,), jnp.float32),
                    mean=0.1 * jax.random.normal(kk[2], (c,), jnp.float32),
                    var=jnp.abs(1.0 + 0.1 * jax.random.normal(kk[3], (c,), jnp.float32)))

    p = dict(c1=c1, c2=c2, c_=c_, n=n, shortcut=shortcut)
    p['cv1_w'] = conv_w(ks[0], c_, c1, 1)
    p['cv1_bn'] = bn_p(ks[1], c_)
    p['cv2_w'] = conv_w(ks[2], c_, c1, 1)
    p['cv3_w'] = conv_w(ks[3], c_, c_, 1)
    p['bn'] = bn_p(ks[4], 2 * c_)
    p['cv4_w'] = conv_w(ks[5], c2, 2 * c_, 1)
    p['cv4_bn'] = bn_p(ks[6], c2)
    bots = []
    for l in range(n):
        k1, k2, k3, k4 = jax.random.split(ks[7 + l], 4)
        bots.append(dict(w1=conv_w(k1, c_, c_, 3), bn1=bn_p(k2, c_),
                         w2=conv_w(k3, c_, c_, 3), bn2=bn_p(k4, c_)))
    p['bottlenecks'] = bots
    return p


def _fold_bn(bn):
    scale = bn['gamma'] / jnp.sqrt(bn['var'] + _BN_EPS)
    bias = bn['beta'] - bn['mean'] * scale
    return scale, bias


def prepare_kernel_params(p):
    """Fold BN into the conv weights, split cv4/BN per concat half, cast to bf16."""
    c_, c2, n = p['c_'], p['c2'], p['n']
    bf16 = jnp.bfloat16
    kp = dict(c_=c_, c2=c2, n=n, shortcut=p['shortcut'])

    s1, b1 = _fold_bn(p['cv1_bn'])
    kp['w1'] = (s1[:, None] * p['cv1_w']).astype(bf16)          # (c_, c1)
    kp['b1'] = b1[:, None]                                      # (c_, 1) f32

    bw1, bb1, bw2, bb2 = [], [], [], []
    for bot in p['bottlenecks']:
        for wkey, bnkey, wl, bl in (('w1', 'bn1', bw1, bb1),
                                    ('w2', 'bn2', bw2, bb2)):
            s, b = _fold_bn(bot[bnkey])
            w = bot[wkey]                                        # (co, ci, 3, 3)
            w9 = jnp.transpose(w, (2, 3, 0, 1)).reshape(9, c_, c_)
            wl.append((w9 * s[None, :, None]).astype(bf16))
            bl.append(b[:, None])
    kp['bw1'] = jnp.stack(bw1)
    kp['bb1'] = jnp.stack(bb1)
    kp['bw2'] = jnp.stack(bw2)
    kp['bb2'] = jnp.stack(bb2)

    sbn, bbn = _fold_bn(p['bn'])                                 # over 2*c_
    kp['w3'] = (sbn[:c_, None] * p['cv3_w']).astype(bf16)
    kp['bbn1'] = bbn[:c_, None]
    kp['w2'] = (sbn[c_:, None] * p['cv2_w']).astype(bf16)
    kp['bbn2'] = bbn[c_:, None]

    s4, b4 = _fold_bn(p['cv4_bn'])
    kp['w4a'] = (s4[:, None] * p['cv4_w'][:, :c_]).astype(bf16)
    kp['w4b'] = (s4[:, None] * p['cv4_w'][:, c_:]).astype(bf16)
    kp['b4'] = b4[:, None]
    return kp


# ---------------------- pure-JAX f32 reference (torch layout) ----------------

def reference(x, p):
    relu = lambda t: jnp.maximum(t, 0.0)
    hi = jax.lax.Precision.HIGHEST

    def bn_apply(y, bn):
        scale, bias = _fold_bn(bn)
        return y * scale[None, :, None, None] + bias[None, :, None, None]

    def conv1x1(y, w):
        return jnp.einsum('oc,bchw->bohw', w, y, precision=hi)

    def conv3x3(y, w):
        return jax.lax.conv_general_dilated(
            y, w, window_strides=(1, 1), padding='SAME',
            dimension_numbers=('NCHW', 'OIHW', 'NCHW'), precision=hi)

    x = x.astype(jnp.float32)
    h = relu(bn_apply(conv1x1(x, p['cv1_w']), p['cv1_bn']))
    m = h
    for bot in p['bottlenecks']:
        t = relu(bn_apply(conv3x3(m, bot['w1']), bot['bn1']))
        t = relu(bn_apply(conv3x3(t, bot['w2']), bot['bn2']))
        m = (m + t) if p['shortcut'] else t
    y1 = conv1x1(m, p['cv3_w'])
    y2 = conv1x1(x, p['cv2_w'])
    cat = jnp.concatenate([y1, y2], axis=1)
    z = relu(bn_apply(cat, p['bn']))
    return relu(bn_apply(conv1x1(z, p['cv4_w']), p['cv4_bn']))


# ------------------------------------ main ------------------------------------

if __name__ == "__main__":
    B, C1, H, W = 2, 8, 16, 16
    C2, N_BOTTLENECK = 32, 2

    key = jax.random.PRNGKey(0)
    kx, kparam = jax.random.split(key)
    x = jax.random.normal(kx, (B, C1, H, W), dtype=jnp.float32)

    params = init_params(kparam, C1, C2, N_BOTTLENECK)
    kparams = prepare_kernel_params(params)

    out = q_bottleneck_csp(x, kparams)
    out = jax.block_until_ready(out)
    assert out.shape == (B, C2, H, W), out.shape

    ref = reference(x, params)
    # Tolerance sized for bf16 MXU matmuls (f32 accumulation) across ~7 serial
    # conv stages vs the all-f32 reference.
    if not jnp.allclose(out, ref, atol=1e-1, rtol=5e-2):
        max_err = float(jnp.max(jnp.abs(out - ref)))
        raise AssertionError(f"Pallas output mismatch, max abs err = {max_err}")

    print("KERNEL_OK")
</pallas_src>

<mosaic_0001>
module attributes {stable_mosaic.version = 11 : i64} {
  func.func @_csp_kernel(%arg0: i32, %arg1: memref<1x8x256xbf16, #tpu.memory_space<vmem>>, %arg2: memref<16x8xbf16, #tpu.memory_space<vmem>>, %arg3: memref<16x1xf32, #tpu.memory_space<vmem>>, %arg4: memref<2x9x16x16xbf16, #tpu.memory_space<vmem>>, %arg5: memref<2x16x1xf32, #tpu.memory_space<vmem>>, %arg6: memref<2x9x16x16xbf16, #tpu.memory_space<vmem>>, %arg7: memref<2x16x1xf32, #tpu.memory_space<vmem>>, %arg8: memref<16x16xbf16, #tpu.memory_space<vmem>>, %arg9: memref<16x1xf32, #tpu.memory_space<vmem>>, %arg10: memref<16x8xbf16, #tpu.memory_space<vmem>>, %arg11: memref<16x1xf32, #tpu.memory_space<vmem>>, %arg12: memref<32x16xbf16, #tpu.memory_space<vmem>>, %arg13: memref<32x16xbf16, #tpu.memory_space<vmem>>, %arg14: memref<32x1xf32, #tpu.memory_space<vmem>>, %arg15: memref<1x32x256xf32, #tpu.memory_space<vmem>>, %arg16: memref<16x512xf32, #tpu.memory_space<vmem>>) attributes {dimension_semantics = [#tpu.dimension_semantics<parallel>], iteration_bounds = array<i64: 2>, scalar_prefetch = 0 : i64, scratch_operands = 1 : i64, tpu.core_type = #tpu.core_type<tc>, window_params = [{transform_indices = @transform_0, window_bounds = array<i64: 1, 8, 256>}, {pipeline_mode = #tpu.pipeline_mode<synchronous>, transform_indices = @transform_1, window_bounds = array<i64: 16, 8>}, {pipeline_mode = #tpu.pipeline_mode<synchronous>, transform_indices = @transform_2, window_bounds = array<i64: 16, 1>}, {pipeline_mode = #tpu.pipeline_mode<synchronous>, transform_indices = @transform_3, window_bounds = array<i64: 2, 9, 16, 16>}, {pipeline_mode = #tpu.pipeline_mode<synchronous>, transform_indices = @transform_4, window_bounds = array<i64: 2, 16, 1>}, {pipeline_mode = #tpu.pipeline_mode<synchronous>, transform_indices = @transform_5, window_bounds = array<i64: 2, 9, 16, 16>}, {pipeline_mode = #tpu.pipeline_mode<synchronous>, transform_indices = @transform_6, window_bounds = array<i64: 2, 16, 1>}, {pipeline_mode = #tpu.pipeline_mode<synchronous>, transform_indices = @transform_7, window_bounds = array<i64: 16, 16>}, {pipeline_mode = #tpu.pipeline_mode<synchronous>, transform_indices = @transform_8, window_bounds = array<i64: 16, 1>}, {pipeline_mode = #tpu.pipeline_mode<synchronous>, transform_indices = @transform_9, window_bounds = array<i64: 16, 8>}, {pipeline_mode = #tpu.pipeline_mode<synchronous>, transform_indices = @transform_10, window_bounds = array<i64: 16, 1>}, {pipeline_mode = #tpu.pipeline_mode<synchronous>, transform_indices = @transform_11, window_bounds = array<i64: 32, 16>}, {pipeline_mode = #tpu.pipeline_mode<synchronous>, transform_indices = @transform_12, window_bounds = array<i64: 32, 16>}, {pipeline_mode = #tpu.pipeline_mode<synchronous>, transform_indices = @transform_13, window_bounds = array<i64: 32, 1>}, {transform_indices = @transform_14, window_bounds = array<i64: 1, 32, 256>}]} {
    %c0 = arith.constant 0 : index
    %c0_0 = arith.constant 0 : index
    %c0_1 = arith.constant 0 : index
    %0 = vector.load %arg1[%c0, %c0_0, %c0_1] : memref<1x8x256xbf16, #tpu.memory_space<vmem>>, vector<1x8x256xbf16>
    %1 = vector.shape_cast %0 : vector<1x8x256xbf16> to vector<8x256xbf16>
    %2 = tpu.iota {dimensions = array<i32: 1>} : vector<1x256xi32>
    %c16_i32 = arith.constant 16 : i32
    %c0_i32 = arith.constant 0 : i32
    %3 = arith.cmpi eq, %c16_i32, %c0_i32 : i32
    %c1_i32 = arith.constant 1 : i32
    %4 = arith.select %3, %c1_i32, %c16_i32 : i32
    %5 = vector.broadcast %4 : i32 to vector<1x256xi32>
    %6 = arith.remsi %2, %5 : vector<1x256xi32>
    %c0_i32_2 = arith.constant 0 : i32
    %7 = vector.broadcast %c0_i32_2 : i32 to vector<1x256xi32>
    %8 = arith.cmpi ne, %6, %7 : vector<1x256xi32>
    %c0_i32_3 = arith.constant 0 : i32
    %9 = vector.broadcast %c0_i32_3 : i32 to vector<1x256xi32>
    %10 = arith.cmpi slt, %6, %9 : vector<1x256xi32>
    %c0_i32_4 = arith.constant 0 : i32
    %11 = arith.cmpi slt, %4, %c0_i32_4 : i32
    %12 = vector.broadcast %11 : i1 to vector<1x256xi1>
    %13 = vector.broadcast %12 : vector<1x256xi1> to vector<1x256xi1>
    %14 = arith.xori %10, %13 : vector<1x256xi1>
    %15 = arith.andi %14, %8 : vector<1x256xi1>
    %16 = vector.broadcast %4 : i32 to vector<1x256xi32>
    %17 = arith.addi %6, %16 : vector<1x256xi32>
    %18 = arith.select %15, %17, %6 : vector<1x256xi1>, vector<1x256xi32>
    %c1_i32_5 = arith.constant 1 : i32
    %19 = vector.broadcast %c1_i32_5 : i32 to vector<1x256xi32>
    %20 = arith.cmpi sge, %18, %19 : vector<1x256xi32>
    %c15_i32 = arith.constant 15 : i32
    %21 = vector.broadcast %c15_i32 : i32 to vector<1x256xi32>
    %22 = arith.cmpi slt, %18, %21 : vector<1x256xi32>
    %cst = arith.constant 0.000000e+00 : f32
    %23 = vector.broadcast %cst : f32 to vector<16x512xf32>
    %c0_6 = arith.constant 0 : index
    %c0_7 = arith.constant 0 : index
    %24 = vector.load %arg16[%c0_6, %c0_7] : memref<16x512xf32, #tpu.memory_space<vmem>>, vector<16x512xf32>
    tpu.vector_store %arg16[%c0_6, %c0_7], %23 {strides = array<i32>} : memref<16x512xf32, #tpu.memory_space<vmem>>, vector<16x512xf32>,
    %c0_8 = arith.constant 0 : index
    %c0_9 = arith.constant 0 : index
    %25 = vector.load %arg2[%c0_8, %c0_9] : memref<16x8xbf16, #tpu.memory_space<vmem>>, vector<16x8xbf16>
    %cst_10 = arith.constant dense<0.000000e+00> : vector<16x256xf32>
    %26 = tpu.matmul %25, %1, %cst_10 {dimension_numbers = #tpu.dot_dimension_numbers<[1], [0], [0], [1], [0, 0, 1, 1], [], []>} : vector<16x8xbf16>, vector<8x256xbf16>, vector<16x256xf32> -> vector<16x256xf32>
    %c0_11 = arith.constant 0 : index
    %c0_12 = arith.constant 0 : index
    %27 = vector.load %arg3[%c0_11, %c0_12] : memref<16x1xf32, #tpu.memory_space<vmem>>, vector<16x1xf32>
    %28 = vector.broadcast %27 : vector<16x1xf32> to vector<16x256xf32>
    %29 = arith.addf %26, %28 : vector<16x256xf32>
    %cst_13 = arith.constant 0.000000e+00 : f32
    %30 = vector.broadcast %cst_13 : f32 to vector<16x256xf32>
    %31 = arith.maximumf %29, %30 : vector<16x256xf32>
    %c0_14 = arith.constant 0 : index
    %c0_15 = arith.constant 0 : index
    %c0_16 = arith.constant 0 : index
    %c0_17 = arith.constant 0 : index
    %32 = vector.load %arg4[%c0_14, %c0_15, %c0_16, %c0_17] : memref<2x9x16x16xbf16, #tpu.memory_space<vmem>>, vector<1x9x16x16xbf16>
    %33 = vector.shape_cast %32 : vector<1x9x16x16xbf16> to vector<9x16x16xbf16>
    %c0_18 = arith.constant 0 : index
    %c0_19 = arith.constant 0 : index
    %c0_20 = arith.constant 0 : index
    %34 = vector.load %arg5[%c0_18, %c0_19, %c0_20] : memref<2x16x1xf32, #tpu.memory_space<vmem>>, vector<1x16x1xf32>
    %35 = vector.shape_cast %34 : vector<1x16x1xf32> to vector<16x1xf32>
    %c0_21 = arith.constant 0 : index
    %c128 = arith.constant 128 : index
    %36 = vector.load %arg16[%c0_21, %c128] : memref<16x512xf32, #tpu.memory_space<vmem>>, vector<16x256xf32>
    tpu.vector_store %arg16[%c0_21, %c128], %31 {strides = array<i32>} : memref<16x512xf32, #tpu.memory_space<vmem>>, vector<16x256xf32>,
    %c0_22 = arith.constant 0 : index
    %c0_23 = arith.constant 0 : index
    %37 = vector.load %arg16[%c0_22, %c0_23] : memref<16x512xf32, #tpu.memory_space<vmem>>, vector<16x512xf32>
    %cst_24 = arith.constant 0.000000e+00 : f32
    %38 = vector.broadcast %cst_24 : f32 to vector<16x256xf32>
    %39 = vector.extract_strided_slice %37 {offsets = [0, 111], sizes = [16, 256], strides = [1, 1]} : vector<16x512xf32> to vector<16x256xf32>
    %cst_25 = arith.constant 0.000000e+00 : f32
    %40 = vector.shape_cast %20 : vector<1x256xi1> to vector<1x256xi1>
    %41 = vector.broadcast %40 : vector<1x256xi1> to vector<16x256xi1>
    %42 = vector.broadcast %cst_25 : f32 to vector<16x256xf32>
    %43 = arith.select %41, %39, %42 : vector<16x256xi1>, vector<16x256xf32>
    %44 = vector.extract_strided_slice %33 {offsets = [0, 0, 0], sizes = [1, 16, 16], strides = [1, 1, 1]} : vector<9x16x16xbf16> to vector<1x16x16xbf16>
    %45 = vector.shape_cast %44 : vector<1x16x16xbf16> to vector<16x16xbf16>
    %46 = arith.truncf %43 : vector<16x256xf32> to vector<16x256xbf16>
    %cst_26 = arith.constant dense<0.000000e+00> : vector<16x256xf32>
    %47 = tpu.matmul %45, %46, %cst_26 {dimension_numbers = #tpu.dot_dimension_numbers<[1], [0], [0], [1], [0, 0, 1, 1], [], []>} : vector<16x16xbf16>, vector<16x256xbf16>, vector<16x256xf32> -> vector<16x256xf32>
    %48 = arith.addf %38, %47 : vector<16x256xf32>
    %49 = vector.extract_strided_slice %37 {offsets = [0, 112], sizes = [16, 256], strides = [1, 1]} : vector<16x512xf32> to vector<16x256xf32>
    %50 = vector.extract_strided_slice %33 {offsets = [1, 0, 0], sizes = [1, 16, 16], strides = [1, 1, 1]} : vector<9x16x16xbf16> to vector<1x16x16xbf16>
    %51 = vector.shape_cast %50 : vector<1x16x16xbf16> to vector<16x16xbf16>
    %52 = arith.truncf %49 : vector<16x256xf32> to vector<16x256xbf16>
    %cst_27 = arith.constant dense<0.000000e+00> : vector<16x256xf32>
    %53 = tpu.matmul %51, %52, %cst_27 {dimension_numbers = #tpu.dot_dimension_numbers<[1], [0], [0], [1], [0, 0, 1, 1], [], []>} : vector<16x16xbf16>, vector<16x256xbf16>, vector<16x256xf32> -> vector<16x256xf32>
    %54 = arith.addf %48, %53 : vector<16x256xf32>
    %55 = vector.extract_strided_slice %37 {offsets = [0, 113], sizes = [16, 256], strides = [1, 1]} : vector<16x512xf32> to vector<16x256xf32>
    %cst_28 = arith.constant 0.000000e+00 : f32
    %56 = vector.shape_cast %22 : vector<1x256xi1> to vector<1x256xi1>
    %57 = vector.broadcast %56 : vector<1x256xi1> to vector<16x256xi1>
    %58 = vector.broadcast %cst_28 : f32 to vector<16x256xf32>
    %59 = arith.select %57, %55, %58 : vector<16x256xi1>, vector<16x256xf32>
    %60 = vector.extract_strided_slice %33 {offsets = [2, 0, 0], sizes = [1, 16, 16], strides = [1, 1, 1]} : vector<9x16x16xbf16> to vector<1x16x16xbf16>
    %61 = vector.shape_cast %60 : vector<1x16x16xbf16> to vector<16x16xbf16>
    %62 = arith.truncf %59 : vector<16x256xf32> to vector<16x256xbf16>
    %cst_29 = arith.constant dense<0.000000e+00> : vector<16x256xf32>
    %63 = tpu.matmul %61, %62, %cst_29 {dimension_numbers = #tpu.dot_dimension_numbers<[1], [0], [0], [1], [0, 0, 1, 1], [], []>} : vector<16x16xbf16>, vector<16x256xbf16>, vector<16x256xf32> -> vector<16x256xf32>
    %64 = arith.addf %54, %63 : vector<16x256xf32>
    %65 = vector.extract_strided_slice %37 {offsets = [0, 127], sizes = [16, 256], strides = [1, 1]} : vector<16x512xf32> to vector<16x256xf32>
    %cst_30 = arith.constant 0.000000e+00 : f32
    %66 = vector.shape_cast %20 : vector<1x256xi1> to vector<1x256xi1>
    %67 = vector.broadcast %66 : vector<1x256xi1> to vector<16x256xi1>
    %68 = vector.broadcast %cst_30 : f32 to vector<16x256xf32>
    %69 = arith.select %67, %65, %68 : vector<16x256xi1>, vector<16x256xf32>
    %70 = vector.extract_strided_slice %33 {offsets = [3, 0, 0], sizes = [1, 16, 16], strides = [1, 1, 1]} : vector<9x16x16xbf16> to vector<1x16x16xbf16>
    %71 = vector.shape_cast %70 : vector<1x16x16xbf16> to vector<16x16xbf16>
    %72 = arith.truncf %69 : vector<16x256xf32> to vector<16x256xbf16>
    %cst_31 = arith.constant dense<0.000000e+00> : vector<16x256xf32>
    %73 = tpu.matmul %71, %72, %cst_31 {dimension_numbers = #tpu.dot_dimension_numbers<[1], [0], [0], [1], [0, 0, 1, 1], [], []>} : vector<16x16xbf16>, vector<16x256xbf16>, vector<16x256xf32> -> vector<16x256xf32>
    %74 = arith.addf %64, %73 : vector<16x256xf32>
    %75 = vector.extract_strided_slice %37 {offsets = [0, 128], sizes = [16, 256], strides = [1, 1]} : vector<16x512xf32> to vector<16x256xf32>
    %76 = vector.extract_strided_slice %33 {offsets = [4, 0, 0], sizes = [1, 16, 16], strides = [1, 1, 1]} : vector<9x16x16xbf16> to vector<1x16x16xbf16>
    %77 = vector.shape_cast %76 : vector<1x16x16xbf16> to vector<16x16xbf16>
    %78 = arith.truncf %75 : vector<16x256xf32> to vector<16x256xbf16>
    %cst_32 = arith.constant dense<0.000000e+00> : vector<16x256xf32>
    %79 = tpu.matmul %77, %78, %cst_32 {dimension_numbers = #tpu.dot_dimension_numbers<[1], [0], [0], [1], [0, 0, 1, 1], [], []>} : vector<16x16xbf16>, vector<16x256xbf16>, vector<16x256xf32> -> vector<16x256xf32>
    %80 = arith.addf %74, %79 : vector<16x256xf32>
    %81 = vector.extract_strided_slice %37 {offsets = [0, 129], sizes = [16, 256], strides = [1, 1]} : vector<16x512xf32> to vector<16x256xf32>
    %cst_33 = arith.constant 0.000000e+00 : f32
    %82 = vector.shape_cast %22 : vector<1x256xi1> to vector<1x256xi1>
    %83 = vector.broadcast %82 : vector<1x256xi1> to vector<16x256xi1>
    %84 = vector.broadcast %cst_33 : f32 to vector<16x256xf32>
    %85 = arith.select %83, %81, %84 : vector<16x256xi1>, vector<16x256xf32>
    %86 = vector.extract_strided_slice %33 {offsets = [5, 0, 0], sizes = [1, 16, 16], strides = [1, 1, 1]} : vector<9x16x16xbf16> to vector<1x16x16xbf16>
    %87 = vector.shape_cast %86 : vector<1x16x16xbf16> to vector<16x16xbf16>
    %88 = arith.truncf %85 : vector<16x256xf32> to vector<16x256xbf16>
    %cst_34 = arith.constant dense<0.000000e+00> : vector<16x256xf32>
    %89 = tpu.matmul %87, %88, %cst_34 {dimension_numbers = #tpu.dot_dimension_numbers<[1], [0], [0], [1], [0, 0, 1, 1], [], []>} : vector<16x16xbf16>, vector<16x256xbf16>, vector<16x256xf32> -> vector<16x256xf32>
    %90 = arith.addf %80, %89 : vector<16x256xf32>
    %91 = vector.extract_strided_slice %37 {offsets = [0, 143], sizes = [16, 256], strides = [1, 1]} : vector<16x512xf32> to vector<16x256xf32>
    %cst_35 = arith.constant 0.000000e+00 : f32
    %92 = vector.shape_cast %20 : vector<1x256xi1> to vector<1x256xi1>
    %93 = vector.broadcast %92 : vector<1x256xi1> to vector<16x256xi1>
    %94 = vector.broadcast %cst_35 : f32 to vector<16x256xf32>
    %95 = arith.select %93, %91, %94 : vector<16x256xi1>, vector<16x256xf32>
    %96 = vector.extract_strided_slice %33 {offsets = [6, 0, 0], sizes = [1, 16, 16], strides = [1, 1, 1]} : vector<9x16x16xbf16> to vector<1x16x16xbf16>
    %97 = vector.shape_cast %96 : vector<1x16x16xbf16> to vector<16x16xbf16>
    %98 = arith.truncf %95 : vector<16x256xf32> to vector<16x256xbf16>
    %cst_36 = arith.constant dense<0.000000e+00> : vector<16x256xf32>
    %99 = tpu.matmul %97, %98, %cst_36 {dimension_numbers = #tpu.dot_dimension_numbers<[1], [0], [0], [1], [0, 0, 1, 1], [], []>} : vector<16x16xbf16>, vector<16x256xbf16>, vector<16x256xf32> -> vector<16x256xf32>
    %100 = arith.addf %90, %99 : vector<16x256xf32>
    %101 = vector.extract_strided_slice %37 {offsets = [0, 144], sizes = [16, 256], strides = [1, 1]} : vector<16x512xf32> to vector<16x256xf32>
    %102 = vector.extract_strided_slice %33 {offsets = [7, 0, 0], sizes = [1, 16, 16], strides = [1, 1, 1]} : vector<9x16x16xbf16> to vector<1x16x16xbf16>
    %103 = vector.shape_cast %102 : vector<1x16x16xbf16> to vector<16x16xbf16>
    %104 = arith.truncf %101 : vector<16x256xf32> to vector<16x256xbf16>
    %cst_37 = arith.constant dense<0.000000e+00> : vector<16x256xf32>
    %105 = tpu.matmul %103, %104, %cst_37 {dimension_numbers = #tpu.dot_dimension_numbers<[1], [0], [0], [1], [0, 0, 1, 1], [], []>} : vector<16x16xbf16>, vector<16x256xbf16>, vector<16x256xf32> -> vector<16x256xf32>
    %106 = arith.addf %100, %105 : vector<16x256xf32>
    %107 = vector.extract_strided_slice %37 {offsets = [0, 145], sizes = [16, 256], strides = [1, 1]} : vector<16x512xf32> to vector<16x256xf32>
    %cst_38 = arith.constant 0.000000e+00 : f32
    %108 = vector.shape_cast %22 : vector<1x256xi1> to vector<1x256xi1>
    %109 = vector.broadcast %108 : vector<1x256xi1> to vector<16x256xi1>
    %110 = vector.broadcast %cst_38 : f32 to vector<16x256xf32>
    %111 = arith.select %109, %107, %110 : vector<16x256xi1>, vector<16x256xf32>
    %112 = vector.extract_strided_slice %33 {offsets = [8, 0, 0], sizes = [1, 16, 16], strides = [1, 1, 1]} : vector<9x16x16xbf16> to vector<1x16x16xbf16>
    %113 = vector.shape_cast %112 : vector<1x16x16xbf16> to vector<16x16xbf16>
    %114 = arith.truncf %111 : vector<16x256xf32> to vector<16x256xbf16>
    %cst_39 = arith.constant dense<0.000000e+00> : vector<16x256xf32>
    %115 = tpu.matmul %113, %114, %cst_39 {dimension_numbers = #tpu.dot_dimension_numbers<[1], [0], [0], [1], [0, 0, 1, 1], [], []>} : vector<16x16xbf16>, vector<16x256xbf16>, vector<16x256xf32> -> vector<16x256xf32>
    %116 = arith.addf %106, %115 : vector<16x256xf32>
    %117 = vector.broadcast %35 : vector<16x1xf32> to vector<16x256xf32>
    %118 = arith.addf %116, %117 : vector<16x256xf32>
    %cst_40 = arith.constant 0.000000e+00 : f32
    %119 = vector.broadcast %cst_40 : f32 to vector<16x256xf32>
    %120 = arith.maximumf %118, %119 : vector<16x256xf32>
    %c0_41 = arith.constant 0 : index
    %c0_42 = arith.constant 0 : index
    %c0_43 = arith.constant 0 : index
    %c0_44 = arith.constant 0 : index
    %121 = vector.load %arg6[%c0_41, %c0_42, %c0_43, %c0_44] : memref<2x9x16x16xbf16, #tpu.memory_space<vmem>>, vector<1x9x16x16xbf16>
    %122 = vector.shape_cast %121 : vector<1x9x16x16xbf16> to vector<9x16x16xbf16>
    %c0_45 = arith.constant 0 : index
    %c0_46 = arith.constant 0 : index
    %c0_47 = arith.constant 0 : index
    %123 = vector.load %arg7[%c0_45, %c0_46, %c0_47] : memref<2x16x1xf32, #tpu.memory_space<vmem>>, vector<1x16x1xf32>
    %124 = vector.shape_cast %123 : vector<1x16x1xf32> to vector<16x1xf32>
    %c0_48 = arith.constant 0 : index
    %c128_49 = arith.constant 128 : index
    %125 = vector.load %arg16[%c0_48, %c128_49] : memref<16x512xf32, #tpu.memory_space<vmem>>, vector<16x256xf32>
    tpu.vector_store %arg16[%c0_48, %c128_49], %120 {strides = array<i32>} : memref<16x512xf32, #tpu.memory_space<vmem>>, vector<16x256xf32>,
    %c0_50 = arith.constant 0 : index
    %c0_51 = arith.constant 0 : index
    %126 = vector.load %arg16[%c0_50, %c0_51] : memref<16x512xf32, #tpu.memory_space<vmem>>, vector<16x512xf32>
    %cst_52 = arith.constant 0.000000e+00 : f32
    %127 = vector.broadcast %cst_52 : f32 to vector<16x256xf32>
    %128 = vector.extract_strided_slice %126 {offsets = [0, 111], sizes = [16, 256], strides = [1, 1]} : vector<16x512xf32> to vector<16x256xf32>
    %cst_53 = arith.constant 0.000000e+00 : f32
    %129 = vector.shape_cast %20 : vector<1x256xi1> to vector<1x256xi1>
    %130 = vector.broadcast %129 : vector<1x256xi1> to vector<16x256xi1>
    %131 = vector.broadcast %cst_53 : f32 to vector<16x256xf32>
    %132 = arith.select %130, %128, %131 : vector<16x256xi1>, vector<16x256xf32>
    %133 = vector.extract_strided_slice %122 {offsets = [0, 0, 0], sizes = [1, 16, 16], strides = [1, 1, 1]} : vector<9x16x16xbf16> to vector<1x16x16xbf16>
    %134 = vector.shape_cast %133 : vector<1x16x16xbf16> to vector<16x16xbf16>
    %135 = arith.truncf %132 : vector<16x256xf32> to vector<16x256xbf16>
    %cst_54 = arith.constant dense<0.000000e+00> : vector<16x256xf32>
    %136 = tpu.matmul %134, %135, %cst_54 {dimension_numbers = #tpu.dot_dimension_numbers<[1], [0], [0], [1], [0, 0, 1, 1], [], []>} : vector<16x16xbf16>, vector<16x256xbf16>, vector<16x256xf32> -> vector<16x256xf32>
    %137 = arith.addf %127, %136 : vector<16x256xf32>
    %138 = vector.extract_strided_slice %126 {offsets = [0, 112], sizes = [16, 256], strides = [1, 1]} : vector<16x512xf32> to vector<16x256xf32>
    %139 = vector.extract_strided_slice %122 {offsets = [1, 0, 0], sizes = [1, 16, 16], strides = [1, 1, 1]} : vector<9x16x16xbf16> to vector<1x16x16xbf16>
    %140 = vector.shape_cast %139 : vector<1x16x16xbf16> to vector<16x16xbf16>
    %141 = arith.truncf %138 : vector<16x256xf32> to vector<16x256xbf16>
    %cst_55 = arith.constant dense<0.000000e+00> : vector<16x256xf32>
    %142 = tpu.matmul %140, %141, %cst_55 {dimension_numbers = #tpu.dot_dimension_numbers<[1], [0], [0], [1], [0, 0, 1, 1], [], []>} : vector<16x16xbf16>, vector<16x256xbf16>, vector<16x256xf32> -> vector<16x256xf32>
    %143 = arith.addf %137, %142 : vector<16x256xf32>
    %144 = vector.extract_strided_slice %126 {offsets = [0, 113], sizes = [16, 256], strides = [1, 1]} : vector<16x512xf32> to vector<16x256xf32>
    %cst_56 = arith.constant 0.000000e+00 : f32
    %145 = vector.shape_cast %22 : vector<1x256xi1> to vector<1x256xi1>
    %146 = vector.broadcast %145 : vector<1x256xi1> to vector<16x256xi1>
    %147 = vector.broadcast %cst_56 : f32 to vector<16x256xf32>
    %148 = arith.select %146, %144, %147 : vector<16x256xi1>, vector<16x256xf32>
    %149 = vector.extract_strided_slice %122 {offsets = [2, 0, 0], sizes = [1, 16, 16], strides = [1, 1, 1]} : vector<9x16x16xbf16> to vector<1x16x16xbf16>
    %150 = vector.shape_cast %149 : vector<1x16x16xbf16> to vector<16x16xbf16>
    %151 = arith.truncf %148 : vector<16x256xf32> to vector<16x256xbf16>
    %cst_57 = arith.constant dense<0.000000e+00> : vector<16x256xf32>
    %152 = tpu.matmul %150, %151, %cst_57 {dimension_numbers = #tpu.dot_dimension_numbers<[1], [0], [0], [1], [0, 0, 1, 1], [], []>} : vector<16x16xbf16>, vector<16x256xbf16>, vector<16x256xf32> -> vector<16x256xf32>
    %153 = arith.addf %143, %152 : vector<16x256xf32>
    %154 = vector.extract_strided_slice %126 {offsets = [0, 127], sizes = [16, 256], strides = [1, 1]} : vector<16x512xf32> to vector<16x256xf32>
    %cst_58 = arith.constant 0.000000e+00 : f32
    %155 = vector.shape_cast %20 : vector<1x256xi1> to vector<1x256xi1>
    %156 = vector.broadcast %155 : vector<1x256xi1> to vector<16x256xi1>
    %157 = vector.broadcast %cst_58 : f32 to vector<16x256xf32>
    %158 = arith.select %156, %154, %157 : vector<16x256xi1>, vector<16x256xf32>
    %159 = vector.extract_strided_slice %122 {offsets = [3, 0, 0], sizes = [1, 16, 16], strides = [1, 1, 1]} : vector<9x16x16xbf16> to vector<1x16x16xbf16>
    %160 = vector.shape_cast %159 : vector<1x16x16xbf16> to vector<16x16xbf16>
    %161 = arith.truncf %158 : vector<16x256xf32> to vector<16x256xbf16>
    %cst_59 = arith.constant dense<0.000000e+00> : vector<16x256xf32>
    %162 = tpu.matmul %160, %161, %cst_59 {dimension_numbers = #tpu.dot_dimension_numbers<[1], [0], [0], [1], [0, 0, 1, 1], [], []>} : vector<16x16xbf16>, vector<16x256xbf16>, vector<16x256xf32> -> vector<16x256xf32>
    %163 = arith.addf %153, %162 : vector<16x256xf32>
    %164 = vector.extract_strided_slice %126 {offsets = [0, 128], sizes = [16, 256], strides = [1, 1]} : vector<16x512xf32> to vector<16x256xf32>
    %165 = vector.extract_strided_slice %122 {offsets = [4, 0, 0], sizes = [1, 16, 16], strides = [1, 1, 1]} : vector<9x16x16xbf16> to vector<1x16x16xbf16>
    %166 = vector.shape_cast %165 : vector<1x16x16xbf16> to vector<16x16xbf16>
    %167 = arith.truncf %164 : vector<16x256xf32> to vector<16x256xbf16>
    %cst_60 = arith.constant dense<0.000000e+00> : vector<16x256xf32>
    %168 = tpu.matmul %166, %167, %cst_60 {dimension_numbers = #tpu.dot_dimension_numbers<[1], [0], [0], [1], [0, 0, 1, 1], [], []>} : vector<16x16xbf16>, vector<16x256xbf16>, vector<16x256xf32> -> vector<16x256xf32>
    %169 = arith.addf %163, %168 : vector<16x256xf32>
    %170 = vector.extract_strided_slice %126 {offsets = [0, 129], sizes = [16, 256], strides = [1, 1]} : vector<16x512xf32> to vector<16x256xf32>
    %cst_61 = arith.constant 0.000000e+00 : f32
    %171 = vector.shape_cast %22 : vector<1x256xi1> to vector<1x256xi1>
    %172 = vector.broadcast %171 : vector<1x256xi1> to vector<16x256xi1>
    %173 = vector.broadcast %cst_61 : f32 to vector<16x256xf32>
    %174 = arith.select %172, %170, %173 : vector<16x256xi1>, vector<16x256xf32>
    %175 = vector.extract_strided_slice %122 {offsets = [5, 0, 0], sizes = [1, 16, 16], strides = [1, 1, 1]} : vector<9x16x16xbf16> to vector<1x16x16xbf16>
    %176 = vector.shape_cast %175 : vector<1x16x16xbf16> to vector<16x16xbf16>
    %177 = arith.truncf %174 : vector<16x256xf32> to vector<16x256xbf16>
    %cst_62 = arith.constant dense<0.000000e+00> : vector<16x256xf32>
    %178 = tpu.matmul %176, %177, %cst_62 {dimension_numbers = #tpu.dot_dimension_numbers<[1], [0], [0], [1], [0, 0, 1, 1], [], []>} : vector<16x16xbf16>, vector<16x256xbf16>, vector<16x256xf32> -> vector<16x256xf32>
    %179 = arith.addf %169, %178 : vector<16x256xf32>
    %180 = vector.extract_strided_slice %126 {offsets = [0, 143], sizes = [16, 256], strides = [1, 1]} : vector<16x512xf32> to vector<16x256xf32>
    %cst_63 = arith.constant 0.000000e+00 : f32
    %181 = vector.shape_cast %20 : vector<1x256xi1> to vector<1x256xi1>
    %182 = vector.broadcast %181 : vector<1x256xi1> to vector<16x256xi1>
    %183 = vector.broadcast %cst_63 : f32 to vector<16x256xf32>
    %184 = arith.select %182, %180, %183 : vector<16x256xi1>, vector<16x256xf32>
    %185 = vector.extract_strided_slice %122 {offsets = [6, 0, 0], sizes = [1, 16, 16], strides = [1, 1, 1]} : vector<9x16x16xbf16> to vector<1x16x16xbf16>
    %186 = vector.shape_cast %185 : vector<1x16x16xbf16> to vector<16x16xbf16>
    %187 = arith.truncf %184 : vector<16x256xf32> to vector<16x256xbf16>
    %cst_64 = arith.constant dense<0.000000e+00> : vector<16x256xf32>
    %188 = tpu.matmul %186, %187, %cst_64 {dimension_numbers = #tpu.dot_dimension_numbers<[1], [0], [0], [1], [0, 0, 1, 1], [], []>} : vector<16x16xbf16>, vector<16x256xbf16>, vector<16x256xf32> -> vector<16x256xf32>
    %189 = arith.addf %179, %188 : vector<16x256xf32>
    %190 = vector.extract_strided_slice %126 {offsets = [0, 144], sizes = [16, 256], strides = [1, 1]} : vector<16x512xf32> to vector<16x256xf32>
    %191 = vector.extract_strided_slice %122 {offsets = [7, 0, 0], sizes = [1, 16, 16], strides = [1, 1, 1]} : vector<9x16x16xbf16> to vector<1x16x16xbf16>
    %192 = vector.shape_cast %191 : vector<1x16x16xbf16> to vector<16x16xbf16>
    %193 = arith.truncf %190 : vector<16x256xf32> to vector<16x256xbf16>
    %cst_65 = arith.constant dense<0.000000e+00> : vector<16x256xf32>
    %194 = tpu.matmul %192, %193, %cst_65 {dimension_numbers = #tpu.dot_dimension_numbers<[1], [0], [0], [1], [0, 0, 1, 1], [], []>} : vector<16x16xbf16>, vector<16x256xbf16>, vector<16x256xf32> -> vector<16x256xf32>
    %195 = arith.addf %189, %194 : vector<16x256xf32>
    %196 = vector.extract_strided_slice %126 {offsets = [0, 145], sizes = [16, 256], strides = [1, 1]} : vector<16x512xf32> to vector<16x256xf32>
    %cst_66 = arith.constant 0.000000e+00 : f32
    %197 = vector.shape_cast %22 : vector<1x256xi1> to vector<1x256xi1>
    %198 = vector.broadcast %197 : vector<1x256xi1> to vector<16x256xi1>
    %199 = vector.broadcast %cst_66 : f32 to vector<16x256xf32>
    %200 = arith.select %198, %196, %199 : vector<16x256xi1>, vector<16x256xf32>
    %201 = vector.extract_strided_slice %122 {offsets = [8, 0, 0], sizes = [1, 16, 16], strides = [1, 1, 1]} : vector<9x16x16xbf16> to vector<1x16x16xbf16>
    %202 = vector.shape_cast %201 : vector<1x16x16xbf16> to vector<16x16xbf16>
    %203 = arith.truncf %200 : vector<16x256xf32> to vector<16x256xbf16>
    %cst_67 = arith.constant dense<0.000000e+00> : vector<16x256xf32>
    %204 = tpu.matmul %202, %203, %cst_67 {dimension_numbers = #tpu.dot_dimension_numbers<[1], [0], [0], [1], [0, 0, 1, 1], [], []>} : vector<16x16xbf16>, vector<16x256xbf16>, vector<16x256xf32> -> vector<16x256xf32>
    %205 = arith.addf %195, %204 : vector<16x256xf32>
    %206 = vector.broadcast %124 : vector<16x1xf32> to vector<16x256xf32>
    %207 = arith.addf %205, %206 : vector<16x256xf32>
    %cst_68 = arith.constant 0.000000e+00 : f32
    %208 = vector.broadcast %cst_68 : f32 to vector<16x256xf32>
    %209 = arith.maximumf %207, %208 : vector<16x256xf32>
    %210 = arith.addf %31, %209 : vector<16x256xf32>
    %c1 = arith.constant 1 : index
    %c0_69 = arith.constant 0 : index
    %c0_70 = arith.constant 0 : index
    %c0_71 = arith.constant 0 : index
    %211 = vector.load %arg4[%c1, %c0_69, %c0_70, %c0_71] : memref<2x9x16x16xbf16, #tpu.memory_space<vmem>>, vector<1x9x16x16xbf16>
    %212 = vector.shape_cast %211 : vector<1x9x16x16xbf16> to vector<9x16x16xbf16>
    %c1_72 = arith.constant 1 : index
    %c0_73 = arith.constant 0 : index
    %c0_74 = arith.constant 0 : index
    %213 = vector.load %arg5[%c1_72, %c0_73, %c0_74] : memref<2x16x1xf32, #tpu.memory_space<vmem>>, vector<1x16x1xf32>
    %214 = vector.shape_cast %213 : vector<1x16x1xf32> to vector<16x1xf32>
    %c0_75 = arith.constant 0 : index
    %c128_76 = arith.constant 128 : index
    %215 = vector.load %arg16[%c0_75, %c128_76] : memref<16x512xf32, #tpu.memory_space<vmem>>, vector<16x256xf32>
    tpu.vector_store %arg16[%c0_75, %c128_76], %210 {strides = array<i32>} : memref<16x512xf32, #tpu.memory_space<vmem>>, vector<16x256xf32>,
    %c0_77 = arith.constant 0 : index
    %c0_78 = arith.constant 0 : index
    %216 = vector.load %arg16[%c0_77, %c0_78] : memref<16x512xf32, #tpu.memory_space<vmem>>, vector<16x512xf32>
    %cst_79 = arith.constant 0.000000e+00 : f32
    %217 = vector.broadcast %cst_79 : f32 to vector<16x256xf32>
    %218 = vector.extract_strided_slice %216 {offsets = [0, 111], sizes = [16, 256], strides = [1, 1]} : vector<16x512xf32> to vector<16x256xf32>
    %cst_80 = arith.constant 0.000000e+00 : f32
    %219 = vector.shape_cast %20 : vector<1x256xi1> to vector<1x256xi1>
    %220 = vector.broadcast %219 : vector<1x256xi1> to vector<16x256xi1>
    %221 = vector.broadcast %cst_80 : f32 to vector<16x256xf32>
    %222 = arith.select %220, %218, %221 : vector<16x256xi1>, vector<16x256xf32>
    %223 = vector.extract_strided_slice %212 {offsets = [0, 0, 0], sizes = [1, 16, 16], strides = [1, 1, 1]} : vector<9x16x16xbf16> to vector<1x16x16xbf16>
    %224 = vector.shape_cast %223 : vector<1x16x16xbf16> to vector<16x16xbf16>
    %225 = arith.truncf %222 : vector<16x256xf32> to vector<16x256xbf16>
    %cst_81 = arith.constant dense<0.000000e+00> : vector<16x256xf32>
    %226 = tpu.matmul %224, %225, %cst_81 {dimension_numbers = #tpu.dot_dimension_numbers<[1], [0], [0], [1], [0, 0, 1, 1], [], []>} : vector<16x16xbf16>, vector<16x256xbf16>, vector<16x256xf32> -> vector<16x256xf32>
    %227 = arith.addf %217, %226 : vector<16x256xf32>
    %228 = vector.extract_strided_slice %216 {offsets = [0, 112], sizes = [16, 256], strides = [1, 1]} : vector<16x512xf32> to vector<16x256xf32>
    %229 = vector.extract_strided_slice %212 {offsets = [1, 0, 0], sizes = [1, 16, 16], strides = [1, 1, 1]} : vector<9x16x16xbf16> to vector<1x16x16xbf16>
    %230 = vector.shape_cast %229 : vector<1x16x16xbf16> to vector<16x16xbf16>
    %231 = arith.truncf %228 : vector<16x256xf32> to vector<16x256xbf16>
    %cst_82 = arith.constant dense<0.000000e+00> : vector<16x256xf32>
    %232 = tpu.matmul %230, %231, %cst_82 {dimension_numbers = #tpu.dot_dimension_numbers<[1], [0], [0], [1], [0, 0, 1, 1], [], []>} : vector<16x16xbf16>, vector<16x256xbf16>, vector<16x256xf32> -> vector<16x256xf32>
    %233 = arith.addf %227, %232 : vector<16x256xf32>
    %234 = vector.extract_strided_slice %216 {offsets = [0, 113], sizes = [16, 256], strides = [1, 1]} : vector<16x512xf32> to vector<16x256xf32>
    %cst_83 = arith.constant 0.000000e+00 : f32
    %235 = vector.shape_cast %22 : vector<1x256xi1> to vector<1x256xi1>
    %236 = vector.broadcast %235 : vector<1x256xi1> to vector<16x256xi1>
    %237 = vector.broadcast %cst_83 : f32 to vector<16x256xf32>
    %238 = arith.select %236, %234, %237 : vector<16x256xi1>, vector<16x256xf32>
    %239 = vector.extract_strided_slice %212 {offsets = [2, 0, 0], sizes = [1, 16, 16], strides = [1, 1, 1]} : vector<9x16x16xbf16> to vector<1x16x16xbf16>
    %240 = vector.shape_cast %239 : vector<1x16x16xbf16> to vector<16x16xbf16>
    %241 = arith.truncf %238 : vector<16x256xf32> to vector<16x256xbf16>
    %cst_84 = arith.constant dense<0.000000e+00> : vector<16x256xf32>
    %242 = tpu.matmul %240, %241, %cst_84 {dimension_numbers = #tpu.dot_dimension_numbers<[1], [0], [0], [1], [0, 0, 1, 1], [], []>} : vector<16x16xbf16>, vector<16x256xbf16>, vector<16x256xf32> -> vector<16x256xf32>
    %243 = arith.addf %233, %242 : vector<16x256xf32>
    %244 = vector.extract_strided_slice %216 {offsets = [0, 127], sizes = [16, 256], strides = [1, 1]} : vector<16x512xf32> to vector<16x256xf32>
    %cst_85 = arith.constant 0.000000e+00 : f32
    %245 = vector.shape_cast %20 : vector<1x256xi1> to vector<1x256xi1>
    %246 = vector.broadcast %245 : vector<1x256xi1> to vector<16x256xi1>
    %247 = vector.broadcast %cst_85 : f32 to vector<16x256xf32>
    %248 = arith.select %246, %244, %247 : vector<16x256xi1>, vector<16x256xf32>
    %249 = vector.extract_strided_slice %212 {offsets = [3, 0, 0], sizes = [1, 16, 16], strides = [1, 1, 1]} : vector<9x16x16xbf16> to vector<1x16x16xbf16>
    %250 = vector.shape_cast %249 : vector<1x16x16xbf16> to vector<16x16xbf16>
    %251 = arith.truncf %248 : vector<16x256xf32> to vector<16x256xbf16>
    %cst_86 = arith.constant dense<0.000000e+00> : vector<16x256xf32>
    %252 = tpu.matmul %250, %251, %cst_86 {dimension_numbers = #tpu.dot_dimension_numbers<[1], [0], [0], [1], [0, 0, 1, 1], [], []>} : vector<16x16xbf16>, vector<16x256xbf16>, vector<16x256xf32> -> vector<16x256xf32>
    %253 = arith.addf %243, %252 : vector<16x256xf32>
    %254 = vector.extract_strided_slice %216 {offsets = [0, 128], sizes = [16, 256], strides = [1, 1]} : vector<16x512xf32> to vector<16x256xf32>
    %255 = vector.extract_strided_slice %212 {offsets = [4, 0, 0], sizes = [1, 16, 16], strides = [1, 1, 1]} : vector<9x16x16xbf16> to vector<1x16x16xbf16>
    %256 = vector.shape_cast %255 : vector<1x16x16xbf16> to vector<16x16xbf16>
    %257 = arith.truncf %254 : vector<16x256xf32> to vector<16x256xbf16>
    %cst_87 = arith.constant dense<0.000000e+00> : vector<16x256xf32>
    %258 = tpu.matmul %256, %257, %cst_87 {dimension_numbers = #tpu.dot_dimension_numbers<[1], [0], [0], [1], [0, 0, 1, 1], [], []>} : vector<16x16xbf16>, vector<16x256xbf16>, vector<16x256xf32> -> vector<16x256xf32>
    %259 = arith.addf %253, %258 : vector<16x256xf32>
    %260 = vector.extract_strided_slice %216 {offsets = [0, 129], sizes = [16, 256], strides = [1, 1]} : vector<16x512xf32> to vector<16x256xf32>
    %cst_88 = arith.constant 0.000000e+00 : f32
    %261 = vector.shape_cast %22 : vector<1x256xi1> to vector<1x256xi1>
    %262 = vector.broadcast %261 : vector<1x256xi1> to vector<16x256xi1>
    %263 = vector.broadcast %cst_88 : f32 to vector<16x256xf32>
    %264 = arith.select %262, %260, %263 : vector<16x256xi1>, vector<16x256xf32>
    %265 = vector.extract_strided_slice %212 {offsets = [5, 0, 0], sizes = [1, 16, 16], strides = [1, 1, 1]} : vector<9x16x16xbf16> to vector<1x16x16xbf16>
    %266 = vector.shape_cast %265 : vector<1x16x16xbf16> to vector<16x16xbf16>
    %267 = arith.truncf %264 : vector<16x256xf32> to vector<16x256xbf16>
    %cst_89 = arith.constant dense<0.000000e+00> : vector<16x256xf32>
    %268 = tpu.matmul %266, %267, %cst_89 {dimension_numbers = #tpu.dot_dimension_numbers<[1], [0], [0], [1], [0, 0, 1, 1], [], []>} : vector<16x16xbf16>, vector<16x256xbf16>, vector<16x256xf32> -> vector<16x256xf32>
    %269 = arith.addf %259, %268 : vector<16x256xf32>
    %270 = vector.extract_strided_slice %216 {offsets = [0, 143], sizes = [16, 256], strides = [1, 1]} : vector<16x512xf32> to vector<16x256xf32>
    %cst_90 = arith.constant 0.000000e+00 : f32
    %271 = vector.shape_cast %20 : vector<1x256xi1> to vector<1x256xi1>
    %272 = vector.broadcast %271 : vector<1x256xi1> to vector<16x256xi1>
    %273 = vector.broadcast %cst_90 : f32 to vector<16x256xf32>
    %274 = arith.select %272, %270, %273 : vector<16x256xi1>, vector<16x256xf32>
    %275 = vector.extract_strided_slice %212 {offsets = [6, 0, 0], sizes = [1, 16, 16], strides = [1, 1, 1]} : vector<9x16x16xbf16> to vector<1x16x16xbf16>
    %276 = vector.shape_cast %275 : vector<1x16x16xbf16> to vector<16x16xbf16>
    %277 = arith.truncf %274 : vector<16x256xf32> to vector<16x256xbf16>
    %cst_91 = arith.constant dense<0.000000e+00> : vector<16x256xf32>
    %278 = tpu.matmul %276, %277, %cst_91 {dimension_numbers = #tpu.dot_dimension_numbers<[1], [0], [0], [1], [0, 0, 1, 1], [], []>} : vector<16x16xbf16>, vector<16x256xbf16>, vector<16x256xf32> -> vector<16x256xf32>
    %279 = arith.addf %269, %278 : vector<16x256xf32>
    %280 = vector.extract_strided_slice %216 {offsets = [0, 144], sizes = [16, 256], strides = [1, 1]} : vector<16x512xf32> to vector<16x256xf32>
    %281 = vector.extract_strided_slice %212 {offsets = [7, 0, 0], sizes = [1, 16, 16], strides = [1, 1, 1]} : vector<9x16x16xbf16> to vector<1x16x16xbf16>
    %282 = vector.shape_cast %281 : vector<1x16x16xbf16> to vector<16x16xbf16>
    %283 = arith.truncf %280 : vector<16x256xf32> to vector<16x256xbf16>
    %cst_92 = arith.constant dense<0.000000e+00> : vector<16x256xf32>
    %284 = tpu.matmul %282, %283, %cst_92 {dimension_numbers = #tpu.dot_dimension_numbers<[1], [0], [0], [1], [0, 0, 1, 1], [], []>} : vector<16x16xbf16>, vector<16x256xbf16>, vector<16x256xf32> -> vector<16x256xf32>
    %285 = arith.addf %279, %284 : vector<16x256xf32>
    %286 = vector.extract_strided_slice %216 {offsets = [0, 145], sizes = [16, 256], strides = [1, 1]} : vector<16x512xf32> to vector<16x256xf32>
    %cst_93 = arith.constant 0.000000e+00 : f32
    %287 = vector.shape_cast %22 : vector<1x256xi1> to vector<1x256xi1>
    %288 = vector.broadcast %287 : vector<1x256xi1> to vector<16x256xi1>
    %289 = vector.broadcast %cst_93 : f32 to vector<16x256xf32>
    %290 = arith.select %288, %286, %289 : vector<16x256xi1>, vector<16x256xf32>
    %291 = vector.extract_strided_slice %212 {offsets = [8, 0, 0], sizes = [1, 16, 16], strides = [1, 1, 1]} : vector<9x16x16xbf16> to vector<1x16x16xbf16>
    %292 = vector.shape_cast %291 : vector<1x16x16xbf16> to vector<16x16xbf16>
    %293 = arith.truncf %290 : vector<16x256xf32> to vector<16x256xbf16>
    %cst_94 = arith.constant dense<0.000000e+00> : vector<16x256xf32>
    %294 = tpu.matmul %292, %293, %cst_94 {dimension_numbers = #tpu.dot_dimension_numbers<[1], [0], [0], [1], [0, 0, 1, 1], [], []>} : vector<16x16xbf16>, vector<16x256xbf16>, vector<16x256xf32> -> vector<16x256xf32>
    %295 = arith.addf %285, %294 : vector<16x256xf32>
    %296 = vector.broadcast %214 : vector<16x1xf32> to vector<16x256xf32>
    %297 = arith.addf %295, %296 : vector<16x256xf32>
    %cst_95 = arith.constant 0.000000e+00 : f32
    %298 = vector.broadcast %cst_95 : f32 to vector<16x256xf32>
    %299 = arith.maximumf %297, %298 : vector<16x256xf32>
    %c1_96 = arith.constant 1 : index
    %c0_97 = arith.constant 0 : index
    %c0_98 = arith.constant 0 : index
    %c0_99 = arith.constant 0 : index
    %300 = vector.load %arg6[%c1_96, %c0_97, %c0_98, %c0_99] : memref<2x9x16x16xbf16, #tpu.memory_space<vmem>>, vector<1x9x16x16xbf16>
    %301 = vector.shape_cast %300 : vector<1x9x16x16xbf16> to vector<9x16x16xbf16>
    %c1_100 = arith.constant 1 : index
    %c0_101 = arith.constant 0 : index
    %c0_102 = arith.constant 0 : index
    %302 = vector.load %arg7[%c1_100, %c0_101, %c0_102] : memref<2x16x1xf32, #tpu.memory_space<vmem>>, vector<1x16x1xf32>
    %303 = vector.shape_cast %302 : vector<1x16x1xf32> to vector<16x1xf32>
    %c0_103 = arith.constant 0 : index
    %c128_104 = arith.constant 128 : index
    %304 = vector.load %arg16[%c0_103, %c128_104] : memref<16x512xf32, #tpu.memory_space<vmem>>, vector<16x256xf32>
    tpu.vector_store %arg16[%c0_103, %c128_104], %299 {strides = array<i32>} : memref<16x512xf32, #tpu.memory_space<vmem>>, vector<16x256xf32>,
    %c0_105 = arith.constant 0 : index
    %c0_106 = arith.constant 0 : index
    %305 = vector.load %arg16[%c0_105, %c0_106] : memref<16x512xf32, #tpu.memory_space<vmem>>, vector<16x512xf32>
    %cst_107 = arith.constant 0.000000e+00 : f32
    %306 = vector.broadcast %cst_107 : f32 to vector<16x256xf32>
    %307 = vector.extract_strided_slice %305 {offsets = [0, 111], sizes = [16, 256], strides = [1, 1]} : vector<16x512xf32> to vector<16x256xf32>
    %cst_108 = arith.constant 0.000000e+00 : f32
    %308 = vector.shape_cast %20 : vector<1x256xi1> to vector<1x256xi1>
    %309 = vector.broadcast %308 : vector<1x256xi1> to vector<16x256xi1>
    %310 = vector.broadcast %cst_108 : f32 to vector<16x256xf32>
    %311 = arith.select %309, %307, %310 : vector<16x256xi1>, vector<16x256xf32>
    %312 = vector.extract_strided_slice %301 {offsets = [0, 0, 0], sizes = [1, 16, 16], strides = [1, 1, 1]} : vector<9x16x16xbf16> to vector<1x16x16xbf16>
    %313 = vector.shape_cast %312 : vector<1x16x16xbf16> to vector<16x16xbf16>
    %314 = arith.truncf %311 : vector<16x256xf32> to vector<16x256xbf16>
    %cst_109 = arith.constant dense<0.000000e+00> : vector<16x256xf32>
    %315 = tpu.matmul %313, %314, %cst_109 {dimension_numbers = #tpu.dot_dimension_numbers<[1], [0], [0], [1], [0, 0, 1, 1], [], []>} : vector<16x16xbf16>, vector<16x256xbf16>, vector<16x256xf32> -> vector<16x256xf32>
    %316 = arith.addf %306, %315 : vector<16x256xf32>
    %317 = vector.extract_strided_slice %305 {offsets = [0, 112], sizes = [16, 256], strides = [1, 1]} : vector<16x512xf32> to vector<16x256xf32>
    %318 = vector.extract_strided_slice %301 {offsets = [1, 0, 0], sizes = [1, 16, 16], strides = [1, 1, 1]} : vector<9x16x16xbf16> to vector<1x16x16xbf16>
    %319 = vector.shape_cast %318 : vector<1x16x16xbf16> to vector<16x16xbf16>
    %320 = arith.truncf %317 : vector<16x256xf32> to vector<16x256xbf16>
    %cst_110 = arith.constant dense<0.000000e+00> : vector<16x256xf32>
    %321 = tpu.matmul %319, %320, %cst_110 {dimension_numbers = #tpu.dot_dimension_numbers<[1], [0], [0], [1], [0, 0, 1, 1], [], []>} : vector<16x16xbf16>, vector<16x256xbf16>, vector<16x256xf32> -> vector<16x256xf32>
    %322 = arith.addf %316, %321 : vector<16x256xf32>
    %323 = vector.extract_strided_slice %305 {offsets = [0, 113], sizes = [16, 256], strides = [1, 1]} : vector<16x512xf32> to vector<16x256xf32>
    %cst_111 = arith.constant 0.000000e+00 : f32
    %324 = vector.shape_cast %22 : vector<1x256xi1> to vector<1x256xi1>
    %325 = vector.broadcast %324 : vector<1x256xi1> to vector<16x256xi1>
    %326 = vector.broadcast %cst_111 : f32 to vector<16x256xf32>
    %327 = arith.select %325, %323, %326 : vector<16x256xi1>, vector<16x256xf32>
    %328 = vector.extract_strided_slice %301 {offsets = [2, 0, 0], sizes = [1, 16, 16], strides = [1, 1, 1]} : vector<9x16x16xbf16> to vector<1x16x16xbf16>
    %329 = vector.shape_cast %328 : vector<1x16x16xbf16> to vector<16x16xbf16>
    %330 = arith.truncf %327 : vector<16x256xf32> to vector<16x256xbf16>
    %cst_112 = arith.constant dense<0.000000e+00> : vector<16x256xf32>
    %331 = tpu.matmul %329, %330, %cst_112 {dimension_numbers = #tpu.dot_dimension_numbers<[1], [0], [0], [1], [0, 0, 1, 1], [], []>} : vector<16x16xbf16>, vector<16x256xbf16>, vector<16x256xf32> -> vector<16x256xf32>
    %332 = arith.addf %322, %331 : vector<16x256xf32>
    %333 = vector.extract_strided_slice %305 {offsets = [0, 127], sizes = [16, 256], strides = [1, 1]} : vector<16x512xf32> to vector<16x256xf32>
    %cst_113 = arith.constant 0.000000e+00 : f32
    %334 = vector.shape_cast %20 : vector<1x256xi1> to vector<1x256xi1>
    %335 = vector.broadcast %334 : vector<1x256xi1> to vector<16x256xi1>
    %336 = vector.broadcast %cst_113 : f32 to vector<16x256xf32>
    %337 = arith.select %335, %333, %336 : vector<16x256xi1>, vector<16x256xf32>
    %338 = vector.extract_strided_slice %301 {offsets = [3, 0, 0], sizes = [1, 16, 16], strides = [1, 1, 1]} : vector<9x16x16xbf16> to vector<1x16x16xbf16>
    %339 = vector.shape_cast %338 : vector<1x16x16xbf16> to vector<16x16xbf16>
    %340 = arith.truncf %337 : vector<16x256xf32> to vector<16x256xbf16>
    %cst_114 = arith.constant dense<0.000000e+00> : vector<16x256xf32>
    %341 = tpu.matmul %339, %340, %cst_114 {dimension_numbers = #tpu.dot_dimension_numbers<[1], [0], [0], [1], [0, 0, 1, 1], [], []>} : vector<16x16xbf16>, vector<16x256xbf16>, vector<16x256xf32> -> vector<16x256xf32>
    %342 = arith.addf %332, %341 : vector<16x256xf32>
    %343 = vector.extract_strided_slice %305 {offsets = [0, 128], sizes = [16, 256], strides = [1, 1]} : vector<16x512xf32> to vector<16x256xf32>
    %344 = vector.extract_strided_slice %301 {offsets = [4, 0, 0], sizes = [1, 16, 16], strides = [1, 1, 1]} : vector<9x16x16xbf16> to vector<1x16x16xbf16>
    %345 = vector.shape_cast %344 : vector<1x16x16xbf16> to vector<16x16xbf16>
    %346 = arith.truncf %343 : vector<16x256xf32> to vector<16x256xbf16>
    %cst_115 = arith.constant dense<0.000000e+00> : vector<16x256xf32>
    %347 = tpu.matmul %345, %346, %cst_115 {dimension_numbers = #tpu.dot_dimension_numbers<[1], [0], [0], [1], [0, 0, 1, 1], [], []>} : vector<16x16xbf16>, vector<16x256xbf16>, vector<16x256xf32> -> vector<16x256xf32>
    %348 = arith.addf %342, %347 : vector<16x256xf32>
    %349 = vector.extract_strided_slice %305 {offsets = [0, 129], sizes = [16, 256], strides = [1, 1]} : vector<16x512xf32> to vector<16x256xf32>
    %cst_116 = arith.constant 0.000000e+00 : f32
    %350 = vector.shape_cast %22 : vector<1x256xi1> to vector<1x256xi1>
    %351 = vector.broadcast %350 : vector<1x256xi1> to vector<16x256xi1>
    %352 = vector.broadcast %cst_116 : f32 to vector<16x256xf32>
    %353 = arith.select %351, %349, %352 : vector<16x256xi1>, vector<16x256xf32>
    %354 = vector.extract_strided_slice %301 {offsets = [5, 0, 0], sizes = [1, 16, 16], strides = [1, 1, 1]} : vector<9x16x16xbf16> to vector<1x16x16xbf16>
    %355 = vector.shape_cast %354 : vector<1x16x16xbf16> to vector<16x16xbf16>
    %356 = arith.truncf %353 : vector<16x256xf32> to vector<16x256xbf16>
    %cst_117 = arith.constant dense<0.000000e+00> : vector<16x256xf32>
    %357 = tpu.matmul %355, %356, %cst_117 {dimension_numbers = #tpu.dot_dimension_numbers<[1], [0], [0], [1], [0, 0, 1, 1], [], []>} : vector<16x16xbf16>, vector<16x256xbf16>, vector<16x256xf32> -> vector<16x256xf32>
    %358 = arith.addf %348, %357 : vector<16x256xf32>
    %359 = vector.extract_strided_slice %305 {offsets = [0, 143], sizes = [16, 256], strides = [1, 1]} : vector<16x512xf32> to vector<16x256xf32>
    %cst_118 = arith.constant 0.000000e+00 : f32
    %360 = vector.shape_cast %20 : vector<1x256xi1> to vector<1x256xi1>
    %361 = vector.broadcast %360 : vector<1x256xi1> to vector<16x256xi1>
    %362 = vector.broadcast %cst_118 : f32 to vector<16x256xf32>
    %363 = arith.select %361, %359, %362 : vector<16x256xi1>, vector<16x256xf32>
    %364 = vector.extract_strided_slice %301 {offsets = [6, 0, 0], sizes = [1, 16, 16], strides = [1, 1, 1]} : vector<9x16x16xbf16> to vector<1x16x16xbf16>
    %365 = vector.shape_cast %364 : vector<1x16x16xbf16> to vector<16x16xbf16>
    %366 = arith.truncf %363 : vector<16x256xf32> to vector<16x256xbf16>
    %cst_119 = arith.constant dense<0.000000e+00> : vector<16x256xf32>
    %367 = tpu.matmul %365, %366, %cst_119 {dimension_numbers = #tpu.dot_dimension_numbers<[1], [0], [0], [1], [0, 0, 1, 1], [], []>} : vector<16x16xbf16>, vector<16x256xbf16>, vector<16x256xf32> -> vector<16x256xf32>
    %368 = arith.addf %358, %367 : vector<16x256xf32>
    %369 = vector.extract_strided_slice %305 {offsets = [0, 144], sizes = [16, 256], strides = [1, 1]} : vector<16x512xf32> to vector<16x256xf32>
    %370 = vector.extract_strided_slice %301 {offsets = [7, 0, 0], sizes = [1, 16, 16], strides = [1, 1, 1]} : vector<9x16x16xbf16> to vector<1x16x16xbf16>
    %371 = vector.shape_cast %370 : vector<1x16x16xbf16> to vector<16x16xbf16>
    %372 = arith.truncf %369 : vector<16x256xf32> to vector<16x256xbf16>
    %cst_120 = arith.constant dense<0.000000e+00> : vector<16x256xf32>
    %373 = tpu.matmul %371, %372, %cst_120 {dimension_numbers = #tpu.dot_dimension_numbers<[1], [0], [0], [1], [0, 0, 1, 1], [], []>} : vector<16x16xbf16>, vector<16x256xbf16>, vector<16x256xf32> -> vector<16x256xf32>
    %374 = arith.addf %368, %373 : vector<16x256xf32>
    %375 = vector.extract_strided_slice %305 {offsets = [0, 145], sizes = [16, 256], strides = [1, 1]} : vector<16x512xf32> to vector<16x256xf32>
    %cst_121 = arith.constant 0.000000e+00 : f32
    %376 = vector.shape_cast %22 : vector<1x256xi1> to vector<1x256xi1>
    %377 = vector.broadcast %376 : vector<1x256xi1> to vector<16x256xi1>
    %378 = vector.broadcast %cst_121 : f32 to vector<16x256xf32>
    %379 = arith.select %377, %375, %378 : vector<16x256xi1>, vector<16x256xf32>
    %380 = vector.extract_strided_slice %301 {offsets = [8, 0, 0], sizes = [1, 16, 16], strides = [1, 1, 1]} : vector<9x16x16xbf16> to vector<1x16x16xbf16>
    %381 = vector.shape_cast %380 : vector<1x16x16xbf16> to vector<16x16xbf16>
    %382 = arith.truncf %379 : vector<16x256xf32> to vector<16x256xbf16>
    %cst_122 = arith.constant dense<0.000000e+00> : vector<16x256xf32>
    %383 = tpu.matmul %381, %382, %cst_122 {dimension_numbers = #tpu.dot_dimension_numbers<[1], [0], [0], [1], [0, 0, 1, 1], [], []>} : vector<16x16xbf16>, vector<16x256xbf16>, vector<16x256xf32> -> vector<16x256xf32>
    %384 = arith.addf %374, %383 : vector<16x256xf32>
    %385 = vector.broadcast %303 : vector<16x1xf32> to vector<16x256xf32>
    %386 = arith.addf %384, %385 : vector<16x256xf32>
    %cst_123 = arith.constant 0.000000e+00 : f32
    %387 = vector.broadcast %cst_123 : f32 to vector<16x256xf32>
    %388 = arith.maximumf %386, %387 : vector<16x256xf32>
    %389 = arith.addf %210, %388 : vector<16x256xf32>
    %c0_124 = arith.constant 0 : index
    %c0_125 = arith.constant 0 : index
    %390 = vector.load %arg8[%c0_124, %c0_125] : memref<16x16xbf16, #tpu.memory_space<vmem>>, vector<16x16xbf16>
    %391 = arith.truncf %389 : vector<16x256xf32> to vector<16x256xbf16>
    %cst_126 = arith.constant dense<0.000000e+00> : vector<16x256xf32>
    %392 = tpu.matmul %390, %391, %cst_126 {dimension_numbers = #tpu.dot_dimension_numbers<[1], [0], [0], [1], [0, 0, 1, 1], [], []>} : vector<16x16xbf16>, vector<16x256xbf16>, vector<16x256xf32> -> vector<16x256xf32>
    %c0_127 = arith.constant 0 : index
    %c0_128 = arith.constant 0 : index
    %393 = vector.load %arg9[%c0_127, %c0_128] : memref<16x1xf32, #tpu.memory_space<vmem>>, vector<16x1xf32>
    %394 = vector.broadcast %393 : vector<16x1xf32> to vector<16x256xf32>
    %395 = arith.addf %392, %394 : vector<16x256xf32>
    %cst_129 = arith.constant 0.000000e+00 : f32
    %396 = vector.broadcast %cst_129 : f32 to vector<16x256xf32>
    %397 = arith.maximumf %395, %396 : vector<16x256xf32>
    %c0_130 = arith.constant 0 : index
    %c0_131 = arith.constant 0 : index
    %398 = vector.load %arg10[%c0_130, %c0_131] : memref<16x8xbf16, #tpu.memory_space<vmem>>, vector<16x8xbf16>
    %cst_132 = arith.constant dense<0.000000e+00> : vector<16x256xf32>
    %399 = tpu.matmul %398, %1, %cst_132 {dimension_numbers = #tpu.dot_dimension_numbers<[1], [0], [0], [1], [0, 0, 1, 1], [], []>} : vector<16x8xbf16>, vector<8x256xbf16>, vector<16x256xf32> -> vector<16x256xf32>
    %c0_133 = arith.constant 0 : index
    %c0_134 = arith.constant 0 : index
    %400 = vector.load %arg11[%c0_133, %c0_134] : memref<16x1xf32, #tpu.memory_space<vmem>>, vector<16x1xf32>
    %401 = vector.broadcast %400 : vector<16x1xf32> to vector<16x256xf32>
    %402 = arith.addf %399, %401 : vector<16x256xf32>
    %cst_135 = arith.constant 0.000000e+00 : f32
    %403 = vector.broadcast %cst_135 : f32 to vector<16x256xf32>
    %404 = arith.maximumf %402, %403 : vector<16x256xf32>
    %c0_136 = arith.constant 0 : index
    %c0_137 = arith.constant 0 : index
    %405 = vector.load %arg12[%c0_136, %c0_137] : memref<32x16xbf16, #tpu.memory_space<vmem>>, vector<32x16xbf16>
    %406 = arith.truncf %397 : vector<16x256xf32> to vector<16x256xbf16>
    %cst_138 = arith.constant dense<0.000000e+00> : vector<32x256xf32>
    %407 = tpu.matmul %405, %406, %cst_138 {dimension_numbers = #tpu.dot_dimension_numbers<[1], [0], [0], [1], [0, 0, 1, 1], [], []>} : vector<32x16xbf16>, vector<16x256xbf16>, vector<32x256xf32> -> vector<32x256xf32>
    %c0_139 = arith.constant 0 : index
    %c0_140 = arith.constant 0 : index
    %408 = vector.load %arg13[%c0_139, %c0_140] : memref<32x16xbf16, #tpu.memory_space<vmem>>, vector<32x16xbf16>
    %409 = arith.truncf %404 : vector<16x256xf32> to vector<16x256xbf16>
    %cst_141 = arith.constant dense<0.000000e+00> : vector<32x256xf32>
    %410 = tpu.matmul %408, %409, %cst_141 {dimension_numbers = #tpu.dot_dimension_numbers<[1], [0], [0], [1], [0, 0, 1, 1], [], []>} : vector<32x16xbf16>, vector<16x256xbf16>, vector<32x256xf32> -> vector<32x256xf32>
    %411 = arith.addf %407, %410 : vector<32x256xf32>
    %c0_142 = arith.constant 0 : index
    %c0_143 = arith.constant 0 : index
    %412 = vector.load %arg14[%c0_142, %c0_143] : memref<32x1xf32, #tpu.memory_space<vmem>>, vector<32x1xf32>
    %413 = vector.broadcast %412 : vector<32x1xf32> to vector<32x256xf32>
    %414 = arith.addf %411, %413 : vector<32x256xf32>
    %cst_144 = arith.constant 0.000000e+00 : f32
    %415 = vector.broadcast %cst_144 : f32 to vector<32x256xf32>
    %416 = arith.maximumf %414, %415 : vector<32x256xf32>
    %c0_145 = arith.constant 0 : index
    %c0_146 = arith.constant 0 : index
    %c0_147 = arith.constant 0 : index
    %417 = vector.load %arg15[%c0_145, %c0_146, %c0_147] : memref<1x32x256xf32, #tpu.memory_space<vmem>>, vector<1x32x256xf32>
    %418 = vector.shape_cast %417 : vector<1x32x256xf32> to vector<32x256xf32>
    %419 = vector.shape_cast %416 : vector<32x256xf32> to vector<1x32x256xf32>
    tpu.vector_store %arg15[%c0_145, %c0_146, %c0_147], %419 {strides = array<i32>} : memref<1x32x256xf32, #tpu.memory_space<vmem>>, vector<1x32x256xf32>,
    return
  }
  func.func @transform_0(%arg0: i32) -> (i32, i32, i32) {
    %c0_i32 = arith.constant 0 : i32
    %c0_i32_0 = arith.constant 0 : i32
    %c0_i32_1 = arith.constant 0 : i32
    return %arg0, %c0_i32, %c0_i32_0 : i32, i32, i32
  }
  func.func @transform_1(%arg0: i32) -> (i32, i32) {
    %c0_i32 = arith.constant 0 : i32
    %c0_i32_0 = arith.constant 0 : i32
    %c0_i32_1 = arith.constant 0 : i32
    return %c0_i32, %c0_i32_0 : i32, i32
  }
  func.func @transform_2(%arg0: i32) -> (i32, i32) {
    %c0_i32 = arith.constant 0 : i32
    %c0_i32_0 = arith.constant 0 : i32
    %c0_i32_1 = arith.constant 0 : i32
    return %c0_i32, %c0_i32_0 : i32, i32
  }
  func.func @transform_3(%arg0: i32) -> (i32, i32, i32, i32) {
    %c0_i32 = arith.constant 0 : i32
    %c0_i32_0 = arith.constant 0 : i32
    %c0_i32_1 = arith.constant 0 : i32
    %c0_i32_2 = arith.constant 0 : i32
    %c0_i32_3 = arith.constant 0 : i32
    return %c0_i32, %c0_i32_0, %c0_i32_1, %c0_i32_2 : i32, i32, i32, i32
  }
  func.func @transform_4(%arg0: i32) -> (i32, i32, i32) {
    %c0_i32 = arith.constant 0 : i32
    %c0_i32_0 = arith.constant 0 : i32
    %c0_i32_1 = arith.constant 0 : i32
    %c0_i32_2 = arith.constant 0 : i32
    return %c0_i32, %c0_i32_0, %c0_i32_1 : i32, i32, i32
  }
  func.func @transform_5(%arg0: i32) -> (i32, i32, i32, i32) {
    %c0_i32 = arith.constant 0 : i32
    %c0_i32_0 = arith.constant 0 : i32
    %c0_i32_1 = arith.constant 0 : i32
    %c0_i32_2 = arith.constant 0 : i32
    %c0_i32_3 = arith.constant 0 : i32
    return %c0_i32, %c0_i32_0, %c0_i32_1, %c0_i32_2 : i32, i32, i32, i32
  }
  func.func @transform_6(%arg0: i32) -> (i32, i32, i32) {
    %c0_i32 = arith.constant 0 : i32
    %c0_i32_0 = arith.constant 0 : i32
    %c0_i32_1 = arith.constant 0 : i32
    %c0_i32_2 = arith.constant 0 : i32
    return %c0_i32, %c0_i32_0, %c0_i32_1 : i32, i32, i32
  }
  func.func @transform_7(%arg0: i32) -> (i32, i32) {
    %c0_i32 = arith.constant 0 : i32
    %c0_i32_0 = arith.constant 0 : i32
    %c0_i32_1 = arith.constant 0 : i32
    return %c0_i32, %c0_i32_0 : i32, i32
  }
  func.func @transform_8(%arg0: i32) -> (i32, i32) {
    %c0_i32 = arith.constant 0 : i32
    %c0_i32_0 = arith.constant 0 : i32
    %c0_i32_1 = arith.constant 0 : i32
    return %c0_i32, %c0_i32_0 : i32, i32
  }
  func.func @transform_9(%arg0: i32) -> (i32, i32) {
    %c0_i32 = arith.constant 0 : i32
    %c0_i32_0 = arith.constant 0 : i32
    %c0_i32_1 = arith.constant 0 : i32
    return %c0_i32, %c0_i32_0 : i32, i32
  }
  func.func @transform_10(%arg0: i32) -> (i32, i32) {
    %c0_i32 = arith.constant 0 : i32
    %c0_i32_0 = arith.constant 0 : i32
    %c0_i32_1 = arith.constant 0 : i32
    return %c0_i32, %c0_i32_0 : i32, i32
  }
  func.func @transform_11(%arg0: i32) -> (i32, i32) {
    %c0_i32 = arith.constant 0 : i32
    %c0_i32_0 = arith.constant 0 : i32
    %c0_i32_1 = arith.constant 0 : i32
    return %c0_i32, %c0_i32_0 : i32, i32
  }
  func.func @transform_12(%arg0: i32) -> (i32, i32) {
    %c0_i32 = arith.constant 0 : i32
    %c0_i32_0 = arith.constant 0 : i32
    %c0_i32_1 = arith.constant 0 : i32
    return %c0_i32, %c0_i32_0 : i32, i32
  }
  func.func @transform_13(%arg0: i32) -> (i32, i32) {
    %c0_i32 = arith.constant 0 : i32
    %c0_i32_0 = arith.constant 0 : i32
    %c0_i32_1 = arith.constant 0 : i32
    return %c0_i32, %c0_i32_0 : i32, i32
  }
  func.func @transform_14(%arg0: i32) -> (i32, i32, i32) {
    %c0_i32 = arith.constant 0 : i32
    %c0_i32_0 = arith.constant 0 : i32
    %c0_i32_1 = arith.constant 0 : i32
    return %arg0, %c0_i32, %c0_i32_0 : i32, i32, i32
  }
}

</mosaic_0001>

<bundles_post_ra>
// kernel: tpu_custom_call.1
= control target key start
LH: loop header
LB: loop body
LE: loop exit
PB: predicated region body
PF: predicated region fallthrough
CT: control target
= control target key end

     0   :  { %s5712_s0 = inlined_call_operand.vmem [shape: bf16[2,8,256], index: 0, kind: input, shape index: {}]   ;;  %s5713_s1 = inlined_call_operand.vmem [shape: bf16[16,8], index: 1, kind: input, shape index: {}]   ;;  %s5714_s2 = inlined_call_operand.vmem [shape: f32[16,1], index: 2, kind: input, shape index: {}]   ;;  %s5715_s3 = inlined_call_operand.vmem [shape: bf16[2,9,16,16], index: 3, kind: input, shape index: {}]   ;;  %s5716_s4 = inlined_call_operand.vmem [shape: f32[2,16,1], index: 4, kind: input, shape index: {}]   ;;  %s5717_s5 = inlined_call_operand.hbm [shape: bf16[2,9,16,16], index: 5, kind: input, shape index: {}]   ;;  %s5718_s6 = inlined_call_operand.vmem [shape: f32[2,16,1], index: 6, kind: input, shape index: {}]   ;;  %s5719_s7 = inlined_call_operand.vmem [shape: bf16[16,16], index: 7, kind: input, shape index: {}]   ;;  %s5720_s8 = inlined_call_operand.vmem [shape: f32[16,1], index: 8, kind: input, shape index: {}]   ;;  %s5721_s9 = inlined_call_operand.vmem [shape: bf16[16,8], index: 9, kind: input, shape index: {}]   ;;  %s5722_s10 = inlined_call_operand.vmem [shape: f32[16,1], index: 10, kind: input, shape index: {}]   ;;  %s5723_s11 = inlined_call_operand.vmem [shape: bf16[32,16], index: 11, kind: input, shape index: {}]   ;;  %s5724_s12 = inlined_call_operand.vmem [shape: bf16[32,16], index: 12, kind: input, shape index: {}]   ;;  %s5725_s13 = inlined_call_operand.vmem [shape: f32[32,1], index: 13, kind: input, shape index: {}]   ;;  %s5726_s14 = inlined_call_operand.hbm [shape: f32[2,32,256], index: 14, kind: output, shape index: {}]  }
   0x1   :  { %5739 = sst [smem:[#allocation10_spill]] %s5712_s0 }
   0x2   :  { %5740 = sst [smem:[#allocation11_spill]] %s5713_s1 }
   0x3   :  { %5741 = sst [smem:[#allocation12_spill]] %s5714_s2 }
   0x4   :  { %5742 = sst [smem:[#allocation13_spill]] %s5717_s5 }
   0x5   :  { %19 = vsyncpa [#allocation4], 0 }
   0x6   :  { %20 = vsyncpa [#allocation5], 0 }
   0x7   :  { %22 = vsyncpa [#allocation5 + $0x1], 0  ;;  %s4901_s29 = smov 0   ;;  %s4903_s30 = smov 0  }
   0x8   :  { %s4905_s15 = smov 0   ;;  %s4907_s16 = smov 0  }
   0x9 LB: > { %s4922_s17 = sadd.s32 4294967295, %s4808_s16   ;;  %s3975_s18 = sadd.s32 4294967294, %s4808_s16   ;;  %s4808_s16 = sphi %s4907_s16, %s5772_s16   ;;  %s4804_s15 = sphi %s4905_s15, %s5771_s15   ;;  %s4800_s30 = sphi %s4903_s30, %s5770_s30   ;;  %s4796_s29 = sphi %s4901_s29, %s5769_s29  }
   0xa   : > { %s4926_s19 = sadd.s32 1, %s4808_s16   ;;  %s334_s20 = sadd.s32 1, %s4804_s15 }
   0xb   : > { %s331_s21 = ssub.s32 %s4808_s16, %s4926_s19  ;;  %p344_p0 = scmp.ne.s32.totalorder %s4804_s15, %s4800_s30 }
   0xc   : > { %p332_p1 = scmp.eq.s32.totalorder %s331_s21, 0  ;;  %p345_p2 = scmp.eq.s32.totalorder %s4922_s17, 1 }
   0xd   : > { %p350_p3 = scmp.ne.s32.totalorder %s4800_s30, %s4796_s29  ;;  %p351_p4 = scmp.eq.s32.totalorder %s3975_s18, 1 }
   0xe   : > { %s4937_s22 = scalar_select %p332_p1, %s4804_s15, %s334_s20  }
   0xf   : > { %p4939_p5 = por %p345_p2, %p344_p0  ;;  %p4943_p6 = por %p351_p4, %p350_p3 }
  0x10   : > { %5743 = sst [smem:[#allocation9_spill]] %s4937_s22  ;;  %p3976_p7 = scmp.ge.s32.totalorder %s4808_s16, 1 }
  0x11   : > { %s5745_s24 = scalar_select %p4943_p6, 1, 0 }
  0x12   : > { %p358_p8 = scmp.lt.s32.totalorder %s4808_s16, 3  ;;  %p4261_p9 = scmp.eq.s32.totalorder %s4922_s17, 0 }
  0x13   : > { %s4810_s26 = smov [#allocation3]  }
  0x14   : > { %p4950_p10 = pnand %p3976_p7, %p358_p8  ;;  %s382_s27 = sshll.u32 %s4810_s26, 4  ;;  %s383_s27 = int_to_ptr.vmem [resolvable:$true] %s382_s27 }
  0x15   : > { %s4729_s28 = scalar_lea.vmem %s383_s27, 2304  ;;  %p4737_p3 = scmp.lt.s32.totalorder %s383_s27, %s383_s27 }
  0x16   : > { %p4253_p11 = pneg %p4950_p10  ;;  %p4730_p0 = scmp.ne.s32.totalorder %s383_s27, %s4729_s28 }
  0x17   : > { %p4738_p4 = scmp.lt.s32.totalorder %s4729_s28, %s4729_s28 }
  0x18   : > { %p4254_p12 = pnand %p4261_p9, %p4253_p11 }
  0x19   : > { %p4739_p6 = por %p4738_p4, %p4737_p3 }
  0x1a   : > { %p4720_p13 = pneg %p4254_p12 }
  0x1c   : > { %p4732_p1 = pnand %p4730_p0, %p4720_p13 }
  0x1e   : > { %p4733_p2 = pneg %p4732_p1 }
  0x20   : > { %p4740_p7 = pnand %p4739_p6, %p4733_p2 }
  0x22   : > { %4743 = shalt.err (!%p4740_p7)
}
  0x23   : > { %s4811_s18 = smov 64   ;;  %s4812_s20 = smov 4  }
  0x24   : > { %s5747_s5 = sld [smem:[#allocation13_spill]] }
  0x26   : > { %430 = sbr.rel (%p4950_p10) target bundleno = 2175 (0x87f), region = 76 }
  0x2a   : > { %4256 = dma.hbm_to_vmem [thread:$0]  (!%p4254_p12), %s5747_s5, 2304, %s383_s27, [#allocation4], %s4811_s18, %s4811_s18, %s4812_s20  }
  0x2b   : > { %4787 = dma.done.wait (%p4261_p9), [#allocation4], 2304  }
  0x2c   : > { %4789 = vsyncadd (%p4261_p9), [#allocation4], 4294964992  ;;  %p476_p8 = scmp.lt.s32.totalorder %s4922_s17, 1  ;;  %v4813_v0 = vmov 0   ;;  %s5748_s0 = sld [smem:[#allocation10_spill]]  ;;  %vm550_vm0 = vcmask 1043456   ;;  %v483_v34 = vlaneseq }
  0x2d   : > { %589 = vmatprep.mubr.bf16.mxu0 %v4813_v0  ;;  %4311 = vset.pattern.permute.xlu0 %v4813_v0  ;;  %s5749_s1 = sld [smem:[#allocation11_spill]]  ;;  %vm546_vm1 = vcmask 64512   ;;  %v4814_v8 = vmov 0.0|0.0   ;;  %s5735_s5 = smov 16   ;;  %v4816_v9 = vmov 0.0   ;;  %v622_v31 = vld [vmem:[%s5716_s4] sm:$0xff] }
  0x2e   : > { %s477_s26 = scalar_select %p476_p8, %s4922_s17, 1  ;;  %731 = vmatprep.mubr.bf16.mxu1 %v4813_v0  ;;  %4402 = vset.pattern.permute.xlu1 %v4813_v0  ;;  %v623_v32 = vld [vmem:[%s5716_s4 + $0x8] sm:$0xff]  ;;  %v484_v35 = vand.u32 127, %v483_v34  ;;  %vm658_vm2 = vcmask 138240   ;;  %vm809_vm7 = vcmask 121856   ;;  %vm690_vm9 = vcmask 130048  }
  0x2f   : > { %s5750_s2 = sld [smem:[#allocation12_spill]]  ;;  %s5727_s25 = smov 17   ;;  %vm891_vm12 = vcmask 7168   ;;  %vm1030_vm14 = vcmask 1039360   ;;  %vm1112_vm15 = vcmask 924672  }
  0x30   : > { %s4245_s22 = sshll.u32 %s477_s26, 3  ;;  %4313 = vrot.lane.b32.xlu1 %v4816_v9, %s5727_s25  ;;  %s5733_s27 = smov 15   ;;  %v485_v38 = vadd.s32 128, %v484_v35  ;;  %v490_v42 = vand.u32 15, %v484_v35 }
  0x31   : > { %s5729_s18 = smov 127   ;;  %s5737_s20 = smov 113  }
  0x32   : > { %s480_s28 = scalar_lea.vmem %s5748_s0, %s4245_s22  ;;  %s4822_s21 = smov 111   ;;  %v497_v41 = vand.u32 15, %v485_v38  ;;  %vm510_vm4 = vcmp.ge.s32.totalorder %v490_v42, 1  ;;  %vm5088_vm11 = vcmp.lt.s32.totalorder %v490_v42, 15 }
  0x33   : > { %v482_v1 = vld [vmem:[%s480_s28] sm:$0xff]  ;;  %s5731_s28 = smov 1   ;;  %s4823_s26 = smov 112   ;;  %vm5070_vm6 = vmpackc.low %vm510_vm4, %vm510_vm4  ;;  %vm1262_vm4 = vcmask 908288  }
  0x34   : > { %v4976_v2 = vcombine.high %v482_v1, %v482_v1  ;;  %v3985_v3 = vcombine.low %v482_v1, %v482_v1  ;;  %v4675_v4 = vld [vmem:[%s5749_s1] sm:$0xff]   ;;  %vm511_vm3 = vcmp.ge.s32.totalorder %v497_v41, 1  ;;  %vm513_vm8 = vcmp.lt.s32.totalorder %v497_v41, 15  ;;  %vm5105_vm13 = vmpackc.low %vm5088_vm11, %vm5088_vm11  ;;  %s5762_s22 = smov 1   ;;  %s5764_s0 = smov 16  }
  0x35   : > { %v524_v5 = vld [vmem:[%s5750_s2] sm:$0xff]  ;;  %v525_v7 = vld [vmem:[%s5750_s2 + $0x8] sm:$0xff]  ;;  %vm5066_vm5 = vmpackc.low %vm511_vm3, %vm511_vm3  ;;  %vm1195_vm3 = vcmask 916480   ;;  %s4824_s1 = smov [#allocation6]  }
  0x36   : > { %528 = vperm.xlu0 %4311, %v524_v5   ;;  %3987 = vmatprep.subr.msk.bf16.mxu0 %vm550_vm0, %v4976_v2  ;;  %v4987_v6 = vsel %vm550_vm0, %v3985_v3, 0  ;;  %vm5084_vm10 = vmpackc.low %vm513_vm8, %vm513_vm8  ;;  %s4748_s2 = sshll.u32 %s4824_s1, 4  ;;  %s4749_s2 = int_to_ptr.vmem [resolvable:$false] %s4748_s2 }
  0x37   : > { %572 = vmatpush1.bf16.msra.mxu0 %v4987_v6 }
  0x3a   : > { %533 = vperm.xlu0 %4311, %v525_v7   ;;  %3988 = vmatmul.mubr.msk.bf16.vlgmr.msra.gmra.mxu0 %vm546_vm1, %v4675_v4  ;;  %v4677_v4 = vld [vmem:[%s5715_s3] sm:$0xff]  }
  0x3b   : > { %782 = vmatprep.mubr.bf16.mxu0 %v4813_v0 }
  0x3e   : > { %684 = vrot.lane.b32.xlu0 %v4814_v8, %s5735_s5 }
  0x42   : > { %4318 = vrot.lane.b32.xlu0 %v4816_v9, %s5733_s27 }
  0xa2   : > { %v4314_v36 = vpop.permute.xlu1 %4313 }
  0xa3   : > { %v4316_v45 = vunpack.i.h.bf16 %v4314_v36  ;;  %v4315_v48 = vunpack.i.l.bf16 %v4314_v36 }
  0xb1   : > { %v529_v10 = vpop.permute.xlu0 %528 }
  0xb5   : > { %v534_v15 = vpop.permute.xlu0 %533 }
  0xb9   : > { %v685_v33 = vpop.permute.xlu0 %684 }
  0xbd   : > { %v4319_v37 = vpop.permute.xlu0 %4318 }
  0xbe   : > { %v4321_v3 = vunpack.i.h.bf16 %v4319_v37  ;;  %v4320_v7 = vunpack.i.l.bf16 %v4319_v37 }
  0xfa   : > { %v591_v11 = vpop.f32.mrf.mxu0 }
  0xfb   : > { %v592_v12 = vadd.f32 %v591_v11, %v529_v10 }
  0xfc   : > { %v593_v13 = vpop.f32.mrf.mxu0 }
  0xfd   : > { %v594_v14 = vadd.f32 %v593_v13, %v529_v10  ;;  %v5001_v17 = vmax.f32 %v592_v12, 0.0 }
  0xfe   : > { %v595_v16 = vpop.f32.mrf.mxu0 }
  0xff   : > { %v5003_v18 = vmax.f32 %v594_v14, 0.0  ;;  %v596_v19 = vadd.f32 %v595_v16, %v534_v15  ;;  %v4712_v14 = vld [vmem:[%s5721_s9] sm:$0xff]  }
 0x100   : > { %v597_v20 = vpop.f32.mrf.mxu0 }
 0x101   : > { %v5005_v21 = vmax.f32 %v596_v19, 0.0  ;;  %v598_v22 = vadd.f32 %v597_v20, %v534_v15  ;;  %v4327_v23 = vpack.i.bf16 %v5003_v18, %v5001_v17  ;;  %v4357_v27 = vpack.i.bf16 %v4816_v9, %v5003_v18 }
 0x103   : > { %v5009_v24 = vmax.f32 %v598_v22, 0.0  ;;  %4328 = vrot.lane.b32.xlu0 %v4327_v23, %s5733_s27  ;;  %4323 = vrot.lane.b32.xlu1 %v4327_v23, %s5727_s25  ;;  %v5017_v26 = vpack.c.bf16 %v5005_v21, %v5001_v17  ;;  %v4367_v29 = vpack.i.bf16 %v5005_v21, %v5001_v17  ;;  %v4676_v22 = vld [vmem:[%s5715_s3 + $0x8] sm:$0xff]  }
 0x105   : > { %v4332_v25 = vpack.i.bf16 %v5009_v24, %v5005_v21  ;;  %v5028_v28 = vpack.c.bf16 %v5009_v24, %v5003_v18  ;;  %v4377_v30 = vpack.i.bf16 %v4816_v9, %v5009_v24 }
 0x107   : > { %4333 = vrot.lane.b32.xlu0 %v4332_v25, %s5727_s25  ;;  %686 = vrot.lane.b32.xlu1 %v5017_v26, %s5735_s5  ;;  %s5763_s25 = smov 127  }
 0x10b   : > { %4348 = vrot.lane.b32.xlu0 %v4332_v25, %s5731_s28  ;;  %4338 = vrot.lane.b32.xlu1 %v4332_v25, %s5733_s27 }
 0x10f   : > { %4358 = vrot.lane.b32.xlu0 %v4357_v27, %s5729_s18  ;;  %688 = vrot.lane.b32.xlu1 %v5028_v28, %s5735_s5 }
 0x113   : > { %4368 = vrot.lane.b32.xlu0 %v4367_v29, %s5729_s18  ;;  %4343 = vrot.lane.b32.xlu1 %v4327_v23, %s5731_s28 }
 0x117   : > { %4378 = vrot.lane.b32.xlu0 %v4377_v30, %s5737_s20  ;;  %4353 = vrot.lane.b32.xlu1 %v4816_v9, %s5731_s28 }
 0x11b   : > { %4388 = vrot.lane.b32.xlu0 %v4357_v27, %s4822_s21  ;;  %4363 = vrot.lane.b32.xlu1 %v4377_v30, %s5729_s18  ;;  %s5761_s18 = smov 17  }
 0x11f   : > { %1191 = vrot.lane.b32.xlu0 %v5028_v28, %s4823_s26  ;;  %4373 = vrot.lane.b32.xlu1 %v4357_v27, %s5737_s20 }
 0x123   : > { %1189 = vrot.lane.b32.xlu0 %v5017_v26, %s4823_s26  ;;  %4383 = vrot.lane.b32.xlu1 %v4367_v29, %s5737_s20 }
 0x127   : > { %1334 = vperm.xlu0 %4311, %v622_v31   ;;  %1193 = vrot.lane.b32.xlu1 %v4814_v8, %s4823_s26 }
 0x12b   : > { %4393 = vrot.lane.b32.xlu1 %v4377_v30, %s4822_s21  ;;  %1425 = vrot.lane.b32.xlu0 %v4814_v8, %s5735_s5 }
 0x12f   : > { %4398 = vrot.lane.b32.xlu1 %v4367_v29, %s4822_s21  ;;  %4409 = vrot.lane.b32.xlu0 %v4816_v9, %s5733_s27 }
 0x133   : > { %1339 = vperm.xlu1 %4402, %v623_v32  }
 0x137   : > { %4404 = vrot.lane.b32.xlu1 %v4816_v9, %s5761_s18 }
 0x175   : > { %v4329_v39 = vpop.permute.xlu0 %4328  ;;  %v4324_v40 = vpop.permute.xlu1 %4323 }
 0x176   : > { %v4326_v43 = vunpack.i.h.bf16 %v4324_v40  ;;  %v4325_v44 = vunpack.i.l.bf16 %v4324_v40  ;;  %v4331_v61 = vunpack.i.h.bf16 %v4329_v39  ;;  %v4330_v62 = vunpack.i.l.bf16 %v4329_v39 }
 0x178   : > { %v659_v51 = vsel %vm658_vm2, %v4315_v48, %v4325_v44  ;;  %v660_v52 = vsel %vm658_vm2, %v4325_v44, %v4326_v43  ;;  %v811_v12 = vsel %vm809_vm7, %v4330_v62, %v4331_v61  ;;  %v810_v27 = vsel %vm809_vm7, %v4320_v7, %v4330_v62  ;;  %v4680_v7 = vld [vmem:[%s5715_s3 + $0x20] sm:$0xff]  }
 0x179   : > { %v4334_v46 = vpop.permute.xlu0 %4333  ;;  %v687_v47 = vpop.permute.xlu1 %686 }
 0x17a   : > { %v4336_v49 = vunpack.i.h.bf16 %v4334_v46  ;;  %v4335_v50 = vunpack.i.l.bf16 %v4334_v46  ;;  %v691_v19 = vsel %vm690_vm9, %v685_v33, %v687_v47 }
 0x17c   : > { %v661_v53 = vsel %vm658_vm2, %v4316_v45, %v4335_v50  ;;  %v662_v54 = vsel %vm658_vm2, %v4335_v50, %v4336_v49  ;;  %v4678_v45 = vld [vmem:[%s5715_s3 + $0x10] sm:$0xff]  }
 0x17d   : > { %v3996_v56 = vpack.c.bf16 %v661_v53, %v659_v51  ;;  %v4349_v57 = vpop.permute.xlu0 %4348  ;;  %v4339_v58 = vpop.permute.xlu1 %4338  ;;  %v3993_v59 = vpack.c.bf16 %v662_v54, %v660_v52  ;;  %v4679_v53 = vld [vmem:[%s5715_s3 + $0x18] sm:$0xff]  }
 0x17e   : > { %v4341_v63 = vunpack.i.h.bf16 %v4339_v58  ;;  %v4340_v1 = vunpack.i.l.bf16 %v4339_v58  ;;  %v4351_v23 = vunpack.i.h.bf16 %v4349_v57  ;;  %v4350_v25 = vunpack.i.l.bf16 %v4349_v57 }
 0x17f   : > { %3994 = vmatprep.subr.msk.bf16.mxu0 %vm5066_vm5, %v3993_v59 }
 0x180   : > { %v813_v5 = vsel %vm809_vm7, %v4340_v1, %v4341_v63  ;;  %3997 = vmatpush1.bf16.msk.msra.mxu0 %vm5070_vm6, %v3996_v56  ;;  %v812_v16 = vsel %vm809_vm7, %v4321_v3, %v4340_v1  ;;  %v895_v35 = vsel %vm891_vm12, %v4350_v25, %v4351_v23 }
 0x181   : > { %v4359_v10 = vpop.permute.xlu0 %4358  ;;  %v689_v11 = vpop.permute.xlu1 %688  ;;  %v4001_v20 = vpack.c.bf16 %v813_v5, %v811_v12  ;;  %v4004_v32 = vpack.c.bf16 %v812_v16, %v810_v27  ;;  %v4681_v16 = vld [vmem:[%s5715_s3 + $0x28] sm:$0xff]  }
 0x182   : > { %v692_v13 = vsel %vm690_vm9, %v687_v47, %v689_v11  ;;  %v4361_v42 = vunpack.i.h.bf16 %v4359_v10  ;;  %v4360_v43 = vunpack.i.l.bf16 %v4359_v10 }
 0x183   : > { %713 = vmatprep.subr.bf16.mxu1 %v692_v13  ;;  %3998 = vmatmul.mubr.msk.bf16.vlgmr.msra.gmra.mxu0 %vm690_vm9, %v4677_v4 }
 0x184   : > { %714 = vmatpush1.bf16.msra.mxu1 %v691_v19  ;;  %946 = vmatprep.mubr.bf16.mxu0 %v4813_v0  ;;  %v1032_v54 = vsel %vm1030_vm14, %v4360_v43, %v4361_v42 }
 0x185   : > { %v4369_v29 = vpop.permute.xlu0 %4368  ;;  %v4344_v30 = vpop.permute.xlu1 %4343  ;;  %4002 = vmatprep.subr.msk.bf16.mxu1 %vm5084_vm10, %v4001_v20 }
 0x186   : > { %v4346_v33 = vunpack.i.h.bf16 %v4344_v30  ;;  %v4345_v34 = vunpack.i.l.bf16 %v4344_v30  ;;  %v4370_v44 = vunpack.i.l.bf16 %v4369_v29  ;;  %v4371_v50 = vunpack.i.h.bf16 %v4369_v29  ;;  %v4682_v30 = vld [vmem:[%s5715_s3 + $0x30] sm:$0xff]  }
 0x187   : > { %3990 = vmatmul.mubr.msk.bf16.vlgmr.msra.gmra.mxu1 %vm690_vm9, %v4676_v22 }
 0x188   : > { %v893_v36 = vsel %vm891_vm12, %v4345_v34, %v4346_v33  ;;  %4005 = vmatpush1.bf16.msk.msra.mxu1 %vm5105_vm13, %v4004_v32  ;;  %864 = vmatprep.mubr.bf16.mxu1 %v4813_v0  ;;  %v1031_v56 = vsel %vm1030_vm14, %v4370_v44, %v4360_v43 }
 0x189   : > { %v4379_v37 = vpop.permute.xlu0 %4378  ;;  %v4354_v38 = vpop.permute.xlu1 %4353  ;;  %983 = vmatprep.subr.bf16.mxu1 %v5028_v28  ;;  %v4009_v39 = vpack.c.bf16 %v895_v35, %v893_v36 }
 0x18a   : > { %v4356_v40 = vunpack.i.h.bf16 %v4354_v38  ;;  %v4355_v41 = vunpack.i.l.bf16 %v4354_v38  ;;  %v4381_v57 = vunpack.i.h.bf16 %v4379_v37  ;;  %v4380_v58 = vunpack.i.l.bf16 %v4379_v37  ;;  %v4683_v37 = vld [vmem:[%s5715_s3 + $0x38] sm:$0xff]  }
 0x18b   : > { %4010 = vmatprep.subr.msk.bf16.mxu0 %vm5066_vm5, %v4009_v39 }
 0x18c   : > { %v894_v46 = vsel %vm891_vm12, %v4356_v40, %v4350_v25  ;;  %v892_v47 = vsel %vm891_vm12, %v4355_v41, %v4345_v34 }
 0x18d   : > { %v4012_v48 = vpack.c.bf16 %v894_v46, %v892_v47  ;;  %v5123_v28 = vpop.permute.xlu0 %4388  ;;  %v4364_v49 = vpop.permute.xlu1 %4363  ;;  %v4684_v47 = vld [vmem:[%s5715_s3 + $0x40] sm:$0xff]  }
 0x18e   : > { %v4366_v51 = vunpack.i.h.bf16 %v4364_v49  ;;  %v4365_v52 = vunpack.i.l.bf16 %v4364_v49  ;;  %v4391_v32 = vunpack.i.h.bf16 %v5123_v28  ;;  %v4390_v33 = vunpack.i.l.bf16 %v5123_v28 }
 0x18f   : > { %4006 = vmatmul.mubr.msk.bf16.vlgmr.msra.gmra.mxu1 %vm690_vm9, %v4678_v45  ;;  %4013 = vmatpush1.bf16.msk.msra.mxu0 %vm5070_vm6, %v4012_v48 }
 0x190   : > { %v1033_v59 = vsel %vm1030_vm14, %v4371_v50, %v4365_v52  ;;  %v1034_v61 = vsel %vm1030_vm14, %v4365_v52, %v4366_v51  ;;  %984 = vmatpush1.bf16.msra.mxu1 %v5017_v26  ;;  %1001 = vmatprep.mubr.bf16.mxu1 %v4813_v0  ;;  %v1116_v26 = vsel %vm1112_vm15, %v4380_v58, %v4381_v57 }
 0x191   : > { %v4022_v62 = vpack.c.bf16 %v1033_v59, %v1031_v56  ;;  %v4374_v63 = vpop.permute.xlu1 %4373  ;;  %v4019_v1 = vpack.c.bf16 %v1034_v61, %v1032_v54  ;;  %v1192_v3 = vpop.permute.xlu0 %1191  ;;  %v1264_v38 = vsel %vm1262_vm4, %v4390_v33, %v4391_v32 }
 0x192   : > { %v4376_v4 = vunpack.i.h.bf16 %v4374_v63  ;;  %v4375_v5 = vunpack.i.l.bf16 %v4374_v63  ;;  %4014 = vmatmul.mubr.msk.bf16.vlgmr.msra.gmra.mxu0 %vm690_vm9, %v4679_v53 }
 0x193   : > { %4020 = vmatprep.subr.msk.bf16.mxu0 %vm5084_vm10, %v4019_v1  ;;  %1085 = vmatprep.mubr.bf16.mxu0 %v4813_v0 }
 0x194   : > { %v1114_v10 = vsel %vm1112_vm15, %v4375_v5, %v4376_v4  ;;  %4023 = vmatpush1.bf16.msk.msra.mxu0 %vm5105_vm13, %v4022_v62 }
 0x195   : > { %v4027_v11 = vpack.c.bf16 %v1116_v26, %v1114_v10  ;;  %v4384_v12 = vpop.permute.xlu1 %4383  ;;  %v1190_v19 = vpop.permute.xlu0 %1189 }
 0x196   : > { %v4386_v13 = vunpack.i.h.bf16 %v4384_v12  ;;  %v4385_v15 = vunpack.i.l.bf16 %v4384_v12  ;;  %v1196_v29 = vsel %vm1195_vm3, %v1190_v19, %v1192_v3 }
 0x197   : > { %4016 = vmatmul.mubr.msk.bf16.vlgmr.msra.gmra.mxu1 %vm690_vm9, %v4680_v7  ;;  %4028 = vmatprep.subr.msk.bf16.mxu1 %vm5066_vm5, %v4027_v11 }
 0x198   : > { %v1115_v20 = vsel %vm1112_vm15, %v4386_v13, %v4380_v58  ;;  %v1113_v22 = vsel %vm1112_vm15, %v4385_v15, %v4375_v5  ;;  %1167 = vmatprep.mubr.bf16.mxu1 %v4813_v0 }
 0x199   : > { %v4030_v23 = vpack.c.bf16 %v1115_v20, %v1113_v22  ;;  %v1194_v25 = vpop.permute.xlu1 %1193 }
 0x19a   : > { %4024 = vmatmul.mubr.msk.bf16.vlgmr.msra.gmra.mxu0 %vm690_vm9, %v4681_v16  ;;  %v1197_v27 = vsel %vm1195_vm3, %v1192_v3, %v1194_v25 }
 0x19b   : > { %4031 = vmatpush1.bf16.msk.msra.mxu1 %vm5070_vm6, %v4030_v23  ;;  %1217 = vmatprep.subr.bf16.mxu0 %v1197_v27 }
 0x19c   : > { %1218 = vmatpush1.bf16.msra.mxu0 %v1196_v29  ;;  %1235 = vmatprep.mubr.bf16.mxu0 %v4813_v0 }
 0x19d   : > { %v4394_v34 = vpop.permute.xlu1 %4393 }
 0x19e   : > { %v4396_v35 = vunpack.i.h.bf16 %v4394_v34  ;;  %v4395_v36 = vunpack.i.l.bf16 %v4394_v34 }
 0x19f   : > { %4032 = vmatmul.mubr.msk.bf16.vlgmr.msra.gmra.mxu1 %vm690_vm9, %v4682_v30 }
 0x1a0   : > { %v1266_v39 = vsel %vm1262_vm4, %v4395_v36, %v4396_v35  ;;  %1317 = vmatprep.mubr.bf16.mxu1 %v4813_v0 }
 0x1a1   : > { %v4037_v40 = vpack.c.bf16 %v1266_v39, %v1264_v38  ;;  %v4399_v41 = vpop.permute.xlu1 %4398 }
 0x1a2   : > { %v4401_v42 = vunpack.i.h.bf16 %v4399_v41  ;;  %v4400_v43 = vunpack.i.l.bf16 %v4399_v41  ;;  %4034 = vmatmul.mubr.msk.bf16.vlgmr.msra.gmra.mxu0 %vm690_vm9, %v4683_v37 }
 0x1a3   : > { %4038 = vmatprep.subr.msk.bf16.mxu1 %vm5084_vm10, %v4037_v40  ;;  %1470 = vmatprep.mubr.bf16.mxu0 %v4813_v0 }
 0x1a4   : > { %v1263_v44 = vsel %vm1262_vm4, %v4400_v43, %v4390_v33  ;;  %v1265_v45 = vsel %vm1262_vm4, %v4401_v42, %v4395_v36 }
 0x1a5   : > { %v4040_v46 = vpack.c.bf16 %v1265_v45, %v1263_v44 }
 0x1a7   : > { %4041 = vmatpush1.bf16.msk.msra.mxu1 %vm5105_vm13, %v4040_v46 }
 0x1aa   : > { %4042 = vmatmul.mubr.msk.bf16.vlgmr.msra.gmra.mxu1 %vm690_vm9, %v4684_v47 }
 0x1ab   : > { %1521 = vmatprep.mubr.bf16.mxu1 %v4813_v0 }
 0x243   : > { %v784_v48 = vpop.f32.mrf.mxu0 }
 0x245   : > { %v786_v49 = vpop.f32.mrf.mxu0 }
 0x247   : > { %v733_v28 = vpop.f32.mrf.mxu1  ;;  %v788_v52 = vpop.f32.mrf.mxu0 }
 0x248   : > { %v785_v1 = vadd.f32 %v784_v48, %v733_v28 }
 0x249   : > { %v735_v50 = vpop.f32.mrf.mxu1  ;;  %v790_v56 = vpop.f32.mrf.mxu0 }
 0x24a   : > { %v787_v5 = vadd.f32 %v786_v49, %v735_v50 }
 0x24b   : > { %v737_v51 = vpop.f32.mrf.mxu1 }
 0x24c   : > { %v789_v11 = vadd.f32 %v788_v52, %v737_v51  ;;  %v1335_v52 = vpop.permute.xlu0 %1334 }
 0x24d   : > { %v739_v53 = vpop.f32.mrf.mxu1 }
 0x24e   : > { %v791_v16 = vadd.f32 %v790_v56, %v739_v53 }
 0x24f   : > { %v866_v54 = vpop.f32.mrf.mxu1 }
 0x250   : > { %v875_v7 = vadd.f32 %v866_v54, %v785_v1  ;;  %v1340_v1 = vpop.permute.xlu1 %1339 }
 0x251   : > { %v868_v57 = vpop.f32.mrf.mxu1 }
 0x252   : > { %v948_v58 = vpop.f32.mrf.mxu0  ;;  %v876_v12 = vadd.f32 %v868_v57, %v787_v5 }
 0x253   : > { %v870_v59 = vpop.f32.mrf.mxu1  ;;  %v957_v19 = vadd.f32 %v948_v58, %v875_v7 }
 0x254   : > { %v950_v61 = vpop.f32.mrf.mxu0  ;;  %v877_v20 = vadd.f32 %v870_v59, %v789_v11 }
 0x255   : > { %v872_v62 = vpop.f32.mrf.mxu1  ;;  %v958_v25 = vadd.f32 %v950_v61, %v876_v12 }
 0x256   : > { %v952_v63 = vpop.f32.mrf.mxu0  ;;  %v878_v27 = vadd.f32 %v872_v62, %v791_v16 }
 0x257   : > { %v1003_v3 = vpop.f32.mrf.mxu1  ;;  %v959_v33 = vadd.f32 %v952_v63, %v877_v20 }
 0x258   : > { %v954_v4 = vpop.f32.mrf.mxu0  ;;  %v1012_v29 = vadd.f32 %v1003_v3, %v957_v19 }
 0x259   : > { %v1005_v26 = vpop.f32.mrf.mxu1  ;;  %v960_v37 = vadd.f32 %v954_v4, %v878_v27 }
 0x25a   : > { %v1087_v10 = vpop.f32.mrf.mxu0  ;;  %v1013_v34 = vadd.f32 %v1005_v26, %v958_v25 }
 0x25b   : > { %v1007_v13 = vpop.f32.mrf.mxu1  ;;  %v1096_v38 = vadd.f32 %v1087_v10, %v1012_v29 }
 0x25c   : > { %v1089_v15 = vpop.f32.mrf.mxu0  ;;  %v1014_v39 = vadd.f32 %v1007_v13, %v959_v33  ;;  %v1426_v33 = vpop.permute.xlu0 %1425 }
 0x25d   : > { %v1009_v22 = vpop.f32.mrf.mxu1  ;;  %v1097_v42 = vadd.f32 %v1089_v15, %v1013_v34 }
 0x25e   : > { %v1091_v23 = vpop.f32.mrf.mxu0  ;;  %v1015_v43 = vadd.f32 %v1009_v22, %v960_v37 }
 0x25f   : > { %v1169_v30 = vpop.f32.mrf.mxu1  ;;  %v1098_v45 = vadd.f32 %v1091_v23, %v1014_v39 }
 0x260   : > { %v1093_v32 = vpop.f32.mrf.mxu0  ;;  %v1178_v44 = vadd.f32 %v1169_v30, %v1096_v38  ;;  %v1368_v30 = vld [vmem:[%s5718_s6] sm:$0xff]  ;;  %v4410_v34 = vpop.permute.xlu0 %4409 }
 0x261   : > { %v1171_v35 = vpop.f32.mrf.mxu1  ;;  %v1099_v28 = vadd.f32 %v1093_v32, %v1015_v43  ;;  %v1369_v32 = vld [vmem:[%s5718_s6 + $0x8] sm:$0xff] }
 0x262   : > { %v1237_v36 = vpop.f32.mrf.mxu0  ;;  %v1179_v46 = vadd.f32 %v1171_v35, %v1097_v42  ;;  %v4405_v35 = vpop.permute.xlu1 %4404 }
 0x263   : > { %v1173_v40 = vpop.f32.mrf.mxu1  ;;  %v1246_v49 = vadd.f32 %v1237_v36, %v1178_v44  ;;  %v4411_v44 = vunpack.i.l.bf16 %v4410_v34 }
 0x264   : > { %v1239_v41 = vpop.f32.mrf.mxu0  ;;  %v1180_v50 = vadd.f32 %v1173_v40, %v1098_v45  ;;  %v4412_v45 = vunpack.i.h.bf16 %v4410_v34 }
 0x265   : > { %v1175_v47 = vpop.f32.mrf.mxu1  ;;  %v1247_v53 = vadd.f32 %v1239_v41, %v1179_v46 }
 0x266   : > { %v1241_v48 = vpop.f32.mrf.mxu0  ;;  %v1181_v54 = vadd.f32 %v1175_v47, %v1099_v28  ;;  %v4407_v28 = vunpack.i.h.bf16 %v4405_v35 }
 0x267   : > { %v1248_v59 = vadd.f32 %v1241_v48, %v1180_v50 }
 0x268   : > { %v1243_v57 = vpop.f32.mrf.mxu0 }
 0x269   : > { %v1249_v3 = vadd.f32 %v1243_v57, %v1181_v54 }
 0x26a   : > { %v1319_v51 = vpop.f32.mrf.mxu1 }
 0x26b   : > { %v1328_v56 = vadd.f32 %v1319_v51, %v1246_v49  ;;  %v4406_v49 = vunpack.i.l.bf16 %v4405_v35 }
 0x26c   : > { %v1321_v58 = vpop.f32.mrf.mxu1 }
 0x26d   : > { %v1342_v61 = vadd.f32 %v1335_v52, %v1328_v56  ;;  %v1329_v62 = vadd.f32 %v1321_v58, %v1247_v53 }
 0x26e   : > { %v1323_v63 = vpop.f32.mrf.mxu1 }
 0x26f   : > { %v1343_v4 = vadd.f32 %v1335_v52, %v1329_v62  ;;  %v1330_v5 = vadd.f32 %v1323_v63, %v1248_v59  ;;  %v1346_v26 = vmax.f32 %v1342_v61, 0.0  ;;  %v4685_v62 = vld [vmem:[#allocation3 + $0x8] sm:$0xff]  }
 0x270   : > { %v1325_v7 = vpop.f32.mrf.mxu1 }
 0x271   : > { %v1347_v10 = vmax.f32 %v1343_v4, 0.0  ;;  %v1344_v11 = vadd.f32 %v1340_v1, %v1330_v5  ;;  %v1331_v12 = vadd.f32 %v1325_v7, %v1249_v3 }
 0x273   : > { %v1348_v13 = vmax.f32 %v1344_v11, 0.0  ;;  %v1345_v15 = vadd.f32 %v1340_v1, %v1331_v12  ;;  %v4418_v16 = vpack.i.bf16 %v1347_v10, %v1346_v26  ;;  %v4448_v25 = vpack.i.bf16 %v4816_v9, %v1347_v10 }
 0x275   : > { %v1349_v19 = vmax.f32 %v1345_v15, 0.0  ;;  %4419 = vrot.lane.b32.xlu0 %v4418_v16, %s5733_s27  ;;  %4414 = vrot.lane.b32.xlu1 %v4418_v16, %s5761_s18  ;;  %v5194_v20 = vpack.c.bf16 %v1348_v13, %v1346_v26  ;;  %v4458_v27 = vpack.i.bf16 %v1348_v13, %v1346_v26 }
 0x277   : > { %v4428_v22 = vpack.i.bf16 %v1349_v19, %v1348_v13  ;;  %v5199_v23 = vpack.c.bf16 %v1349_v19, %v1347_v10  ;;  %v4453_v29 = vpack.i.bf16 %v4816_v9, %v1349_v19  ;;  %v4686_v19 = vld [vmem:[#allocation3] sm:$0xff]  }
 0x279   : > { %1427 = vrot.lane.b32.xlu0 %v5194_v20, %s5735_s5  ;;  %4429 = vrot.lane.b32.xlu1 %v4428_v22, %s5733_s27  ;;  %s5766_s27 = smov 113  }
 0x27d   : > { %4424 = vrot.lane.b32.xlu0 %v4428_v22, %s5761_s18  ;;  %1429 = vrot.lane.b32.xlu1 %v5199_v23, %s5735_s5  ;;  %s5765_s5 = smov 15  }
 0x281   : > { %4439 = vrot.lane.b32.xlu0 %v4428_v22, %s5762_s22  ;;  %4434 = vrot.lane.b32.xlu1 %v4418_v16, %s5762_s22 }
 0x285   : > { %4449 = vrot.lane.b32.xlu0 %v4448_v25, %s5763_s25  ;;  %4444 = vrot.lane.b32.xlu1 %v4816_v9, %s5762_s22 }
 0x289   : > { %4459 = vrot.lane.b32.xlu0 %v4458_v27, %s5763_s25  ;;  %4454 = vrot.lane.b32.xlu1 %v4453_v29, %s5763_s25 }
 0x28d   : > { %4469 = vrot.lane.b32.xlu0 %v4453_v29, %s5737_s20  ;;  %4464 = vrot.lane.b32.xlu1 %v4448_v25, %s5737_s20 }
 0x291   : > { %4479 = vrot.lane.b32.xlu0 %v4448_v25, %s4822_s21  ;;  %4474 = vrot.lane.b32.xlu1 %v4458_v27, %s5737_s20 }
 0x295   : > { %1922 = vrot.lane.b32.xlu0 %v5199_v23, %s4823_s26  ;;  %1924 = vrot.lane.b32.xlu1 %v4814_v8, %s4823_s26 }
 0x299   : > { %1920 = vrot.lane.b32.xlu0 %v5194_v20, %s4823_s26  ;;  %4484 = vrot.lane.b32.xlu1 %v4453_v29, %s4822_s21 }
 0x29d   : > { %2063 = vperm.xlu0 %4311, %v1368_v30   ;;  %4489 = vrot.lane.b32.xlu1 %v4458_v27, %s4822_s21 }
 0x2a1   : > { %2068 = vperm.xlu1 %4402, %v1369_v32   ;;  %2160 = vrot.lane.b32.xlu0 %v4814_v8, %s5764_s0 }
 0x2a5   : > { %4499 = vrot.lane.b32.xlu0 %v4816_v9, %s5765_s5  ;;  %4494 = vrot.lane.b32.xlu1 %v4816_v9, %s5761_s18 }
 0x2e7   : > { %v4420_v36 = vpop.permute.xlu0 %4419  ;;  %v4415_v37 = vpop.permute.xlu1 %4414 }
 0x2e8   : > { %v4422_v38 = vunpack.i.h.bf16 %v4420_v36  ;;  %v4421_v39 = vunpack.i.l.bf16 %v4420_v36  ;;  %v4417_v46 = vunpack.i.h.bf16 %v4415_v37  ;;  %v4416_v47 = vunpack.i.l.bf16 %v4415_v37  ;;  %v4687_v36 = vld [vmem:[#allocation3 + $0x10] sm:$0xff]  }
 0x2ea   : > { %v1545_v50 = vsel %vm809_vm7, %v4421_v39, %v4422_v38  ;;  %v1544_v58 = vsel %vm809_vm7, %v4411_v44, %v4421_v39  ;;  %v1400_v63 = vsel %vm658_vm2, %v4406_v49, %v4416_v47  ;;  %v1401_v1 = vsel %vm658_vm2, %v4416_v47, %v4417_v46  ;;  %v4688_v46 = vld [vmem:[#allocation3 + $0x18] sm:$0xff]  }
 0x2eb   : > { %v1428_v40 = vpop.permute.xlu0 %1427  ;;  %v4430_v41 = vpop.permute.xlu1 %4429 }
 0x2ec   : > { %v4432_v42 = vunpack.i.h.bf16 %v4430_v41  ;;  %v4431_v43 = vunpack.i.l.bf16 %v4430_v41  ;;  %v1431_v59 = vsel %vm690_vm9, %v1426_v33, %v1428_v40 }
 0x2ee   : > { %v1547_v48 = vsel %vm809_vm7, %v4431_v43, %v4432_v42  ;;  %v1546_v53 = vsel %vm809_vm7, %v4412_v45, %v4431_v43 }
 0x2ef   : > { %v4425_v51 = vpop.permute.xlu0 %4424  ;;  %v1430_v52 = vpop.permute.xlu1 %1429  ;;  %v4055_v61 = vpack.c.bf16 %v1547_v48, %v1545_v50  ;;  %v4058_v5 = vpack.c.bf16 %v1546_v53, %v1544_v58  ;;  %v4689_v58 = vld [vmem:[#allocation3 + $0x20] sm:$0xff]  }
 0x2f0   : > { %v4427_v54 = vunpack.i.h.bf16 %v4425_v51  ;;  %v4426_v56 = vunpack.i.l.bf16 %v4425_v51  ;;  %v1432_v57 = vsel %vm690_vm9, %v1428_v40, %v1430_v52 }
 0x2f1   : > { %1452 = vmatprep.subr.bf16.mxu0 %v1432_v57 }
 0x2f2   : > { %v1402_v3 = vsel %vm658_vm2, %v4407_v28, %v4426_v56  ;;  %v1403_v4 = vsel %vm658_vm2, %v4426_v56, %v4427_v54  ;;  %1453 = vmatpush1.bf16.msra.mxu0 %v1431_v59 }
 0x2f3   : > { %v4047_v7 = vpack.c.bf16 %v1403_v4, %v1401_v1  ;;  %v4050_v26 = vpack.c.bf16 %v1402_v3, %v1400_v63  ;;  %v4440_v10 = vpop.permute.xlu0 %4439  ;;  %4056 = vmatprep.subr.msk.bf16.mxu0 %vm5084_vm10, %v4055_v61  ;;  %v4435_v11 = vpop.permute.xlu1 %4434  ;;  %v4690_v4 = vld [vmem:[#allocation3 + $0x28] sm:$0xff]  }
 0x2f4   : > { %v4442_v12 = vunpack.i.h.bf16 %v4440_v10  ;;  %v4441_v13 = vunpack.i.l.bf16 %v4440_v10  ;;  %v4437_v15 = vunpack.i.h.bf16 %v4435_v11  ;;  %v4436_v16 = vunpack.i.l.bf16 %v4435_v11 }
 0x2f5   : > { %4044 = vmatmul.mubr.msk.bf16.vlgmr.msra.gmra.mxu0 %vm690_vm9, %v4685_v62  ;;  %4048 = vmatprep.subr.msk.bf16.mxu1 %vm5066_vm5, %v4047_v7 }
 0x2f6   : > { %v1628_v22 = vsel %vm891_vm12, %v4441_v13, %v4442_v12  ;;  %v1626_v25 = vsel %vm891_vm12, %v4436_v16, %v4437_v15  ;;  %4051 = vmatpush1.bf16.msk.msra.mxu1 %vm5070_vm6, %v4050_v26  ;;  %4059 = vmatpush1.bf16.msk.msra.mxu0 %vm5105_vm13, %v4058_v5 }
 0x2f7   : > { %v4063_v27 = vpack.c.bf16 %v1628_v22, %v1626_v25  ;;  %v4450_v29 = vpop.permute.xlu0 %4449  ;;  %1716 = vmatprep.subr.bf16.mxu0 %v5199_v23  ;;  %v4445_v30 = vpop.permute.xlu1 %4444  ;;  %1598 = vmatprep.mubr.bf16.mxu0 %v4813_v0 }
 0x2f8   : > { %v4447_v32 = vunpack.i.h.bf16 %v4445_v30  ;;  %v4446_v33 = vunpack.i.l.bf16 %v4445_v30  ;;  %v4452_v34 = vunpack.i.h.bf16 %v4450_v29  ;;  %v4451_v35 = vunpack.i.l.bf16 %v4450_v29  ;;  %v4692_v30 = vld [vmem:[#allocation3 + $0x38] sm:$0xff]  }
 0x2f9   : > { %4052 = vmatmul.mubr.msk.bf16.vlgmr.msra.gmra.mxu1 %vm690_vm9, %v4686_v19  ;;  %4064 = vmatprep.subr.msk.bf16.mxu1 %vm5066_vm5, %v4063_v27 }
 0x2fa   : > { %v1627_v37 = vsel %vm891_vm12, %v4447_v32, %v4441_v13  ;;  %v1625_v38 = vsel %vm891_vm12, %v4446_v33, %v4436_v16  ;;  %1679 = vmatprep.mubr.bf16.mxu1 %v4813_v0  ;;  %v1764_v45 = vsel %vm1030_vm14, %v4451_v35, %v4452_v34  ;;  %v4691_v13 = vld [vmem:[#allocation3 + $0x30] sm:$0xff]  }
 0x2fb   : > { %v4066_v23 = vpack.c.bf16 %v1627_v37, %v1625_v38  ;;  %v4460_v39 = vpop.permute.xlu0 %4459  ;;  %v4455_v40 = vpop.permute.xlu1 %4454 }
 0x2fc   : > { %v4462_v41 = vunpack.i.h.bf16 %v4460_v39  ;;  %v4461_v42 = vunpack.i.l.bf16 %v4460_v39  ;;  %v4457_v43 = vunpack.i.h.bf16 %v4455_v40  ;;  %v4456_v44 = vunpack.i.l.bf16 %v4455_v40  ;;  %v4693_v40 = vld [vmem:[#allocation3 + $0x40] sm:$0xff]  }
 0x2fd   : > { %4060 = vmatmul.mubr.msk.bf16.vlgmr.msra.gmra.mxu0 %vm690_vm9, %v4687_v36  ;;  %4067 = vmatpush1.bf16.msk.msra.mxu1 %vm5070_vm6, %v4066_v23 }
 0x2fe   : > { %v1763_v47 = vsel %vm1030_vm14, %v4461_v42, %v4451_v35  ;;  %v1765_v48 = vsel %vm1030_vm14, %v4462_v41, %v4456_v44  ;;  %v1766_v28 = vsel %vm1030_vm14, %v4456_v44, %v4457_v43  ;;  %1717 = vmatpush1.bf16.msra.mxu0 %v5194_v20  ;;  %1734 = vmatprep.mubr.bf16.mxu0 %v4813_v0 }
 0x2ff   : > { %v4073_v49 = vpack.c.bf16 %v1766_v28, %v1764_v45  ;;  %v4076_v50 = vpack.c.bf16 %v1765_v48, %v1763_v47  ;;  %v4470_v51 = vpop.permute.xlu0 %4469  ;;  %v4465_v52 = vpop.permute.xlu1 %4464 }
 0x300   : > { %v4472_v53 = vunpack.i.h.bf16 %v4470_v51  ;;  %v4471_v54 = vunpack.i.l.bf16 %v4470_v51  ;;  %v4467_v56 = vunpack.i.h.bf16 %v4465_v52  ;;  %v4466_v57 = vunpack.i.l.bf16 %v4465_v52 }
 0x301   : > { %4068 = vmatmul.mubr.msk.bf16.vlgmr.msra.gmra.mxu1 %vm690_vm9, %v4688_v46  ;;  %4074 = vmatprep.subr.msk.bf16.mxu1 %vm5084_vm10, %v4073_v49 }
 0x302   : > { %v1847_v59 = vsel %vm1112_vm15, %v4471_v54, %v4472_v53  ;;  %v1845_v20 = vsel %vm1112_vm15, %v4466_v57, %v4467_v56  ;;  %4077 = vmatpush1.bf16.msk.msra.mxu1 %vm5105_vm13, %v4076_v50  ;;  %1817 = vmatprep.mubr.bf16.mxu1 %v4813_v0 }
 0x303   : > { %v4081_v61 = vpack.c.bf16 %v1847_v59, %v1845_v20  ;;  %v4480_v62 = vpop.permute.xlu0 %4479  ;;  %v4475_v63 = vpop.permute.xlu1 %4474 }
 0x304   : > { %v4477_v1 = vunpack.i.h.bf16 %v4475_v63  ;;  %v4476_v3 = vunpack.i.l.bf16 %v4475_v63  ;;  %v4482_v15 = vunpack.i.h.bf16 %v4480_v62  ;;  %v4481_v16 = vunpack.i.l.bf16 %v4480_v62 }
 0x305   : > { %4070 = vmatmul.mubr.msk.bf16.vlgmr.msra.gmra.mxu0 %vm690_vm9, %v4689_v58  ;;  %4082 = vmatprep.subr.msk.bf16.mxu0 %vm5066_vm5, %v4081_v61 }
 0x306   : > { %v1846_v5 = vsel %vm1112_vm15, %v4477_v1, %v4471_v54  ;;  %v1844_v7 = vsel %vm1112_vm15, %v4476_v3, %v4466_v57  ;;  %1898 = vmatprep.mubr.bf16.mxu0 %v4813_v0  ;;  %v1993_v32 = vsel %vm1262_vm4, %v4481_v16, %v4482_v15 }
 0x307   : > { %v4084_v26 = vpack.c.bf16 %v1846_v5, %v1844_v7  ;;  %v1923_v10 = vpop.permute.xlu0 %1922  ;;  %v1925_v11 = vpop.permute.xlu1 %1924 }
 0x308   : > { %v1927_v12 = vsel %vm1195_vm3, %v1923_v10, %v1925_v11 }
 0x309   : > { %4078 = vmatmul.mubr.msk.bf16.vlgmr.msra.gmra.mxu1 %vm690_vm9, %v4690_v4  ;;  %4085 = vmatpush1.bf16.msk.msra.mxu0 %vm5070_vm6, %v4084_v26 }
 0x30a   : > { %1947 = vmatprep.subr.bf16.mxu1 %v1927_v12  ;;  %1965 = vmatprep.mubr.bf16.mxu1 %v4813_v0 }
 0x30b   : > { %v1921_v19 = vpop.permute.xlu0 %1920  ;;  %v4485_v22 = vpop.permute.xlu1 %4484 }
 0x30c   : > { %v1926_v25 = vsel %vm1195_vm3, %v1921_v19, %v1923_v10  ;;  %v4487_v27 = vunpack.i.h.bf16 %v4485_v22  ;;  %v4486_v29 = vunpack.i.l.bf16 %v4485_v22 }
 0x30d   : > { %4086 = vmatmul.mubr.msk.bf16.vlgmr.msra.gmra.mxu0 %vm690_vm9, %v4691_v13  ;;  %1948 = vmatpush1.bf16.msra.mxu1 %v1926_v25 }
 0x30e   : > { %v1995_v33 = vsel %vm1262_vm4, %v4486_v29, %v4487_v27  ;;  %2046 = vmatprep.mubr.bf16.mxu0 %v4813_v0 }
 0x30f   : > { %v4091_v34 = vpack.c.bf16 %v1995_v33, %v1993_v32  ;;  %v4490_v35 = vpop.permute.xlu1 %4489 }
 0x310   : > { %v4492_v36 = vunpack.i.h.bf16 %v4490_v35  ;;  %v4491_v37 = vunpack.i.l.bf16 %v4490_v35 }
 0x311   : > { %4088 = vmatmul.mubr.msk.bf16.vlgmr.msra.gmra.mxu1 %vm690_vm9, %v4692_v30  ;;  %4092 = vmatprep.subr.msk.bf16.mxu0 %vm5084_vm10, %v4091_v34 }
 0x312   : > { %v1992_v38 = vsel %vm1262_vm4, %v4491_v37, %v4481_v16  ;;  %v1994_v23 = vsel %vm1262_vm4, %v4492_v36, %v4486_v29  ;;  %2205 = vmatprep.mubr.bf16.mxu1 %v4813_v0 }
 0x313   : > { %v4094_v39 = vpack.c.bf16 %v1994_v23, %v1992_v38 }
 0x315   : > { %4095 = vmatpush1.bf16.msk.msra.mxu0 %vm5105_vm13, %v4094_v39 }
 0x318   : > { %4096 = vmatmul.mubr.msk.bf16.vlgmr.msra.gmra.mxu0 %vm690_vm9, %v4693_v40 }
 0x319   : > { %2256 = vmatprep.mubr.bf16.mxu0 %v4813_v0 }
 0x3b5   : > { %v1472_v41 = vpop.f32.mrf.mxu0 }
 0x3b7   : > { %v1474_v42 = vpop.f32.mrf.mxu0 }
 0x3b9   : > { %v1476_v43 = vpop.f32.mrf.mxu0  ;;  %v1523_v44 = vpop.f32.mrf.mxu1 }
 0x3ba   : > { %v1524_v61 = vadd.f32 %v1523_v44, %v1472_v41  ;;  %v2064_v44 = vpop.permute.xlu0 %2063 }
 0x3bb   : > { %v1478_v45 = vpop.f32.mrf.mxu0  ;;  %v1525_v46 = vpop.f32.mrf.mxu1 }
 0x3bc   : > { %v1526_v1 = vadd.f32 %v1525_v46, %v1474_v42 }
 0x3bd   : > { %v1527_v47 = vpop.f32.mrf.mxu1  ;;  %v1600_v48 = vpop.f32.mrf.mxu0 }
 0x3be   : > { %v1609_v3 = vadd.f32 %v1600_v48, %v1524_v61  ;;  %v1528_v7 = vadd.f32 %v1527_v47, %v1476_v43 }
 0x3bf   : > { %v1529_v28 = vpop.f32.mrf.mxu1  ;;  %v1602_v49 = vpop.f32.mrf.mxu0 }
 0x3c0   : > { %v1610_v26 = vadd.f32 %v1602_v49, %v1526_v1  ;;  %v1530_v13 = vadd.f32 %v1529_v28, %v1478_v45 }
 0x3c1   : > { %v1604_v50 = vpop.f32.mrf.mxu0  ;;  %v1681_v51 = vpop.f32.mrf.mxu1 }
 0x3c2   : > { %v1690_v10 = vadd.f32 %v1681_v51, %v1609_v3  ;;  %v1611_v15 = vadd.f32 %v1604_v50, %v1528_v7 }
 0x3c3   : > { %v1606_v52 = vpop.f32.mrf.mxu0  ;;  %v1683_v53 = vpop.f32.mrf.mxu1 }
 0x3c4   : > { %v1691_v16 = vadd.f32 %v1683_v53, %v1610_v26  ;;  %v1612_v27 = vadd.f32 %v1606_v52, %v1530_v13 }
 0x3c5   : > { %v1685_v54 = vpop.f32.mrf.mxu1  ;;  %v1736_v56 = vpop.f32.mrf.mxu0 }
 0x3c6   : > { %v1745_v19 = vadd.f32 %v1736_v56, %v1690_v10  ;;  %v1692_v29 = vadd.f32 %v1685_v54, %v1611_v15 }
 0x3c7   : > { %v1687_v57 = vpop.f32.mrf.mxu1  ;;  %v1738_v58 = vpop.f32.mrf.mxu0 }
 0x3c8   : > { %v1746_v30 = vadd.f32 %v1738_v58, %v1691_v16  ;;  %v1693_v34 = vadd.f32 %v1687_v57, %v1612_v27  ;;  %v4115_v16 = vld [vmem:[%s5716_s4 + $0x10] sm:$0xff] }
 0x3c9   : > { %v1740_v59 = vpop.f32.mrf.mxu0  ;;  %v1819_v20 = vpop.f32.mrf.mxu1 }
 0x3ca   : > { %v1828_v32 = vadd.f32 %v1819_v20, %v1745_v19  ;;  %v1747_v35 = vadd.f32 %v1740_v59, %v1692_v29  ;;  %v2069_v20 = vpop.permute.xlu1 %2068  ;;  %v4116_v19 = vld [vmem:[%s5716_s4 + $0x18] sm:$0xff] }
 0x3cb   : > { %v1742_v62 = vpop.f32.mrf.mxu0  ;;  %v1821_v63 = vpop.f32.mrf.mxu1 }
 0x3cc   : > { %v1829_v36 = vadd.f32 %v1821_v63, %v1746_v30  ;;  %v1748_v39 = vadd.f32 %v1742_v62, %v1693_v34 }
 0x3cd   : > { %v1823_v4 = vpop.f32.mrf.mxu1  ;;  %v1900_v5 = vpop.f32.mrf.mxu0 }
 0x3ce   : > { %v1909_v37 = vadd.f32 %v1900_v5, %v1828_v32  ;;  %v1830_v40 = vadd.f32 %v1823_v4, %v1747_v35  ;;  %v4495_v27 = vpop.permute.xlu1 %4494 }
 0x3cf   : > { %v1825_v11 = vpop.f32.mrf.mxu1  ;;  %v1902_v12 = vpop.f32.mrf.mxu0 }
 0x3d0   : > { %v1910_v41 = vadd.f32 %v1902_v12, %v1829_v36  ;;  %v1831_v45 = vadd.f32 %v1825_v11, %v1748_v39 }
 0x3d1   : > { %v1967_v22 = vpop.f32.mrf.mxu1  ;;  %v1904_v25 = vpop.f32.mrf.mxu0 }
 0x3d2   : > { %v1976_v42 = vadd.f32 %v1967_v22, %v1909_v37  ;;  %v1911_v46 = vadd.f32 %v1904_v25, %v1830_v40  ;;  %v2161_v22 = vpop.permute.xlu0 %2160 }
 0x3d3   : > { %v1969_v33 = vpop.f32.mrf.mxu1  ;;  %v1906_v38 = vpop.f32.mrf.mxu0 }
 0x3d4   : > { %v1977_v47 = vadd.f32 %v1969_v33, %v1910_v41  ;;  %v1912_v50 = vadd.f32 %v1906_v38, %v1831_v45 }
 0x3d5   : > { %v1971_v23 = vpop.f32.mrf.mxu1 }
 0x3d6   : > { %v1978_v51 = vadd.f32 %v1971_v23, %v1911_v46  ;;  %v4500_v25 = vpop.permute.xlu0 %4499 }
 0x3d7   : > { %v1973_v28 = vpop.f32.mrf.mxu1  ;;  %v4501_v38 = vunpack.i.l.bf16 %v4500_v25  ;;  %v4502_v23 = vunpack.i.h.bf16 %v4500_v25 }
 0x3d8   : > { %v2048_v43 = vpop.f32.mrf.mxu0  ;;  %v1979_v56 = vadd.f32 %v1973_v28, %v1912_v50 }
 0x3d9   : > { %v2057_v48 = vadd.f32 %v2048_v43, %v1976_v42  ;;  %v4497_v42 = vunpack.i.h.bf16 %v4495_v27  ;;  %v4496_v43 = vunpack.i.l.bf16 %v4495_v27 }
 0x3da   : > { %v2050_v49 = vpop.f32.mrf.mxu0 }
 0x3db   : > { %v2071_v52 = vadd.f32 %v2064_v44, %v2057_v48  ;;  %v2058_v53 = vadd.f32 %v2050_v49, %v1977_v47 }
 0x3dc   : > { %v2052_v54 = vpop.f32.mrf.mxu0 }
 0x3dd   : > { %v2075_v57 = vmax.f32 %v2071_v52, 0.0  ;;  %v2072_v58 = vadd.f32 %v2064_v44, %v2058_v53  ;;  %v2059_v59 = vadd.f32 %v2052_v54, %v1978_v51  ;;  %v4694_v53 = vld [vmem:[%s5715_s3 + $0x50] sm:$0xff]  }
 0x3de   : > { %v2054_v61 = vpop.f32.mrf.mxu0 }
 0x3df   : > { %v2076_v62 = vmax.f32 %v2072_v58, 0.0  ;;  %v2073_v63 = vadd.f32 %v2069_v20, %v2059_v59  ;;  %v2060_v1 = vadd.f32 %v2054_v61, %v1979_v56  ;;  %v5310_v3 = vadd.f32 %v2075_v57, %v5001_v17 }
 0x3e1   : > { %v5313_v4 = vadd.f32 %v2076_v62, %v5003_v18  ;;  %v2077_v5 = vmax.f32 %v2073_v63, 0.0  ;;  %v2074_v7 = vadd.f32 %v2069_v20, %v2060_v1 }
 0x3e3   : > { %v5316_v26 = vadd.f32 %v2077_v5, %v5005_v21  ;;  %v2078_v10 = vmax.f32 %v2074_v7, 0.0  ;;  %v4508_v11 = vpack.i.bf16 %v5313_v4, %v5310_v3 }
 0x3e5   : > { %v5321_v12 = vadd.f32 %v2078_v10, %v5009_v24  ;;  %4509 = vrot.lane.b32.xlu0 %v4508_v11, %s5765_s5  ;;  %4504 = vrot.lane.b32.xlu1 %v4508_v11, %s5761_s18  ;;  %v5327_v17 = vpack.c.bf16 %v5316_v26, %v5310_v3  ;;  %v4538_v24 = vpack.i.bf16 %v4816_v9, %v5313_v4 }
 0x3e6   : > { %v4548_v13 = vpack.i.bf16 %v5316_v26, %v5310_v3 }
 0x3e7   : > { %v4518_v18 = vpack.i.bf16 %v5321_v12, %v5316_v26  ;;  %v5336_v21 = vpack.c.bf16 %v5321_v12, %v5313_v4  ;;  %v4543_v15 = vpack.i.bf16 %v4816_v9, %v5321_v12 }
 0x3e9   : > { %2162 = vrot.lane.b32.xlu0 %v5327_v17, %s5764_s0  ;;  %4519 = vrot.lane.b32.xlu1 %v4518_v18, %s5765_s5 }
 0x3ed   : > { %4514 = vrot.lane.b32.xlu0 %v4518_v18, %s5761_s18  ;;  %2164 = vrot.lane.b32.xlu1 %v5336_v21, %s5764_s0 }
 0x3f1   : > { %4529 = vrot.lane.b32.xlu0 %v4518_v18, %s5762_s22  ;;  %4524 = vrot.lane.b32.xlu1 %v4508_v11, %s5762_s22  ;;  %v4695_v11 = vld [vmem:[%s5715_s3 + $0x48] sm:$0xff]  }
 0x3f5   : > { %4539 = vrot.lane.b32.xlu0 %v4538_v24, %s5763_s25  ;;  %4534 = vrot.lane.b32.xlu1 %v4816_v9, %s5762_s22 }
 0x3f9   : > { %4549 = vrot.lane.b32.xlu0 %v4548_v13, %s5763_s25  ;;  %4544 = vrot.lane.b32.xlu1 %v4543_v15, %s5763_s25 }
 0x3fd   : > { %4559 = vrot.lane.b32.xlu0 %v4543_v15, %s5766_s27  ;;  %4554 = vrot.lane.b32.xlu1 %v4538_v24, %s5766_s27 }
 0x401   : > { %4569 = vrot.lane.b32.xlu0 %v4538_v24, %s4822_s21  ;;  %4564 = vrot.lane.b32.xlu1 %v4548_v13, %s5766_s27 }
 0x405   : > { %2657 = vrot.lane.b32.xlu0 %v5336_v21, %s4823_s26  ;;  %2659 = vrot.lane.b32.xlu1 %v4814_v8, %s4823_s26 }
 0x409   : > { %2655 = vrot.lane.b32.xlu0 %v5327_v17, %s4823_s26  ;;  %4574 = vrot.lane.b32.xlu1 %v4543_v15, %s4822_s21 }
 0x40d   : > { %2798 = vperm.xlu0 %4311, %v4115_v16   ;;  %4579 = vrot.lane.b32.xlu1 %v4548_v13, %s4822_s21 }
 0x411   : > { %2803 = vperm.xlu1 %4402, %v4116_v19   ;;  %2891 = vrot.lane.b32.xlu0 %v4814_v8, %s5764_s0 }
 0x415   : > { %4589 = vrot.lane.b32.xlu0 %v4816_v9, %s5765_s5  ;;  %4584 = vrot.lane.b32.xlu1 %v4816_v9, %s5761_s18 }
 0x457   : > { %v4510_v29 = vpop.permute.xlu0 %4509  ;;  %v4505_v30 = vpop.permute.xlu1 %4504 }
 0x458   : > { %v4512_v32 = vunpack.i.h.bf16 %v4510_v29  ;;  %v4511_v33 = vunpack.i.l.bf16 %v4510_v29  ;;  %v4507_v39 = vunpack.i.h.bf16 %v4505_v30  ;;  %v4506_v40 = vunpack.i.l.bf16 %v4505_v30  ;;  %v4696_v29 = vld [vmem:[%s5715_s3 + $0x58] sm:$0xff]  }
 0x45a   : > { %v2280_v44 = vsel %vm809_vm7, %v4511_v33, %v4512_v32  ;;  %v2279_v50 = vsel %vm809_vm7, %v4501_v38, %v4511_v33  ;;  %v2135_v54 = vsel %vm658_vm2, %v4496_v43, %v4506_v40  ;;  %v2136_v56 = vsel %vm658_vm2, %v4506_v40, %v4507_v39  ;;  %v4697_v39 = vld [vmem:[%s5715_s3 + $0x60] sm:$0xff]  }
 0x45b   : > { %v2163_v34 = vpop.permute.xlu0 %2162  ;;  %v4520_v35 = vpop.permute.xlu1 %4519 }
 0x45c   : > { %v4522_v36 = vunpack.i.h.bf16 %v4520_v35  ;;  %v4521_v37 = vunpack.i.l.bf16 %v4520_v35  ;;  %v2166_v51 = vsel %vm690_vm9, %v2161_v22, %v2163_v34 }
 0x45e   : > { %v2282_v41 = vsel %vm809_vm7, %v4521_v37, %v4522_v36  ;;  %v2281_v47 = vsel %vm809_vm7, %v4502_v23, %v4521_v37 }
 0x45f   : > { %v4515_v45 = vpop.permute.xlu0 %4514  ;;  %v2165_v46 = vpop.permute.xlu1 %2164  ;;  %v4129_v52 = vpack.c.bf16 %v2282_v41, %v2280_v44  ;;  %v4132_v59 = vpack.c.bf16 %v2281_v47, %v2279_v50  ;;  %v4698_v50 = vld [vmem:[%s5715_s3 + $0x68] sm:$0xff]  }
 0x460   : > { %v4517_v48 = vunpack.i.h.bf16 %v4515_v45  ;;  %v4516_v28 = vunpack.i.l.bf16 %v4515_v45  ;;  %v2167_v49 = vsel %vm690_vm9, %v2163_v34, %v2165_v46 }
 0x461   : > { %2187 = vmatprep.subr.bf16.mxu1 %v2167_v49 }
 0x462   : > { %v2137_v57 = vsel %vm658_vm2, %v4497_v42, %v4516_v28  ;;  %v2138_v58 = vsel %vm658_vm2, %v4516_v28, %v4517_v48  ;;  %2188 = vmatpush1.bf16.msra.mxu1 %v2166_v51 }
 0x463   : > { %v4121_v20 = vpack.c.bf16 %v2138_v58, %v2136_v56  ;;  %v4124_v61 = vpack.c.bf16 %v2137_v57, %v2135_v54  ;;  %v4530_v62 = vpop.permute.xlu0 %4529  ;;  %4130 = vmatprep.subr.msk.bf16.mxu1 %vm5084_vm10, %v4129_v52  ;;  %v4525_v63 = vpop.permute.xlu1 %4524  ;;  %v4699_v58 = vld [vmem:[%s5715_s3 + $0x70] sm:$0xff]  }
 0x464   : > { %v4532_v1 = vunpack.i.h.bf16 %v4530_v62  ;;  %v4531_v5 = vunpack.i.l.bf16 %v4530_v62  ;;  %v4527_v7 = vunpack.i.h.bf16 %v4525_v63  ;;  %v4526_v10 = vunpack.i.l.bf16 %v4525_v63 }
 0x465   : > { %4118 = vmatmul.mubr.msk.bf16.vlgmr.msra.gmra.mxu1 %vm690_vm9, %v4694_v53  ;;  %4122 = vmatprep.subr.msk.bf16.mxu0 %vm5066_vm5, %v4121_v20 }
 0x466   : > { %v2363_v18 = vsel %vm891_vm12, %v4531_v5, %v4532_v1  ;;  %v2361_v24 = vsel %vm891_vm12, %v4526_v10, %v4527_v7  ;;  %4125 = vmatpush1.bf16.msk.msra.mxu0 %vm5070_vm6, %v4124_v61  ;;  %4133 = vmatpush1.bf16.msk.msra.mxu1 %vm5105_vm13, %v4132_v59 }
 0x467   : > { %v4137_v13 = vpack.c.bf16 %v2363_v18, %v2361_v24  ;;  %v4540_v15 = vpop.permute.xlu0 %4539  ;;  %2451 = vmatprep.subr.bf16.mxu1 %v5336_v21  ;;  %v4535_v16 = vpop.permute.xlu1 %4534  ;;  %2333 = vmatprep.mubr.bf16.mxu1 %v4813_v0 }
 0x468   : > { %v4537_v19 = vunpack.i.h.bf16 %v4535_v16  ;;  %v4536_v22 = vunpack.i.l.bf16 %v4535_v16  ;;  %v4542_v25 = vunpack.i.h.bf16 %v4540_v15  ;;  %v4541_v27 = vunpack.i.l.bf16 %v4540_v15  ;;  %v4701_v16 = vld [vmem:[%s5715_s3 + $0x80] sm:$0xff]  }
 0x469   : > { %4126 = vmatmul.mubr.msk.bf16.vlgmr.msra.gmra.mxu0 %vm690_vm9, %v4695_v11  ;;  %4138 = vmatprep.subr.msk.bf16.mxu0 %vm5066_vm5, %v4137_v13 }
 0x46a   : > { %v2362_v30 = vsel %vm891_vm12, %v4537_v19, %v4531_v5  ;;  %v2360_v21 = vsel %vm891_vm12, %v4536_v22, %v4526_v10  ;;  %2414 = vmatprep.mubr.bf16.mxu0 %v4813_v0  ;;  %v2499_v23 = vsel %vm1030_vm14, %v4541_v27, %v4542_v25  ;;  %v4700_v5 = vld [vmem:[%s5715_s3 + $0x78] sm:$0xff]  }
 0x46b   : > { %v4140_v32 = vpack.c.bf16 %v2362_v30, %v2360_v21  ;;  %v4550_v33 = vpop.permute.xlu0 %4549  ;;  %v4545_v34 = vpop.permute.xlu1 %4544 }
 0x46c   : > { %v4552_v35 = vunpack.i.h.bf16 %v4550_v33  ;;  %v4551_v36 = vunpack.i.l.bf16 %v4550_v33  ;;  %v4547_v37 = vunpack.i.h.bf16 %v4545_v34  ;;  %v4546_v38 = vunpack.i.l.bf16 %v4545_v34  ;;  %v4702_v34 = vld [vmem:[%s5715_s3 + $0x88] sm:$0xff]  }
 0x46d   : > { %4134 = vmatmul.mubr.msk.bf16.vlgmr.msra.gmra.mxu1 %vm690_vm9, %v4696_v29  ;;  %4141 = vmatpush1.bf16.msk.msra.mxu0 %vm5070_vm6, %v4140_v32 }
 0x46e   : > { %v2498_v40 = vsel %vm1030_vm14, %v4551_v36, %v4541_v27  ;;  %v2500_v41 = vsel %vm1030_vm14, %v4552_v35, %v4546_v38  ;;  %v2501_v42 = vsel %vm1030_vm14, %v4546_v38, %v4547_v37  ;;  %2452 = vmatpush1.bf16.msra.mxu1 %v5327_v17  ;;  %2469 = vmatprep.mubr.bf16.mxu1 %v4813_v0 }
 0x46f   : > { %v4147_v43 = vpack.c.bf16 %v2501_v42, %v2499_v23  ;;  %v4150_v44 = vpack.c.bf16 %v2500_v41, %v2498_v40  ;;  %v4560_v45 = vpop.permute.xlu0 %4559  ;;  %v4555_v46 = vpop.permute.xlu1 %4554 }
 0x470   : > { %v4562_v47 = vunpack.i.h.bf16 %v4560_v45  ;;  %v4561_v48 = vunpack.i.l.bf16 %v4560_v45  ;;  %v4557_v28 = vunpack.i.h.bf16 %v4555_v46  ;;  %v4556_v49 = vunpack.i.l.bf16 %v4555_v46 }
 0x471   : > { %4142 = vmatmul.mubr.msk.bf16.vlgmr.msra.gmra.mxu0 %vm690_vm9, %v4697_v39  ;;  %4148 = vmatprep.subr.msk.bf16.mxu0 %vm5084_vm10, %v4147_v43 }
 0x472   : > { %v2582_v17 = vsel %vm1112_vm15, %v4561_v48, %v4562_v47  ;;  %v2580_v51 = vsel %vm1112_vm15, %v4556_v49, %v4557_v28  ;;  %4151 = vmatpush1.bf16.msk.msra.mxu0 %vm5105_vm13, %v4150_v44  ;;  %2552 = vmatprep.mubr.bf16.mxu0 %v4813_v0 }
 0x473   : > { %v4155_v52 = vpack.c.bf16 %v2582_v17, %v2580_v51  ;;  %v4570_v53 = vpop.permute.xlu0 %4569  ;;  %v4565_v54 = vpop.permute.xlu1 %4564 }
 0x474   : > { %v4567_v56 = vunpack.i.h.bf16 %v4565_v54  ;;  %v4566_v57 = vunpack.i.l.bf16 %v4565_v54  ;;  %v4572_v7 = vunpack.i.h.bf16 %v4570_v53  ;;  %v4571_v10 = vunpack.i.l.bf16 %v4570_v53 }
 0x475   : > { %4144 = vmatmul.mubr.msk.bf16.vlgmr.msra.gmra.mxu1 %vm690_vm9, %v4698_v50  ;;  %4156 = vmatprep.subr.msk.bf16.mxu1 %vm5066_vm5, %v4155_v52 }
 0x476   : > { %v2581_v59 = vsel %vm1112_vm15, %v4567_v56, %v4561_v48  ;;  %v2579_v20 = vsel %vm1112_vm15, %v4566_v57, %v4556_v49  ;;  %2633 = vmatprep.mubr.bf16.mxu1 %v4813_v0  ;;  %v2728_v19 = vsel %vm1262_vm4, %v4571_v10, %v4572_v7 }
 0x477   : > { %v4158_v61 = vpack.c.bf16 %v2581_v59, %v2579_v20  ;;  %v2658_v62 = vpop.permute.xlu0 %2657  ;;  %v2660_v63 = vpop.permute.xlu1 %2659 }
 0x478   : > { %v2662_v1 = vsel %vm1195_vm3, %v2658_v62, %v2660_v63 }
 0x479   : > { %4152 = vmatmul.mubr.msk.bf16.vlgmr.msra.gmra.mxu0 %vm690_vm9, %v4699_v58  ;;  %4159 = vmatpush1.bf16.msk.msra.mxu1 %vm5070_vm6, %v4158_v61 }
 0x47a   : > { %2682 = vmatprep.subr.bf16.mxu0 %v2662_v1  ;;  %2700 = vmatprep.mubr.bf16.mxu0 %v4813_v0 }
 0x47b   : > { %v2656_v11 = vpop.permute.xlu0 %2655  ;;  %v4575_v18 = vpop.permute.xlu1 %4574 }
 0x47c   : > { %v2661_v24 = vsel %vm1195_vm3, %v2656_v11, %v2658_v62  ;;  %v4577_v13 = vunpack.i.h.bf16 %v4575_v18  ;;  %v4576_v15 = vunpack.i.l.bf16 %v4575_v18 }
 0x47d   : > { %4160 = vmatmul.mubr.msk.bf16.vlgmr.msra.gmra.mxu1 %vm690_vm9, %v4700_v5  ;;  %2683 = vmatpush1.bf16.msra.mxu0 %v2661_v24 }
 0x47e   : > { %v2730_v22 = vsel %vm1262_vm4, %v4576_v15, %v4577_v13  ;;  %2781 = vmatprep.mubr.bf16.mxu1 %v4813_v0 }
 0x47f   : > { %v4165_v25 = vpack.c.bf16 %v2730_v22, %v2728_v19  ;;  %v4580_v27 = vpop.permute.xlu1 %4579 }
 0x480   : > { %v4582_v29 = vunpack.i.h.bf16 %v4580_v27  ;;  %v4581_v30 = vunpack.i.l.bf16 %v4580_v27 }
 0x481   : > { %4162 = vmatmul.mubr.msk.bf16.vlgmr.msra.gmra.mxu0 %vm690_vm9, %v4701_v16  ;;  %4166 = vmatprep.subr.msk.bf16.mxu1 %vm5084_vm10, %v4165_v25 }
 0x482   : > { %v2727_v21 = vsel %vm1262_vm4, %v4581_v30, %v4571_v10  ;;  %v2729_v32 = vsel %vm1262_vm4, %v4582_v29, %v4576_v15  ;;  %2936 = vmatprep.mubr.bf16.mxu0 %v4813_v0 }
 0x483   : > { %v4168_v33 = vpack.c.bf16 %v2729_v32, %v2727_v21 }
 0x485   : > { %4169 = vmatpush1.bf16.msk.msra.mxu1 %vm5105_vm13, %v4168_v33 }
 0x488   : > { %4170 = vmatmul.mubr.msk.bf16.vlgmr.msra.gmra.mxu1 %vm690_vm9, %v4702_v34 }
 0x489   : > { %2987 = vmatprep.mubr.bf16.mxu1 %v4813_v0 }
 0x525   : > { %v2207_v35 = vpop.f32.mrf.mxu1 }
 0x527   : > { %v2209_v36 = vpop.f32.mrf.mxu1 }
 0x529   : > { %v2211_v37 = vpop.f32.mrf.mxu1  ;;  %v2258_v38 = vpop.f32.mrf.mxu0 }
 0x52a   : > { %v2259_v52 = vadd.f32 %v2258_v38, %v2207_v35  ;;  %v2799_v38 = vpop.permute.xlu0 %2798 }
 0x52b   : > { %v2213_v23 = vpop.f32.mrf.mxu1  ;;  %v2260_v39 = vpop.f32.mrf.mxu0 }
 0x52c   : > { %v2261_v56 = vadd.f32 %v2260_v39, %v2209_v36 }
 0x52d   : > { %v2262_v40 = vpop.f32.mrf.mxu0  ;;  %v2335_v41 = vpop.f32.mrf.mxu1 }
 0x52e   : > { %v2344_v57 = vadd.f32 %v2335_v41, %v2259_v52  ;;  %v2263_v20 = vadd.f32 %v2262_v40, %v2211_v37 }
 0x52f   : > { %v2264_v42 = vpop.f32.mrf.mxu0  ;;  %v2337_v43 = vpop.f32.mrf.mxu1 }
 0x530   : > { %v2345_v61 = vadd.f32 %v2337_v43, %v2261_v56  ;;  %v2265_v5 = vadd.f32 %v2264_v42, %v2213_v23 }
 0x531   : > { %v2339_v44 = vpop.f32.mrf.mxu1  ;;  %v2416_v45 = vpop.f32.mrf.mxu0 }
 0x532   : > { %v2425_v62 = vadd.f32 %v2416_v45, %v2344_v57  ;;  %v2346_v7 = vadd.f32 %v2339_v44, %v2263_v20 }
 0x533   : > { %v2341_v46 = vpop.f32.mrf.mxu1  ;;  %v2418_v47 = vpop.f32.mrf.mxu0 }
 0x534   : > { %v2426_v10 = vadd.f32 %v2418_v47, %v2345_v61  ;;  %v2347_v13 = vadd.f32 %v2341_v46, %v2265_v5 }
 0x535   : > { %v2420_v48 = vpop.f32.mrf.mxu0  ;;  %v2471_v28 = vpop.f32.mrf.mxu1 }
 0x536   : > { %v2480_v11 = vadd.f32 %v2471_v28, %v2425_v62  ;;  %v2427_v15 = vadd.f32 %v2420_v48, %v2346_v7 }
 0x537   : > { %v2422_v49 = vpop.f32.mrf.mxu0  ;;  %v2473_v50 = vpop.f32.mrf.mxu1 }
 0x538   : > { %v2481_v16 = vadd.f32 %v2473_v50, %v2426_v10  ;;  %v2428_v25 = vadd.f32 %v2422_v49, %v2347_v13  ;;  %v3553_v10 = vld [vmem:[%s5720_s8] sm:$0xff]  ;;  %v3623_v13 = vld [vmem:[%s5722_s10 + $0x8] sm:$0xff] }
 0x539   : > { %v2475_v17 = vpop.f32.mrf.mxu1  ;;  %v2554_v51 = vpop.f32.mrf.mxu0 }
 0x53a   : > { %v2563_v19 = vadd.f32 %v2554_v51, %v2480_v11  ;;  %v2482_v27 = vadd.f32 %v2475_v17, %v2427_v15  ;;  %v2804_v17 = vpop.permute.xlu1 %2803  ;;  %v3622_v11 = vld [vmem:[%s5722_s10] sm:$0xff]  ;;  %v3841_v15 = vld [vmem:[%s5725_s13 + $0x10] sm:$0xff] }
 0x53b   : > { %v2477_v53 = vpop.f32.mrf.mxu1  ;;  %v2556_v54 = vpop.f32.mrf.mxu0 }
 0x53c   : > { %v2564_v29 = vadd.f32 %v2556_v54, %v2481_v16  ;;  %v2483_v33 = vadd.f32 %v2477_v53, %v2428_v25  ;;  %v3840_v16 = vld [vmem:[%s5725_s13 + $0x8] sm:$0xff] }
 0x53d   : > { %v2558_v58 = vpop.f32.mrf.mxu0  ;;  %v2635_v59 = vpop.f32.mrf.mxu1 }
 0x53e   : > { %v2644_v30 = vadd.f32 %v2635_v59, %v2563_v19  ;;  %v2565_v34 = vadd.f32 %v2558_v58, %v2482_v27  ;;  %v3842_v19 = vld [vmem:[%s5725_s13 + $0x18] sm:$0xff]  ;;  %v4585_v27 = vpop.permute.xlu1 %4584 }
 0x53f   : > { %v2560_v63 = vpop.f32.mrf.mxu0  ;;  %v2637_v1 = vpop.f32.mrf.mxu1 }
 0x540   : > { %v2645_v35 = vadd.f32 %v2637_v1, %v2564_v29  ;;  %v2566_v23 = vadd.f32 %v2560_v63, %v2483_v33 }
 0x541   : > { %v2702_v18 = vpop.f32.mrf.mxu0  ;;  %v2639_v24 = vpop.f32.mrf.mxu1 }
 0x542   : > { %v2711_v36 = vadd.f32 %v2702_v18, %v2644_v30  ;;  %v2646_v39 = vadd.f32 %v2639_v24, %v2565_v34  ;;  %v3554_v18 = vld [vmem:[%s5720_s8 + $0x8] sm:$0xff]  ;;  %v3839_v24 = vld [vmem:[%s5725_s13] sm:$0xff] }
 0x543   : > { %v2704_v22 = vpop.f32.mrf.mxu0  ;;  %v2641_v21 = vpop.f32.mrf.mxu1 }
 0x544   : > { %v2712_v40 = vadd.f32 %v2704_v22, %v2645_v35  ;;  %v2647_v44 = vadd.f32 %v2641_v21, %v2566_v23  ;;  %v2892_v22 = vpop.permute.xlu0 %2891 }
 0x545   : > { %v2706_v32 = vpop.f32.mrf.mxu0 }
 0x546   : > { %v2713_v45 = vadd.f32 %v2706_v32, %v2646_v39 }
 0x547   : > { %v2708_v42 = vpop.f32.mrf.mxu0 }
 0x548   : > { %v2783_v37 = vpop.f32.mrf.mxu1  ;;  %v2714_v28 = vadd.f32 %v2708_v42, %v2647_v44  ;;  %v4590_v25 = vpop.permute.xlu0 %4589  ;;  %v4586_v42 = vunpack.i.l.bf16 %v4585_v27 }
 0x549   : > { %v2792_v41 = vadd.f32 %v2783_v37, %v2711_v36  ;;  %v4591_v37 = vunpack.i.l.bf16 %v4590_v25 }
 0x54a   : > { %v2785_v43 = vpop.f32.mrf.mxu1 }
 0x54b   : > { %v2806_v46 = vadd.f32 %v2799_v38, %v2792_v41  ;;  %v2793_v47 = vadd.f32 %v2785_v43, %v2712_v40  ;;  %v4587_v41 = vunpack.i.h.bf16 %v4585_v27 }
 0x54c   : > { %v2787_v48 = vpop.f32.mrf.mxu1 }
 0x54d   : > { %v2807_v49 = vadd.f32 %v2799_v38, %v2793_v47  ;;  %v2794_v50 = vadd.f32 %v2787_v48, %v2713_v45  ;;  %v2810_v52 = vmax.f32 %v2806_v46, 0.0  ;;  %v4592_v38 = vunpack.i.h.bf16 %v4590_v25  ;;  %v4705_v25 = vld [vmem:[#allocation3 + $0x58] sm:$0xff]  }
 0x54e   : > { %v2789_v51 = vpop.f32.mrf.mxu1 }
 0x54f   : > { %v2811_v53 = vmax.f32 %v2807_v49, 0.0  ;;  %v2808_v54 = vadd.f32 %v2804_v17, %v2794_v50  ;;  %v2795_v56 = vadd.f32 %v2789_v51, %v2714_v28  ;;  %v4703_v51 = vld [vmem:[#allocation3 + $0x50] sm:$0xff]  }
 0x551   : > { %v2812_v57 = vmax.f32 %v2808_v54, 0.0  ;;  %v2809_v58 = vadd.f32 %v2804_v17, %v2795_v56  ;;  %v4598_v59 = vpack.i.bf16 %v2811_v53, %v2810_v52  ;;  %v4628_v1 = vpack.i.bf16 %v4816_v9, %v2811_v53 }
 0x553   : > { %v2813_v20 = vmax.f32 %v2809_v58, 0.0  ;;  %4599 = vrot.lane.b32.xlu0 %v4598_v59, %s5765_s5  ;;  %4594 = vrot.lane.b32.xlu1 %v4598_v59, %s5761_s18  ;;  %v5479_v61 = vpack.c.bf16 %v2812_v57, %v2810_v52  ;;  %v4638_v5 = vpack.i.bf16 %v2812_v57, %v2810_v52 }
 0x555   : > { %v4608_v62 = vpack.i.bf16 %v2813_v20, %v2812_v57  ;;  %v5484_v63 = vpack.c.bf16 %v2813_v20, %v2811_v53  ;;  %v4633_v7 = vpack.i.bf16 %v4816_v9, %v2813_v20 }
 0x557   : > { %2893 = vrot.lane.b32.xlu0 %v5479_v61, %s5764_s0  ;;  %4609 = vrot.lane.b32.xlu1 %v4608_v62, %s5765_s5  ;;  %s4246_s5 = sshll.u32 %s4922_s17, 10 }
 0x55b   : > { %4604 = vrot.lane.b32.xlu0 %v4608_v62, %s5761_s18  ;;  %2895 = vrot.lane.b32.xlu1 %v5484_v63, %s5764_s0 }
 0x55f   : > { %4619 = vrot.lane.b32.xlu0 %v4608_v62, %s5762_s22  ;;  %4614 = vrot.lane.b32.xlu1 %v4598_v59, %s5762_s22 }
 0x563   : > { %4629 = vrot.lane.b32.xlu0 %v4628_v1, %s5763_s25  ;;  %4624 = vrot.lane.b32.xlu1 %v4816_v9, %s5762_s22  ;;  %v4171_v9 = vld [vmem:[%s5718_s6 + $0x10] sm:$0xff] }
 0x567   : > { %4639 = vrot.lane.b32.xlu0 %v4638_v5, %s5763_s25  ;;  %4634 = vrot.lane.b32.xlu1 %v4633_v7, %s5763_s25 }
 0x56b   : > { %4649 = vrot.lane.b32.xlu0 %v4633_v7, %s5766_s27  ;;  %4644 = vrot.lane.b32.xlu1 %v4628_v1, %s5766_s27 }
 0x56f   : > { %4659 = vrot.lane.b32.xlu0 %v4628_v1, %s4822_s21  ;;  %4654 = vrot.lane.b32.xlu1 %v4638_v5, %s5766_s27 }
 0x573   : > { %3388 = vrot.lane.b32.xlu0 %v5484_v63, %s4823_s26  ;;  %3390 = vrot.lane.b32.xlu1 %v4814_v8, %s4823_s26  ;;  %v4172_v8 = vld [vmem:[%s5718_s6 + $0x18] sm:$0xff] }
 0x577   : > { %3386 = vrot.lane.b32.xlu0 %v5479_v61, %s4823_s26  ;;  %4664 = vrot.lane.b32.xlu1 %v4633_v7, %s4822_s21  ;;  %s5666_s26 = scalar_lea.hbm %s5726_s14, %s4246_s5 }
 0x57b   : > { %3529 = vperm.xlu0 %4311, %v4171_v9   ;;  %4669 = vrot.lane.b32.xlu1 %v4638_v5, %s4822_s21  ;;  %s473_s21 = sand.u32 1, %s4800_s30  }
 0x57c   : > { %s3981_s18 = sshll.u32 %s473_s21, 6  ;;  %s5671_s28 = scalar_lea.sflag [#allocation5], %s473_s21 }
 0x57d   : > { %s5650_s22 = scalar_lea.vmem [#allocation6], %s3981_s18  ;;  %s4750_s18 = scalar_lea.vmem %s4749_s2, 2048 }
 0x57e   : > { %s3901_s25 = sshll.u32 %s5650_s22, 4  ;;  %s5660_s25 = int_to_ptr.vmem [resolvable:$true] %s3901_s25 }
 0x57f   : > { %3557 = vperm.xlu0 %4311, %v3553_v10   ;;  %3534 = vperm.xlu1 %4402, %v4172_v8   ;;  %v4704_v10 = vld [vmem:[#allocation3 + $0x48] sm:$0xff]   ;;  %s4744_s17 = scalar_lea.vmem %s5660_s25, 1024  ;;  %p4751_p11 = scmp.lt.s32.totalorder %s5660_s25, %s4749_s2 }
 0x580   : > { %p4745_p6 = scmp.ne.s32.totalorder %s5660_s25, %s4744_s17  ;;  %p4752_p12 = scmp.lt.s32.totalorder %s4750_s18, %s4744_s17 }
 0x582   : > { %p4746_p9 = pnand %p4745_p6, %p4939_p5  ;;  %p4753_p13 = por %p4752_p12, %p4751_p11 }
 0x583   : > { %3626 = vperm.xlu0 %4311, %v3622_v11   ;;  %3562 = vperm.xlu1 %4402, %v3554_v18  }
 0x584   : > { %p4747_p10 = pneg %p4746_p9 }
 0x586   : > { %p4754_p0 = pnand %p4753_p13, %p4747_p10 }
 0x587   : > { %3845 = vperm.xlu0 %4311, %v3839_v24   ;;  %3631 = vperm.xlu1 %4402, %v3623_v13  }
 0x58b   : > { %3855 = vperm.xlu0 %4311, %v3841_v15   ;;  %3850 = vperm.xlu1 %4402, %v3840_v16  }
 0x58f   : > { %3860 = vperm.xlu1 %4402, %v3842_v19  }
 0x5c5   : > { %v4600_v29 = vpop.permute.xlu0 %4599  ;;  %v4595_v30 = vpop.permute.xlu1 %4594 }
 0x5c6   : > { %v4602_v21 = vunpack.i.h.bf16 %v4600_v29  ;;  %v4601_v32 = vunpack.i.l.bf16 %v4600_v29  ;;  %v4597_v23 = vunpack.i.h.bf16 %v4595_v30  ;;  %v4596_v39 = vunpack.i.l.bf16 %v4595_v30 }
 0x5c8   : > { %v3011_v43 = vsel %vm809_vm7, %v4601_v32, %v4602_v21  ;;  %v3010_v49 = vsel %vm809_vm7, %v4591_v37, %v4601_v32  ;;  %v2866_v52 = vsel %vm658_vm2, %v4586_v42, %v4596_v39  ;;  %v2867_v53 = vsel %vm658_vm2, %v4596_v39, %v4597_v23  ;;  %v4706_v37 = vld [vmem:[#allocation3 + $0x60] sm:$0xff]  }
 0x5c9   : > { %v2894_v33 = vpop.permute.xlu0 %2893  ;;  %v4610_v34 = vpop.permute.xlu1 %4609 }
 0x5ca   : > { %v4612_v35 = vunpack.i.h.bf16 %v4610_v34  ;;  %v4611_v36 = vunpack.i.l.bf16 %v4610_v34  ;;  %v2897_v50 = vsel %vm690_vm9, %v2892_v22, %v2894_v33 }
 0x5cc   : > { %v3013_v40 = vsel %vm809_vm7, %v4611_v36, %v4612_v35  ;;  %v3012_v46 = vsel %vm809_vm7, %v4592_v38, %v4611_v36 }
 0x5cd   : > { %v4605_v44 = vpop.permute.xlu0 %4604  ;;  %v2896_v45 = vpop.permute.xlu1 %2895  ;;  %v4185_v17 = vpack.c.bf16 %v3013_v40, %v3011_v43  ;;  %v4188_v57 = vpack.c.bf16 %v3012_v46, %v3010_v49 }
 0x5ce   : > { %v4607_v47 = vunpack.i.h.bf16 %v4605_v44  ;;  %v4606_v48 = vunpack.i.l.bf16 %v4605_v44  ;;  %v2898_v28 = vsel %vm690_vm9, %v2894_v33, %v2896_v45 }
 0x5cf   : > { %2918 = vmatprep.subr.bf16.mxu0 %v2898_v28 }
 0x5d0   : > { %v2868_v54 = vsel %vm658_vm2, %v4587_v41, %v4606_v48  ;;  %v2869_v56 = vsel %vm658_vm2, %v4606_v48, %v4607_v47  ;;  %2919 = vmatpush1.bf16.msra.mxu0 %v2897_v50  ;;  %v4707_v48 = vld [vmem:[#allocation3 + $0x68] sm:$0xff]  }
 0x5d1   : > { %v4177_v58 = vpack.c.bf16 %v2869_v56, %v2867_v53  ;;  %v4180_v59 = vpack.c.bf16 %v2868_v54, %v2866_v52  ;;  %v4620_v20 = vpop.permute.xlu0 %4619  ;;  %4186 = vmatprep.subr.msk.bf16.mxu0 %vm5084_vm10, %v4185_v17  ;;  %v4615_v62 = vpop.permute.xlu1 %4614  ;;  %v4708_v53 = vld [vmem:[#allocation3 + $0x70] sm:$0xff]  }
 0x5d2   : > { %v4622_v1 = vunpack.i.h.bf16 %v4620_v20  ;;  %v4621_v5 = vunpack.i.l.bf16 %v4620_v20  ;;  %v4617_v7 = vunpack.i.h.bf16 %v4615_v62  ;;  %v4616_v9 = vunpack.i.l.bf16 %v4615_v62  ;;  %v4709_v62 = vld [vmem:[#allocation3 + $0x78] sm:$0xff]  }
 0x5d3   : > { %4174 = vmatmul.mubr.msk.bf16.vlgmr.msra.gmra.mxu0 %vm690_vm9, %v4703_v51  ;;  %4178 = vmatprep.subr.msk.bf16.mxu1 %vm5066_vm5, %v4177_v58 }
 0x5d4   : > { %v3094_v8 = vsel %vm891_vm12, %v4621_v5, %v4622_v1  ;;  %v3092_v11 = vsel %vm891_vm12, %v4616_v9, %v4617_v7  ;;  %4181 = vmatpush1.bf16.msk.msra.mxu1 %vm5070_vm6, %v4180_v59  ;;  %4189 = vmatpush1.bf16.msk.msra.mxu0 %vm5105_vm13, %v4188_v57 }
 0x5d5   : > { %v4193_v18 = vpack.c.bf16 %v3094_v8, %v3092_v11  ;;  %v4630_v24 = vpop.permute.xlu0 %4629  ;;  %3182 = vmatprep.subr.bf16.mxu0 %v5484_v63  ;;  %v4625_v13 = vpop.permute.xlu1 %4624  ;;  %3064 = vmatprep.mubr.bf16.mxu0 %v4813_v0  ;;  %v4710_v11 = vld [vmem:[#allocation3 + $0x80] sm:$0xff]  }
 0x5d6   : > { %v4627_v15 = vunpack.i.h.bf16 %v4625_v13  ;;  %v4626_v16 = vunpack.i.l.bf16 %v4625_v13  ;;  %v4632_v19 = vunpack.i.h.bf16 %v4630_v24  ;;  %v4631_v22 = vunpack.i.l.bf16 %v4630_v24 }
 0x5d7   : > { %4182 = vmatmul.mubr.msk.bf16.vlgmr.msra.gmra.mxu1 %vm690_vm9, %v4704_v10  ;;  %4194 = vmatprep.subr.msk.bf16.mxu1 %vm5066_vm5, %v4193_v18 }
 0x5d8   : > { %v3093_v27 = vsel %vm891_vm12, %v4627_v15, %v4621_v5  ;;  %v3091_v29 = vsel %vm891_vm12, %v4626_v16, %v4616_v9  ;;  %3145 = vmatprep.mubr.bf16.mxu1 %v4813_v0  ;;  %v3230_v36 = vsel %vm1030_vm14, %v4631_v22, %v4632_v19 }
 0x5d9   : > { %v4196_v63 = vpack.c.bf16 %v3093_v27, %v3091_v29  ;;  %v4640_v30 = vpop.permute.xlu0 %4639  ;;  %v4635_v21 = vpop.permute.xlu1 %4634  ;;  %v4711_v27 = vld [vmem:[#allocation3 + $0x88] sm:$0xff]  }
 0x5da   : > { %v4642_v32 = vunpack.i.h.bf16 %v4640_v30  ;;  %v4641_v33 = vunpack.i.l.bf16 %v4640_v30  ;;  %v4637_v34 = vunpack.i.h.bf16 %v4635_v21  ;;  %v4636_v35 = vunpack.i.l.bf16 %v4635_v21 }
 0x5db   : > { %4190 = vmatmul.mubr.msk.bf16.vlgmr.msra.gmra.mxu0 %vm690_vm9, %v4705_v25  ;;  %4197 = vmatpush1.bf16.msk.msra.mxu1 %vm5070_vm6, %v4196_v63 }
 0x5dc   : > { %v3229_v38 = vsel %vm1030_vm14, %v4641_v33, %v4631_v22  ;;  %v3231_v23 = vsel %vm1030_vm14, %v4642_v32, %v4636_v35  ;;  %v3232_v39 = vsel %vm1030_vm14, %v4636_v35, %v4637_v34  ;;  %3183 = vmatpush1.bf16.msra.mxu0 %v5479_v61  ;;  %3200 = vmatprep.mubr.bf16.mxu0 %v4813_v0 }
 0x5dd   : > { %v4203_v40 = vpack.c.bf16 %v3232_v39, %v3230_v36  ;;  %v4206_v41 = vpack.c.bf16 %v3231_v23, %v3229_v38  ;;  %v4650_v42 = vpop.permute.xlu0 %4649  ;;  %v4645_v43 = vpop.permute.xlu1 %4644 }
 0x5de   : > { %v4652_v44 = vunpack.i.h.bf16 %v4650_v42  ;;  %v4651_v45 = vunpack.i.l.bf16 %v4650_v42  ;;  %v4647_v46 = vunpack.i.h.bf16 %v4645_v43  ;;  %v4646_v47 = vunpack.i.l.bf16 %v4645_v43 }
 0x5df   : > { %4198 = vmatmul.mubr.msk.bf16.vlgmr.msra.gmra.mxu1 %vm690_vm9, %v4706_v37  ;;  %4204 = vmatprep.subr.msk.bf16.mxu1 %vm5084_vm10, %v4203_v40 }
 0x5e0   : > { %v3313_v28 = vsel %vm1112_vm15, %v4651_v45, %v4652_v44  ;;  %v3311_v61 = vsel %vm1112_vm15, %v4646_v47, %v4647_v46  ;;  %4207 = vmatpush1.bf16.msk.msra.mxu1 %vm5105_vm13, %v4206_v41  ;;  %3283 = vmatprep.mubr.bf16.mxu1 %v4813_v0 }
 0x5e1   : > { %v4211_v49 = vpack.c.bf16 %v3313_v28, %v3311_v61  ;;  %v4660_v50 = vpop.permute.xlu0 %4659  ;;  %v4655_v17 = vpop.permute.xlu1 %4654 }
 0x5e2   : > { %v4657_v51 = vunpack.i.h.bf16 %v4655_v17  ;;  %v4656_v52 = vunpack.i.l.bf16 %v4655_v17  ;;  %v4662_v55 = vunpack.i.h.bf16 %v4660_v50  ;;  %v4661_v1 = vunpack.i.l.bf16 %v4660_v50 }
 0x5e3   : > { %4200 = vmatmul.mubr.msk.bf16.vlgmr.msra.gmra.mxu0 %vm690_vm9, %v4707_v48  ;;  %4212 = vmatprep.subr.msk.bf16.mxu0 %vm5066_vm5, %v4211_v49 }
 0x5e4   : > { %v3312_v54 = vsel %vm1112_vm15, %v4657_v51, %v4651_v45  ;;  %v3310_v56 = vsel %vm1112_vm15, %v4656_v52, %v4646_v47  ;;  %3364 = vmatprep.mubr.bf16.mxu0 %v4813_v0  ;;  %v3459_v18 = vsel %vm1262_vm4, %v4661_v1, %v4662_v55 }
 0x5e5   : > { %v4214_v57 = vpack.c.bf16 %v3312_v54, %v3310_v56  ;;  %v3389_v58 = vpop.permute.xlu0 %3388  ;;  %v3391_v59 = vpop.permute.xlu1 %3390 }
 0x5e6   : > { %v3393_v20 = vsel %vm1195_vm3, %v3389_v58, %v3391_v59 }
 0x5e7   : > { %4208 = vmatmul.mubr.msk.bf16.vlgmr.msra.gmra.mxu1 %vm690_vm9, %v4708_v53  ;;  %4215 = vmatpush1.bf16.msk.msra.mxu0 %vm5070_vm6, %v4214_v57 }
 0x5e8   : > { %3413 = vmatprep.subr.bf16.mxu1 %v3393_v20  ;;  %3431 = vmatprep.mubr.bf16.mxu1 %v4813_v0 }
 0x5e9   : > { %v3387_v5 = vpop.permute.xlu0 %3386  ;;  %v4665_v7 = vpop.permute.xlu1 %4664 }
 0x5ea   : > { %v3392_v9 = vsel %vm1195_vm3, %v3387_v5, %v3389_v58  ;;  %v4667_v10 = vunpack.i.h.bf16 %v4665_v7  ;;  %v4666_v8 = vunpack.i.l.bf16 %v4665_v7 }
 0x5eb   : > { %4216 = vmatmul.mubr.msk.bf16.vlgmr.msra.gmra.mxu0 %vm690_vm9, %v4709_v62  ;;  %3414 = vmatpush1.bf16.msra.mxu1 %v3392_v9 }
 0x5ec   : > { %v3461_v60 = vsel %vm1262_vm4, %v4666_v8, %v4667_v10  ;;  %3512 = vmatprep.mubr.bf16.mxu0 %v4813_v0 }
 0x5ed   : > { %v4221_v24 = vpack.c.bf16 %v3461_v60, %v3459_v18  ;;  %v4670_v13 = vpop.permute.xlu1 %4669 }
 0x5ee   : > { %v4672_v15 = vunpack.i.h.bf16 %v4670_v13  ;;  %v4671_v16 = vunpack.i.l.bf16 %v4670_v13 }
 0x5ef   : > { %4218 = vmatmul.mubr.msk.bf16.vlgmr.msra.gmra.mxu1 %vm690_vm9, %v4710_v11  ;;  %4222 = vmatprep.subr.msk.bf16.mxu0 %vm5084_vm10, %v4221_v24 }
 0x5f0   : > { %v3458_v19 = vsel %vm1262_vm4, %v4671_v16, %v4661_v1  ;;  %v3460_v22 = vsel %vm1262_vm4, %v4672_v15, %v4666_v8  ;;  %3605 = vmatprep.mubr.bf16.mxu1 %v4813_v0 }
 0x5f1   : > { %v4224_v25 = vpack.c.bf16 %v3460_v22, %v3458_v19 }
 0x5f3   : > { %4225 = vmatpush1.bf16.msk.msra.mxu0 %vm5105_vm13, %v4224_v25 }
 0x5f4   : > { %4230 = vmatprep.subr.msk.bf16.mxu0 %vm550_vm0, %v4976_v2 }
 0x5f6   : > { %4226 = vmatmul.mubr.msk.bf16.vlgmr.msra.gmra.mxu0 %vm690_vm9, %v4711_v27  ;;  %v3530_v60 = vpop.permute.xlu0 %3529 }
 0x5f7   : > { %3657 = vmatpush1.bf16.msra.mxu0 %v4987_v6  ;;  %3674 = vmatprep.mubr.bf16.mxu0 %v4813_v0 }
 0x5fa   : > { %v3535_v16 = vpop.permute.xlu1 %3534 }
 0x5fe   : > { %4231 = vmatmul.mubr.msk.bf16.vlgmr.msra.gmra.mxu0 %vm546_vm1, %v4712_v14 }
 0x5ff   : > { %3818 = vmatprep.mubr.bf16.mxu0 %v4813_v0 }
 0x693   : > { %v2938_v29 = vpop.f32.mrf.mxu0 }
 0x695   : > { %v2940_v31 = vpop.f32.mrf.mxu0 }
 0x697   : > { %v2942_v63 = vpop.f32.mrf.mxu0  ;;  %v2989_v30 = vpop.f32.mrf.mxu1 }
 0x698   : > { %v2990_v46 = vadd.f32 %v2989_v30, %v2938_v29 }
 0x699   : > { %v2944_v21 = vpop.f32.mrf.mxu0  ;;  %v2991_v2 = vpop.f32.mrf.mxu1 }
 0x69a   : > { %v2992_v47 = vadd.f32 %v2991_v2, %v2940_v31 }
 0x69b   : > { %v2993_v32 = vpop.f32.mrf.mxu1  ;;  %v3066_v33 = vpop.f32.mrf.mxu0 }
 0x69c   : > { %v3075_v61 = vadd.f32 %v3066_v33, %v2990_v46  ;;  %v2994_v49 = vadd.f32 %v2993_v32, %v2942_v63  ;;  %v3558_v33 = vpop.permute.xlu0 %3557 }
 0x69d   : > { %v2995_v34 = vpop.f32.mrf.mxu1  ;;  %v3068_v6 = vpop.f32.mrf.mxu0 }
 0x69e   : > { %v3076_v50 = vadd.f32 %v3068_v6, %v2992_v47  ;;  %v2996_v53 = vadd.f32 %v2995_v34, %v2944_v21 }
 0x69f   : > { %v3070_v35 = vpop.f32.mrf.mxu0  ;;  %v3147_v36 = vpop.f32.mrf.mxu1 }
 0x6a0   : > { %v3156_v52 = vadd.f32 %v3147_v36, %v3075_v61  ;;  %v3077_v54 = vadd.f32 %v3070_v35, %v2994_v49  ;;  %v3563_v36 = vpop.permute.xlu1 %3562  ;;  %v3627_v46 = vpop.permute.xlu0 %3626 }
 0x6a1   : > { %v3072_v37 = vpop.f32.mrf.mxu0  ;;  %v3149_v38 = vpop.f32.mrf.mxu1 }
 0x6a2   : > { %v3157_v56 = vadd.f32 %v3149_v38, %v3076_v50  ;;  %v3078_v20 = vadd.f32 %v3072_v37, %v2996_v53 }
 0x6a3   : > { %v3151_v23 = vpop.f32.mrf.mxu1  ;;  %v3202_v39 = vpop.f32.mrf.mxu0 }
 0x6a4   : > { %v3211_v58 = vadd.f32 %v3202_v39, %v3156_v52  ;;  %v3158_v62 = vadd.f32 %v3151_v23, %v3077_v54 }
 0x6a5   : > { %v3153_v40 = vpop.f32.mrf.mxu1  ;;  %v3204_v41 = vpop.f32.mrf.mxu0 }
 0x6a6   : > { %v3212_v55 = vadd.f32 %v3204_v41, %v3157_v56  ;;  %v3159_v7 = vadd.f32 %v3153_v40, %v3078_v20 }
 0x6a7   : > { %v3206_v42 = vpop.f32.mrf.mxu0  ;;  %v3285_v43 = vpop.f32.mrf.mxu1 }
 0x6a8   : > { %v3294_v5 = vadd.f32 %v3285_v43, %v3211_v58  ;;  %v3213_v9 = vadd.f32 %v3206_v42, %v3158_v62 }
 0x6a9   : > { %v3208_v44 = vpop.f32.mrf.mxu0  ;;  %v3287_v45 = vpop.f32.mrf.mxu1 }
 0x6aa   : > { %v3295_v10 = vadd.f32 %v3287_v45, %v3212_v55  ;;  %v3214_v24 = vadd.f32 %v3208_v44, %v3159_v7 }
 0x6ab   : > { %v3289_v48 = vpop.f32.mrf.mxu1  ;;  %v3366_v28 = vpop.f32.mrf.mxu0 }
 0x6ac   : > { %v3375_v8 = vadd.f32 %v3366_v28, %v3294_v5  ;;  %v3296_v13 = vadd.f32 %v3289_v48, %v3213_v9  ;;  %v3632_v48 = vpop.permute.xlu1 %3631 }
 0x6ad   : > { %v3291_v17 = vpop.f32.mrf.mxu1  ;;  %v3368_v51 = vpop.f32.mrf.mxu0 }
 0x6ae   : > { %v3376_v15 = vadd.f32 %v3368_v51, %v3295_v10  ;;  %v3297_v25 = vadd.f32 %v3291_v17, %v3214_v24 }
 0x6af   : > { %v3433_v57 = vpop.f32.mrf.mxu1  ;;  %v3370_v59 = vpop.f32.mrf.mxu0 }
 0x6b0   : > { %v3442_v19 = vadd.f32 %v3433_v57, %v3375_v8  ;;  %v3377_v27 = vadd.f32 %v3370_v59, %v3296_v13 }
 0x6b1   : > { %v3435_v1 = vpop.f32.mrf.mxu1  ;;  %v3372_v11 = vpop.f32.mrf.mxu0 }
 0x6b2   : > { %v3443_v14 = vadd.f32 %v3435_v1, %v3376_v15  ;;  %v3378_v30 = vadd.f32 %v3372_v11, %v3297_v25  ;;  %v4716_v1 = vld [vmem:[%s5724_s12 + $0x8] sm:$0xff]   ;;  %v4715_v25 = vld [vmem:[%s5723_s11] sm:$0xff]  }
 0x6b3   : > { %v3437_v18 = vpop.f32.mrf.mxu1 }
 0x6b4   : > { %v3444_v21 = vadd.f32 %v3437_v18, %v3377_v27  ;;  %v4717_v27 = vld [vmem:[%s5723_s11 + $0x8] sm:$0xff]  }
 0x6b5   : > { %v3439_v29 = vpop.f32.mrf.mxu1 }
 0x6b6   : > { %v3514_v22 = vpop.f32.mrf.mxu0  ;;  %v3445_v34 = vadd.f32 %v3439_v29, %v3378_v30 }
 0x6b7   : > { %v3523_v31 = vadd.f32 %v3514_v22, %v3442_v19 }
 0x6b8   : > { %v3516_v63 = vpop.f32.mrf.mxu0 }
 0x6b9   : > { %v3524_v2 = vadd.f32 %v3516_v63, %v3443_v14  ;;  %v3537_v37 = vadd.f32 %v3530_v60, %v3523_v31 }
 0x6ba   : > { %v3518_v32 = vpop.f32.mrf.mxu0 }
 0x6bb   : > { %v3538_v6 = vadd.f32 %v3530_v60, %v3524_v2  ;;  %v3525_v35 = vadd.f32 %v3518_v32, %v3444_v21  ;;  %v3541_v44 = vmax.f32 %v3537_v37, 0.0  ;;  %v3846_v21 = vpop.permute.xlu0 %3845 }
 0x6bc   : > { %v3520_v38 = vpop.f32.mrf.mxu0 }
 0x6bd   : > { %v3539_v23 = vadd.f32 %v3535_v16, %v3525_v35  ;;  %v3526_v39 = vadd.f32 %v3520_v38, %v3445_v34  ;;  %v3542_v41 = vmax.f32 %v3538_v6, 0.0  ;;  %v3545_v52 = vadd.f32 %v3541_v44, %v5310_v3  ;;  %v4714_v3 = vld [vmem:[%s5724_s12] sm:$0xff]   ;;  %v3851_v35 = vpop.permute.xlu1 %3850 }
 0x6be   : > { %v3676_v40 = vpop.f32.mrf.mxu0 }
 0x6bf   : > { %v3543_v42 = vmax.f32 %v3539_v23, 0.0  ;;  %v3540_v43 = vadd.f32 %v3535_v16, %v3526_v39  ;;  %v3546_v49 = vadd.f32 %v3542_v41, %v5313_v4  ;;  %v3677_v53 = vadd.f32 %v3676_v40, %v3627_v46  ;;  %v3856_v44 = vpop.permute.xlu0 %3855 }
 0x6c0   : > { %v3678_v45 = vpop.f32.mrf.mxu0 }
 0x6c1   : > { %v3544_v47 = vmax.f32 %v3540_v43, 0.0  ;;  %v3547_v28 = vadd.f32 %v3543_v42, %v5316_v26  ;;  %v3679_v17 = vadd.f32 %v3678_v45, %v3627_v46  ;;  %v4713_v26 = vld [vmem:[%s5719_s7] sm:$0xff]   ;;  %v3685_v4 = vmax.f32 %v3677_v53, 0.0 }
 0x6c2   : > { %v3680_v61 = vpop.f32.mrf.mxu0 }
 0x6c3   : > { %v3548_v50 = vadd.f32 %v3544_v47, %v5321_v12  ;;  %v3681_v51 = vadd.f32 %v3680_v61, %v3632_v48  ;;  %v3551_v58 = vpack.c.bf16 %v3547_v28, %v3545_v52  ;;  %v3686_v20 = vmax.f32 %v3679_v17, 0.0 }
 0x6c4   : > { %v3682_v54 = vpop.f32.mrf.mxu0 }
 0x6c5   : > { %v3683_v56 = vadd.f32 %v3682_v54, %v3632_v48  ;;  %v3552_v57 = vpack.c.bf16 %v3548_v50, %v3546_v49  ;;  %v3687_v59 = vmax.f32 %v3681_v51, 0.0  ;;  %v3861_v51 = vpop.permute.xlu1 %3860 }
 0x6c7   : > { %v3688_v62 = vmax.f32 %v3683_v56, 0.0  ;;  %3587 = vmatprep.subr.bf16.mxu1 %v3552_v57  ;;  %v3699_v55 = vpack.c.bf16 %v3687_v59, %v3685_v4 }
 0x6c8   : > { %3588 = vmatpush1.bf16.msra.mxu1 %v3551_v58 }
 0x6c9   : > { %v3700_v12 = vpack.c.bf16 %v3688_v62, %v3686_v20 }
 0x6cb   : > { %4228 = vmatmul.mubr.msk.bf16.vlgmr.msra.gmra.mxu1 %vm690_vm9, %v4713_v26  ;;  %3731 = vmatprep.subr.bf16.mxu1 %v3700_v12 }
 0x6cc   : > { %3732 = vmatpush1.bf16.msra.mxu1 %v3699_v55  ;;  %3749 = vmatprep.mubr.bf16.mxu1 %v4813_v0 }
 0x6d3   : > { %4234 = vmatmul.mubr.msk.bf16.vlgmr.msra.gmra.mxu1 %vm690_vm9, %v4714_v3 }
 0x6d4   : > { %3759 = vmatprep.mubr.bf16.mxu1 %v4813_v0 }
 0x6db   : > { %4235 = vmatmul.mubr.msk.bf16.gmra.mxu1 %vm690_vm9, %v4716_v1 }
 0x78b   : > { %v3607_v5 = vpop.f32.mrf.mxu1 }
 0x78c   : > { %v3608_v11 = vadd.f32 %v3607_v5, %v3558_v33 }
 0x78d   : > { %v3609_v7 = vpop.f32.mrf.mxu1 }
 0x78e   : > { %v3610_v10 = vadd.f32 %v3609_v7, %v3558_v33  ;;  %v3616_v16 = vmax.f32 %v3608_v11, 0.0 }
 0x78f   : > { %v3611_v9 = vpop.f32.mrf.mxu1 }
 0x790   : > { %v3612_v8 = vadd.f32 %v3611_v9, %v3563_v36  ;;  %v3617_v13 = vmax.f32 %v3610_v10, 0.0 }
 0x791   : > { %v3613_v18 = vpop.f32.mrf.mxu1 }
 0x792   : > { %v3614_v60 = vadd.f32 %v3613_v18, %v3563_v36  ;;  %v3618_v24 = vmax.f32 %v3612_v8, 0.0 }
 0x793   : > { %v3751_v14 = vpop.f32.mrf.mxu1 }
 0x794   : > { %v3619_v15 = vmax.f32 %v3614_v60, 0.0  ;;  %v3693_v22 = vpack.c.bf16 %v3618_v24, %v3616_v16 }
 0x795   : > { %v3753_v29 = vpop.f32.mrf.mxu1 }
 0x796   : > { %v3694_v19 = vpack.c.bf16 %v3619_v15, %v3617_v13 }
 0x797   : > { %v3755_v31 = vpop.f32.mrf.mxu1 }
 0x798   : > { %3800 = vmatprep.subr.bf16.mxu0 %v3694_v19 }
 0x799   : > { %3801 = vmatpush1.bf16.msra.mxu0 %v3693_v22  ;;  %v3757_v63 = vpop.f32.mrf.mxu1 }
 0x79b   : > { %v3761_v33 = vpop.f32.mrf.mxu1 }
 0x79c   : > { %4238 = vmatmul.mubr.msk.bf16.vlgmr.msra.gmra.mxu0 %vm690_vm9, %v4715_v25 }
 0x79d   : > { %3828 = vmatprep.mubr.bf16.mxu0 %v4813_v0  ;;  %v3763_v39 = vpop.f32.mrf.mxu1 }
 0x79f   : > { %v3765_v28 = vpop.f32.mrf.mxu1 }
 0x7a1   : > { %v3767_v56 = vpop.f32.mrf.mxu1 }
 0x7a4   : > { %4239 = vmatmul.mubr.msk.bf16.gmra.mxu0 %vm690_vm9, %v4717_v27 }
 0x85c   : > { %v3820_v30 = vpop.f32.mrf.mxu0 }
 0x85d   : > { %v3821_v2 = vadd.f32 %v3820_v30, %v3751_v14 }
 0x85e   : > { %v3822_v32 = vpop.f32.mrf.mxu0 }
 0x85f   : > { %v3863_v34 = vadd.f32 %v3846_v21, %v3821_v2  ;;  %v3823_v0 = vadd.f32 %v3822_v32, %v3753_v29 }
 0x860   : > { %v3824_v6 = vpop.f32.mrf.mxu0 }
 0x861   : > { %v3871_v36 = vmax.f32 %v3863_v34, 0.0  ;;  %v3864_v37 = vadd.f32 %v3846_v21, %v3823_v0  ;;  %v3825_v38 = vadd.f32 %v3824_v6, %v3755_v31 }
 0x862   : > { %v3826_v23 = vpop.f32.mrf.mxu0 }
 0x863   : > { %3879 = vst [vmem:[%s5650_s22] sm:$0xff] %v3871_v36  ;;  %v3872_v40 = vmax.f32 %v3864_v37, 0.0  ;;  %v3865_v41 = vadd.f32 %v3851_v35, %v3825_v38  ;;  %v3827_v42 = vadd.f32 %v3826_v23, %v3757_v63 }
 0x864   : > { %v3830_v43 = vpop.f32.mrf.mxu0 }
 0x865   : > { %3880 = vst [vmem:[%s5650_s22 + $0x8] sm:$0xff] %v3872_v40  ;;  %v3873_v45 = vmax.f32 %v3865_v41, 0.0  ;;  %v3866_v46 = vadd.f32 %v3851_v35, %v3827_v42  ;;  %v3831_v47 = vadd.f32 %v3830_v43, %v3761_v33 }
 0x866   : > { %v3832_v48 = vpop.f32.mrf.mxu0 }
 0x867   : > { %3881 = vst [vmem:[%s5650_s22 + $0x10] sm:$0xff] %v3873_v45  ;;  %v3874_v61 = vmax.f32 %v3866_v46, 0.0  ;;  %v3867_v49 = vadd.f32 %v3856_v44, %v3831_v47  ;;  %v3833_v50 = vadd.f32 %v3832_v48, %v3763_v39 }
 0x868   : > { %v3834_v17 = vpop.f32.mrf.mxu0 }
 0x869   : > { %3882 = vst [vmem:[%s5650_s22 + $0x18] sm:$0xff] %v3874_v61  ;;  %v3875_v52 = vmax.f32 %v3867_v49, 0.0  ;;  %v3868_v53 = vadd.f32 %v3856_v44, %v3833_v50  ;;  %v3835_v54 = vadd.f32 %v3834_v17, %v3765_v28 }
 0x86a   : > { %v3836_v57 = vpop.f32.mrf.mxu0 }
 0x86b   : > { %3883 = vst [vmem:[%s5650_s22 + $0x20] sm:$0xff] %v3875_v52  ;;  %v3876_v58 = vmax.f32 %v3868_v53, 0.0  ;;  %v3869_v59 = vadd.f32 %v3861_v51, %v3835_v54  ;;  %v3837_v20 = vadd.f32 %v3836_v57, %v3767_v56 }
 0x86d   : > { %3884 = vst [vmem:[%s5650_s22 + $0x28] sm:$0xff] %v3876_v58  ;;  %v3877_v62 = vmax.f32 %v3869_v59, 0.0  ;;  %v3870_v26 = vadd.f32 %v3861_v51, %v3837_v20 }
 0x86f   : > { %3885 = vst [vmem:[%s5650_s22 + $0x30] sm:$0xff] %v3877_v62  ;;  %v3878_v4 = vmax.f32 %v3870_v26, 0.0 }
 0x871   : > { %3886 = vst [vmem:[%s5650_s22 + $0x38] sm:$0xff] %v3878_v4 }
 0x872   : > { %4757 = shalt.err (!%p4754_p0)
}
 0x873   : > { %s4758_s21 = scalar_lea.hbm %s5666_s26, 1024  ;;  %s4762_s27 = scalar_lea.hbm %s5726_s14, 2048 }
 0x874   : > { %p4759_p1 = scmp.ne.s32.totalorder %s5666_s26, %s4758_s21  ;;  %p4763_p4 = scmp.lt.s32.totalorder %s5666_s26, %s5726_s14 }
 0x875   : > { %p4764_p7 = scmp.lt.s32.totalorder %s4762_s27, %s4758_s21 }
 0x876   : > { %p4760_p2 = pnand %p4759_p1, %p4939_p5 }
 0x877   : > { %p4765_p8 = por %p4764_p7, %p4763_p4 }
 0x878   : > { %p4761_p3 = pneg %p4760_p2 }
 0x87a   : > { %p4766_p6 = pnand %p4765_p8, %p4761_p3 }
 0x87c   : > { %4769 = shalt.err (!%p4766_p6)
}
 0x87d   : > { %s4825_s17 = smov 256  }
 0x87e   : > { %4251 = dma.vmem_to_hbm [thread:$0]  (%p4939_p5), %s5660_s25, 1024, %s5666_s26, %s5671_s28, %s4825_s17, %s4825_s17, %s5764_s0  }
 0x87f PF: > { %p4263_p9 = scmp.ge.s32.totalorder %s4808_s16, 2  ;;  %s3916_s2 = sand.u32 1, %s4796_s29  }
 0x880   : > { %p5767_p10 = scmp.ne.s32.totalorder %s5745_s24, 0  ;;  %s3917_s18 = scalar_lea.sflag [#allocation5], %s3916_s2 }
 0x882   : > { %p4258_p11 = pnand %p4263_p9, %p5767_p10 }
 0x884   : > { %p4259_p12 = pneg %p4258_p11 }
 0x886   : > { %4791 = dma.done.wait (%p4259_p12), %s3917_s18, 1024  }
 0x887   : > { %4793 = vsyncadd (%p4259_p12), %s3917_s18, 4294966272  ;;  %s5768_s23 = sld [smem:[#allocation9_spill]]  ;;  %p25_p13 = scmp.ge.s32.totalorder %s4926_s19, 4  }
 0x888   : > { %s5769_s29 = smov %s4800_s30  ;;  %s5770_s30 = smov %s4804_s15 }
 0x889   : > { %s5772_s16 = smov %s4926_s19  ;;  %27 = sbr.rel (!%p25_p13) target bundleno = 9 (0x9), region = 120 }
 0x88d   : > { %s5771_s15 = smov %s5768_s23 }
 0x88e   :  { %3922 = vsyncpa [#allocation4], 1 }
 0x88f   :  { %3924 = vsyncpa [#allocation4 + $0x1], 1 }
 0x890   :  { %3925 = vsyncpa [#allocation5], 1 }
 0x891   :  { %3927 = vsyncpa [#allocation5 + $0x1], 1 }

</bundles_post_ra>
